<compile_context>
chip_gen: v6e
topology: v6e:2x2x1
jax: 0.10.0
libtpu: 0.0.40
codegen_flags: <defaults>
</compile_context>

<pallas_src>
import functools

import jax
import jax.numpy as jnp
from jax import lax
from jax.experimental import pallas as pl
from jax.experimental.pallas import tpu as pltpu

# ----------------------------- model hyper-parameters (small) -----------------------------
N_LAYERS = 2
D_MODEL = 32
D_FF = 64
N_HEADS = 4
D_K = 8
D_V = 8
TGT_VOCAB = 50
MAX_SEQ_LEN = 16
PAD_IDX = 0
LN_EPS = 1e-6

_HDK = N_HEADS * D_K                      # 32
_HDV = N_HEADS * D_V                      # 32
_QKV_ROWS = 2 * _HDK + _HDV               # 96  rows = [q | k | v]
_QX_ROWS = _QKV_ROWS + _HDK               # 128 rows = [q | k | v | enc_q]


# ================================ fused decoder kernel ================================
def _decoder_kernel(x_ref, enc_ref, aux_ref,
                    wqx_ref, bqx_ref, wekv_ref, bekv_ref,
                    wo_ref, bo_ref, w1_ref, b1_ref, w2_ref, b2_ref, ln_ref,
                    out_ref, *, n_layers, n_heads, d_k, d_v, batch, seq_q, seq_k, eps):
    """Whole decoder stack (all layers: self-attn, enc-attn, FFN) for the whole batch.

    Layout: activations are feature-major (D, tokens) with tokens = batch * seq flattened;
    attention is block-diagonal across the batch via the additive mask.
    """
    f32 = jnp.float32
    bf16 = jnp.bfloat16
    hdk = n_heads * d_k
    hdv = n_heads * d_v
    qkv_rows = 2 * hdk + hdv

    x = x_ref[...]                                   # (D, T)    decoder residual stream
    enc = enc_ref[...]                               # (D, Tk)   encoder outputs
    T = x.shape[1]
    Tk = enc.shape[1]
    aux = aux_ref[...]                               # (2, max(T, Tk)) pad indicators
    dpad = aux[0:1, :T]                              # (1, T)  1.0 where decoder PAD
    epad = aux[1:2, :Tk]                             # (1, Tk) 1.0 where encoder PAD

    # ---- additive attention biases, built in-kernel (block-diagonal over the batch) ----
    neg = f32(-1e9)
    tq = lax.broadcasted_iota(jnp.int32, (T, T), 0)
    tk = lax.broadcasted_iota(jnp.int32, (T, T), 1)
    uq = lax.broadcasted_iota(jnp.int32, (T, Tk), 0)
    uk = lax.broadcasted_iota(jnp.int32, (T, Tk), 1)
    same_self = None
    same_enc = None
    for b in range(batch):                           # static, tiny (built once per call)
        blk_s = ((tq >= b * seq_q) & (tq < (b + 1) * seq_q) &
                 (tk >= b * seq_q) & (tk < (b + 1) * seq_q))
        blk_e = ((uq >= b * seq_q) & (uq < (b + 1) * seq_q) &
                 (uk >= b * seq_k) & (uk < (b + 1) * seq_k))
        same_self = blk_s if same_self is None else (same_self | blk_s)
        same_enc = blk_e if same_enc is None else (same_enc | blk_e)
    self_bias = jnp.where(same_self & (tk <= tq) & (dpad == 0.0), f32(0.0), neg)   # (T, T)
    enc_bias = jnp.where(same_enc & (epad == 0.0), f32(0.0), neg)                  # (T, Tk)

    def layer_norm(y, g, b):                         # normalize over features (axis 0)
        mu = jnp.mean(y, axis=0, keepdims=True)
        var = jnp.mean(jnp.square(y - mu), axis=0, keepdims=True)
        return (y - mu) * lax.rsqrt(var + eps) * g + b

    def attend(q, kv, bias, wo, bo):
        # q : (hdk, Tq) f32  (1/sqrt(d_k) already folded into the Q weights/bias)
        # kv: (hdk+hdv, Tkv) f32, rows = [k | v];  wo: (D, hdv) bf16;  bo: (D, 1) f32
        Tq = q.shape[1]
        Tkv = kv.shape[1]
        qh = jnp.swapaxes(q.reshape(n_heads, d_k, Tq), 1, 2)          # (H, Tq, dk)
        kh = kv[:hdk].reshape(n_heads, d_k, Tkv)                      # (H, dk, Tkv)
        vh = kv[hdk:].reshape(n_heads, d_v, Tkv)                      # (H, dv, Tkv)
        s = lax.dot_general(qh, kh, (((2,), (1,)), ((0,), (0,))),
                            preferred_element_type=f32) + bias[None]  # (H, Tq, Tkv)
        s = s - jnp.max(s, axis=-1, keepdims=True)
        p = jnp.exp(s)
        p = p * pl.reciprocal(jnp.sum(p, axis=-1, keepdims=True), approx=True)
        ctx = lax.dot_general(vh, p, (((2,), (2,)), ((0,), (0,))),
                              preferred_element_type=f32)              # (H, dv, Tq)
        ctx = ctx.reshape(hdv, Tq)                                     # head concat (sublanes)
        # head reduction folded into the output projection: single (D, H*dv) matmul
        return lax.dot_general(wo, ctx.astype(bf16), (((1,), (0,)), ((), ())),
                               preferred_element_type=f32) + bo        # (D, Tq)

    # ---- encoder K/V for ALL layers, hoisted out of the layer loop (enc is layer-invariant) ----
    enc_kv_all = lax.dot_general(wekv_ref[...], enc.astype(bf16), (((1,), (0,)), ((), ())),
                                 preferred_element_type=f32) + bekv_ref[...]  # (NL*(hdk+hdv), Tk)

    ln = ln_ref[...]                                 # (2, 3*NL, D, 1): [gamma, beta]

    for li in range(n_layers):                       # static unroll over layers
        wqx = wqx_ref[li]                            # (qkv_rows + hdk, D) bf16
        bqx = bqx_ref[li]                            # (qkv_rows + hdk, 1) f32

        # --- masked self-attention + residual + layernorm ---
        qkv = lax.dot_general(wqx[:qkv_rows], x.astype(bf16), (((1,), (0,)), ((), ())),
                              preferred_element_type=f32) + bqx[:qkv_rows]        # (96, T)
        a = attend(qkv[:hdk], qkv[hdk:], self_bias, wo_ref[2 * li], bo_ref[2 * li])
        x = layer_norm(x + a, ln[0, 3 * li + 0], ln[1, 3 * li + 0])

        # --- encoder-decoder attention + residual + layernorm ---
        q = lax.dot_general(wqx[qkv_rows:], x.astype(bf16), (((1,), (0,)), ((), ())),
                            preferred_element_type=f32) + bqx[qkv_rows:]           # (hdk, T)
        kv = enc_kv_all[li * (hdk + hdv):(li + 1) * (hdk + hdv)]                   # (hdk+hdv, Tk)
        a = attend(q, kv, enc_bias, wo_ref[2 * li + 1], bo_ref[2 * li + 1])
        x = layer_norm(x + a, ln[0, 3 * li + 1], ln[1, 3 * li + 1])

        # --- position-wise FFN (1x1 conv == matmul) + residual + layernorm ---
        h = jnp.maximum(
            lax.dot_general(w1_ref[li], x.astype(bf16), (((1,), (0,)), ((), ())),
                            preferred_element_type=f32) + b1_ref[li], 0.0)         # (dff, T)
        f = lax.dot_general(w2_ref[li], h.astype(bf16), (((1,), (0,)), ((), ())),
                            preferred_element_type=f32) + b2_ref[li]               # (D, T)
        x = layer_norm(x + f, ln[0, 3 * li + 2], ln[1, 3 * li + 2])

    out_ref[...] = x


# ================================ pallas_call wrapper ================================
def decoder_stack(x_t, enc_t, aux, params, *, batch, len_q, len_k):
    D, T = x_t.shape
    weights = (params['w_qx'], params['b_qx'], params['w_ekv'], params['b_ekv'],
               params['w_o'], params['b_o'], params['w1'], params['b1'],
               params['w2'], params['b2'], params['ln'])
    kernel = functools.partial(_decoder_kernel, n_layers=N_LAYERS, n_heads=N_HEADS,
                               d_k=D_K, d_v=D_V, batch=batch, seq_q=len_q, seq_k=len_k,
                               eps=LN_EPS)
    vmem = pl.BlockSpec(memory_space=pltpu.MemorySpace.VMEM)   # whole array resident in VMEM
    return pl.pallas_call(
        kernel,
        out_shape=jax.ShapeDtypeStruct((D, T), jnp.float32),
        in_specs=[vmem] * (3 + len(weights)),
        out_specs=vmem,
    )(x_t, enc_t, aux, *weights)


# ================================ parameter init ================================
def _build_pos_enc_table(n_pos, d_model):
    pos = jnp.arange(n_pos, dtype=jnp.float32)[:, None]
    j = jnp.arange(d_model)[None, :]
    angle = pos / jnp.power(10000.0, 2.0 * (j // 2).astype(jnp.float32) / d_model)
    pe = jnp.where(j % 2 == 0, jnp.sin(angle), jnp.cos(angle))
    pad_row = jnp.zeros((1, d_model), jnp.float32)
    return jnp.concatenate([pad_row, pe], axis=0).astype(jnp.float32)   # (n_pos+1, D)


def init_params(key):
    def normal(k, shape, scale=0.02):
        return (scale * jax.random.normal(k, shape)).astype(jnp.float32)

    keys = jax.random.split(key, 8)
    bf = jnp.bfloat16
    scale = D_K ** -0.5

    tgt_emb = normal(keys[0], (TGT_VOCAB, D_MODEL), scale=1.0)
    tgt_emb = tgt_emb.at[PAD_IDX].set(0.0)                    # padding_idx = 0
    pos_enc = _build_pos_enc_table(MAX_SEQ_LEN * 10, D_MODEL)

    # per-layer packed projection weights, rows = [self_q | self_k | self_v | enc_q]
    w_qx = normal(keys[1], (N_LAYERS, _QX_ROWS, D_MODEL))
    w_qx = w_qx.at[:, :_HDK, :].multiply(scale)               # fold 1/sqrt(d_k) into self-Q
    w_qx = w_qx.at[:, _QKV_ROWS:, :].multiply(scale)          # ... and into enc-Q
    b_qx = jnp.zeros((N_LAYERS, _QX_ROWS, 1), jnp.float32)

    # all-layer encoder K/V weights, rows per layer = [k(32) | v(32)]
    w_ekv = normal(keys[2], (N_LAYERS * (_HDK + _HDV), D_MODEL))
    b_ekv = jnp.zeros((N_LAYERS * (_HDK + _HDV), 1), jnp.float32)

    # output projections (D, H*d_v), one per attention module [self0, enc0, self1, enc1]
    w_o = normal(keys[3], (2 * N_LAYERS, D_MODEL, _HDV))
    b_o = jnp.zeros((2 * N_LAYERS, D_MODEL, 1), jnp.float32)

    w1 = normal(keys[4], (N_LAYERS, D_FF, D_MODEL))
    b1 = jnp.zeros((N_LAYERS, D_FF, 1), jnp.float32)
    w2 = normal(keys[5], (N_LAYERS, D_MODEL, D_FF))
    b2 = jnp.zeros((N_LAYERS, D_MODEL, 1), jnp.float32)

    ln = jnp.stack([jnp.ones((3 * N_LAYERS, D_MODEL, 1), jnp.float32),    # gamma
                    jnp.zeros((3 * N_LAYERS, D_MODEL, 1), jnp.float32)])  # beta

    return dict(tgt_emb=tgt_emb, pos_enc=pos_enc,
                w_qx=w_qx.astype(bf), b_qx=b_qx,
                w_ekv=w_ekv.astype(bf), b_ekv=b_ekv,
                w_o=w_o.astype(bf), b_o=b_o,
                w1=w1.astype(bf), b1=b1, w2=w2.astype(bf), b2=b2, ln=ln)


# ================================ decoder forward ================================
def decoder_forward(params, dec_inputs, dec_inputs_len, enc_outputs, enc_inputs):
    B, L = dec_inputs.shape
    Lk = enc_inputs.shape[1]
    D = D_MODEL

    # target embedding + positional encoding (gathers stay in plain JAX)
    emb = params['tgt_emb'][dec_inputs]                                  # (B, L, D)
    ar = jnp.arange(L)[None, :]
    pos_idx = jnp.where(ar < dec_inputs_len[:, None], ar + 1, 0)
    x = emb + params['pos_enc'][pos_idx]                                 # (B, L, D)
    # dropout_emb: identity (eval mode)

    # feature-major flattening: (D, B*L) tokens-on-lanes, features-on-sublanes
    x_t = jnp.transpose(x, (2, 0, 1)).reshape(D, B * L)
    enc_t = jnp.transpose(enc_outputs, (2, 0, 1)).reshape(D, B * Lk)

    # merged pad-indicator aux (single tiny DMA): row0 = dec pad, row1 = enc pad
    t_max = max(B * L, B * Lk)
    aux = jnp.zeros((2, t_max), jnp.float32)
    aux = aux.at[0, :B * L].set((dec_inputs == PAD_IDX).astype(jnp.float32).reshape(-1))
    aux = aux.at[1, :B * Lk].set((enc_inputs == PAD_IDX).astype(jnp.float32).reshape(-1))

    out_t = decoder_stack(x_t, enc_t, aux, params, batch=B, len_q=L, len_k=Lk)   # (D, B*L)
    return jnp.transpose(out_t.reshape(D, B, L), (1, 2, 0))              # (B, L, D)
    # TODO(synk): return_attn=True attention maps are not materialized (not needed for output).


# ================================ main ================================
if __name__ == "__main__":
    key = jax.random.PRNGKey(0)
    k_par, k_dec, k_enc_tok, k_enc_out = jax.random.split(key, 4)

    B, L_DEC, L_ENC = 2, 8, 8
    params = init_params(k_par)

    # decoder token ids with trailing padding for batch element 1
    dec_inputs = jax.random.randint(k_dec, (B, L_DEC), 1, TGT_VOCAB).astype(jnp.int32)
    dec_inputs_len = jnp.array([L_DEC, 5], jnp.int32)
    dec_inputs = jnp.where(jnp.arange(L_DEC)[None, :] < dec_inputs_len[:, None],
                           dec_inputs, 0)

    # encoder side: token ids (for the pad mask) and encoder outputs
    enc_inputs = jax.random.randint(k_enc_tok, (B, L_ENC), 1, TGT_VOCAB).astype(jnp.int32)
    enc_inputs = enc_inputs.at[1, 6:].set(0)                    # some encoder padding
    enc_outputs = jax.random.normal(k_enc_out, (B, L_ENC, D_MODEL), jnp.float32)

    fwd = jax.jit(decoder_forward)
    out = jax.block_until_ready(fwd(params, dec_inputs, dec_inputs_len,
                                    enc_outputs, enc_inputs))
    assert out.shape == (B, L_DEC, D_MODEL) and out.dtype == jnp.float32
    assert bool(jnp.all(jnp.isfinite(out)))
    print("KERNEL_OK")
</pallas_src>

<mosaic_0001>
module attributes {stable_mosaic.version = 11 : i64} {
  func.func @_decoder_kernel(%arg0: memref<32x16xf32, #tpu.memory_space<vmem>>, %arg1: memref<32x16xf32, #tpu.memory_space<vmem>>, %arg2: memref<2x16xf32, #tpu.memory_space<vmem>>, %arg3: memref<2x128x32xbf16, #tpu.memory_space<vmem>>, %arg4: memref<2x128x1xf32, #tpu.memory_space<vmem>>, %arg5: memref<128x32xbf16, #tpu.memory_space<vmem>>, %arg6: memref<128x1xf32, #tpu.memory_space<vmem>>, %arg7: memref<4x32x32xbf16, #tpu.memory_space<vmem>>, %arg8: memref<4x32x1xf32, #tpu.memory_space<vmem>>, %arg9: memref<2x64x32xbf16, #tpu.memory_space<vmem>>, %arg10: memref<2x64x1xf32, #tpu.memory_space<vmem>>, %arg11: memref<2x32x64xbf16, #tpu.memory_space<vmem>>, %arg12: memref<2x32x1xf32, #tpu.memory_space<vmem>>, %arg13: memref<2x6x32x1xf32, #tpu.memory_space<vmem>>, %arg14: memref<32x16xf32, #tpu.memory_space<vmem>>) attributes {dimension_semantics = [], scalar_prefetch = 0 : i64, scratch_operands = 0 : i64, tpu.core_type = #tpu.core_type<tc>} {
    %c0 = arith.constant 0 : index
    %c0_0 = arith.constant 0 : index
    %0 = vector.load %arg0[%c0, %c0_0] : memref<32x16xf32, #tpu.memory_space<vmem>>, vector<32x16xf32>
    %c0_1 = arith.constant 0 : index
    %c0_2 = arith.constant 0 : index
    %1 = vector.load %arg1[%c0_1, %c0_2] : memref<32x16xf32, #tpu.memory_space<vmem>>, vector<32x16xf32>
    %c0_3 = arith.constant 0 : index
    %c0_4 = arith.constant 0 : index
    %2 = vector.load %arg2[%c0_3, %c0_4] : memref<2x16xf32, #tpu.memory_space<vmem>>, vector<2x16xf32>
    %3 = vector.extract_strided_slice %2 {offsets = [0, 0], sizes = [1, 16], strides = [1, 1]} : vector<2x16xf32> to vector<1x16xf32>
    %4 = vector.extract_strided_slice %2 {offsets = [1, 0], sizes = [1, 16], strides = [1, 1]} : vector<2x16xf32> to vector<1x16xf32>
    %5 = tpu.iota {dimensions = array<i32: 0>} : vector<16x16xi32>
    %6 = tpu.iota {dimensions = array<i32: 1>} : vector<16x16xi32>
    %7 = tpu.iota {dimensions = array<i32: 0>} : vector<16x16xi32>
    %8 = tpu.iota {dimensions = array<i32: 1>} : vector<16x16xi32>
    %c0_i32 = arith.constant 0 : i32
    %9 = vector.broadcast %c0_i32 : i32 to vector<16x16xi32>
    %10 = arith.cmpi sge, %5, %9 : vector<16x16xi32>
    %c8_i32 = arith.constant 8 : i32
    %11 = vector.broadcast %c8_i32 : i32 to vector<16x16xi32>
    %12 = arith.cmpi slt, %5, %11 : vector<16x16xi32>
    %13 = arith.andi %10, %12 : vector<16x16xi1>
    %c0_i32_5 = arith.constant 0 : i32
    %14 = vector.broadcast %c0_i32_5 : i32 to vector<16x16xi32>
    %15 = arith.cmpi sge, %6, %14 : vector<16x16xi32>
    %16 = arith.andi %13, %15 : vector<16x16xi1>
    %c8_i32_6 = arith.constant 8 : i32
    %17 = vector.broadcast %c8_i32_6 : i32 to vector<16x16xi32>
    %18 = arith.cmpi slt, %6, %17 : vector<16x16xi32>
    %19 = arith.andi %16, %18 : vector<16x16xi1>
    %c0_i32_7 = arith.constant 0 : i32
    %20 = vector.broadcast %c0_i32_7 : i32 to vector<16x16xi32>
    %21 = arith.cmpi sge, %7, %20 : vector<16x16xi32>
    %c8_i32_8 = arith.constant 8 : i32
    %22 = vector.broadcast %c8_i32_8 : i32 to vector<16x16xi32>
    %23 = arith.cmpi slt, %7, %22 : vector<16x16xi32>
    %24 = arith.andi %21, %23 : vector<16x16xi1>
    %c0_i32_9 = arith.constant 0 : i32
    %25 = vector.broadcast %c0_i32_9 : i32 to vector<16x16xi32>
    %26 = arith.cmpi sge, %8, %25 : vector<16x16xi32>
    %27 = arith.andi %24, %26 : vector<16x16xi1>
    %c8_i32_10 = arith.constant 8 : i32
    %28 = vector.broadcast %c8_i32_10 : i32 to vector<16x16xi32>
    %29 = arith.cmpi slt, %8, %28 : vector<16x16xi32>
    %30 = arith.andi %27, %29 : vector<16x16xi1>
    %c8_i32_11 = arith.constant 8 : i32
    %31 = vector.broadcast %c8_i32_11 : i32 to vector<16x16xi32>
    %32 = arith.cmpi sge, %5, %31 : vector<16x16xi32>
    %c16_i32 = arith.constant 16 : i32
    %33 = vector.broadcast %c16_i32 : i32 to vector<16x16xi32>
    %34 = arith.cmpi slt, %5, %33 : vector<16x16xi32>
    %35 = arith.andi %32, %34 : vector<16x16xi1>
    %c8_i32_12 = arith.constant 8 : i32
    %36 = vector.broadcast %c8_i32_12 : i32 to vector<16x16xi32>
    %37 = arith.cmpi sge, %6, %36 : vector<16x16xi32>
    %38 = arith.andi %35, %37 : vector<16x16xi1>
    %c16_i32_13 = arith.constant 16 : i32
    %39 = vector.broadcast %c16_i32_13 : i32 to vector<16x16xi32>
    %40 = arith.cmpi slt, %6, %39 : vector<16x16xi32>
    %41 = arith.andi %38, %40 : vector<16x16xi1>
    %c8_i32_14 = arith.constant 8 : i32
    %42 = vector.broadcast %c8_i32_14 : i32 to vector<16x16xi32>
    %43 = arith.cmpi sge, %7, %42 : vector<16x16xi32>
    %c16_i32_15 = arith.constant 16 : i32
    %44 = vector.broadcast %c16_i32_15 : i32 to vector<16x16xi32>
    %45 = arith.cmpi slt, %7, %44 : vector<16x16xi32>
    %46 = arith.andi %43, %45 : vector<16x16xi1>
    %c8_i32_16 = arith.constant 8 : i32
    %47 = vector.broadcast %c8_i32_16 : i32 to vector<16x16xi32>
    %48 = arith.cmpi sge, %8, %47 : vector<16x16xi32>
    %49 = arith.andi %46, %48 : vector<16x16xi1>
    %c16_i32_17 = arith.constant 16 : i32
    %50 = vector.broadcast %c16_i32_17 : i32 to vector<16x16xi32>
    %51 = arith.cmpi slt, %8, %50 : vector<16x16xi32>
    %52 = arith.andi %49, %51 : vector<16x16xi1>
    %53 = arith.ori %19, %41 : vector<16x16xi1>
    %54 = arith.ori %30, %52 : vector<16x16xi1>
    %55 = arith.cmpi sle, %6, %5 : vector<16x16xi32>
    %56 = arith.andi %53, %55 : vector<16x16xi1>
    %cst = arith.constant 0.000000e+00 : f32
    %57 = vector.broadcast %cst : f32 to vector<1x16xf32>
    %58 = arith.cmpf oeq, %3, %57 : vector<1x16xf32>
    %59 = vector.broadcast %58 : vector<1x16xi1> to vector<16x16xi1>
    %60 = arith.andi %56, %59 : vector<16x16xi1>
    %cst_18 = arith.constant 0.000000e+00 : f32
    %cst_19 = arith.constant -1.000000e+09 : f32
    %61 = vector.broadcast %cst_18 : f32 to vector<16x16xf32>
    %62 = vector.broadcast %cst_19 : f32 to vector<16x16xf32>
    %63 = arith.select %60, %61, %62 : vector<16x16xi1>, vector<16x16xf32>
    %cst_20 = arith.constant 0.000000e+00 : f32
    %64 = vector.broadcast %cst_20 : f32 to vector<1x16xf32>
    %65 = arith.cmpf oeq, %4, %64 : vector<1x16xf32>
    %66 = vector.broadcast %65 : vector<1x16xi1> to vector<16x16xi1>
    %67 = arith.andi %54, %66 : vector<16x16xi1>
    %cst_21 = arith.constant 0.000000e+00 : f32
    %cst_22 = arith.constant -1.000000e+09 : f32
    %68 = vector.broadcast %cst_21 : f32 to vector<16x16xf32>
    %69 = vector.broadcast %cst_22 : f32 to vector<16x16xf32>
    %70 = arith.select %67, %68, %69 : vector<16x16xi1>, vector<16x16xf32>
    %c0_23 = arith.constant 0 : index
    %c0_24 = arith.constant 0 : index
    %71 = vector.load %arg5[%c0_23, %c0_24] : memref<128x32xbf16, #tpu.memory_space<vmem>>, vector<128x32xbf16>
    %72 = arith.truncf %1 : vector<32x16xf32> to vector<32x16xbf16>
    %cst_25 = arith.constant dense<0.000000e+00> : vector<128x16xf32>
    %73 = tpu.matmul %71, %72, %cst_25 {dimension_numbers = #tpu.dot_dimension_numbers<[1], [0], [0], [1], [0, 0, 1, 1], [], []>} : vector<128x32xbf16>, vector<32x16xbf16>, vector<128x16xf32> -> vector<128x16xf32>
    %c0_26 = arith.constant 0 : index
    %c0_27 = arith.constant 0 : index
    %74 = vector.load %arg6[%c0_26, %c0_27] : memref<128x1xf32, #tpu.memory_space<vmem>>, vector<128x1xf32>
    %75 = vector.broadcast %74 : vector<128x1xf32> to vector<128x16xf32>
    %76 = arith.addf %73, %75 : vector<128x16xf32>
    %c0_28 = arith.constant 0 : index
    %c0_29 = arith.constant 0 : index
    %c0_30 = arith.constant 0 : index
    %c0_31 = arith.constant 0 : index
    %77 = vector.load %arg13[%c0_28, %c0_29, %c0_30, %c0_31] : memref<2x6x32x1xf32, #tpu.memory_space<vmem>>, vector<2x6x32x1xf32>
    %c0_32 = arith.constant 0 : index
    %c0_33 = arith.constant 0 : index
    %c0_34 = arith.constant 0 : index
    %78 = vector.load %arg3[%c0_32, %c0_33, %c0_34] : memref<2x128x32xbf16, #tpu.memory_space<vmem>>, vector<1x128x32xbf16>
    %79 = vector.shape_cast %78 : vector<1x128x32xbf16> to vector<128x32xbf16>
    %c0_35 = arith.constant 0 : index
    %c0_36 = arith.constant 0 : index
    %c0_37 = arith.constant 0 : index
    %80 = vector.load %arg4[%c0_35, %c0_36, %c0_37] : memref<2x128x1xf32, #tpu.memory_space<vmem>>, vector<1x128x1xf32>
    %81 = vector.shape_cast %80 : vector<1x128x1xf32> to vector<128x1xf32>
    %82 = vector.extract_strided_slice %79 {offsets = [0, 0], sizes = [96, 32], strides = [1, 1]} : vector<128x32xbf16> to vector<96x32xbf16>
    %83 = arith.truncf %0 : vector<32x16xf32> to vector<32x16xbf16>
    %cst_38 = arith.constant dense<0.000000e+00> : vector<96x16xf32>
    %84 = tpu.matmul %82, %83, %cst_38 {dimension_numbers = #tpu.dot_dimension_numbers<[1], [0], [0], [1], [0, 0, 1, 1], [], []>} : vector<96x32xbf16>, vector<32x16xbf16>, vector<96x16xf32> -> vector<96x16xf32>
    %85 = vector.extract_strided_slice %81 {offsets = [0, 0], sizes = [96, 1], strides = [1, 1]} : vector<128x1xf32> to vector<96x1xf32>
    %86 = vector.broadcast %85 : vector<96x1xf32> to vector<96x16xf32>
    %87 = arith.addf %84, %86 : vector<96x16xf32>
    %88 = vector.extract_strided_slice %87 {offsets = [0, 0], sizes = [32, 16], strides = [1, 1]} : vector<96x16xf32> to vector<32x16xf32>
    %89 = vector.extract_strided_slice %87 {offsets = [32, 0], sizes = [64, 16], strides = [1, 1]} : vector<96x16xf32> to vector<64x16xf32>
    %c0_39 = arith.constant 0 : index
    %c0_40 = arith.constant 0 : index
    %c0_41 = arith.constant 0 : index
    %90 = vector.load %arg7[%c0_39, %c0_40, %c0_41] : memref<4x32x32xbf16, #tpu.memory_space<vmem>>, vector<1x32x32xbf16>
    %91 = vector.shape_cast %90 : vector<1x32x32xbf16> to vector<32x32xbf16>
    %c0_42 = arith.constant 0 : index
    %c0_43 = arith.constant 0 : index
    %c0_44 = arith.constant 0 : index
    %92 = vector.load %arg8[%c0_42, %c0_43, %c0_44] : memref<4x32x1xf32, #tpu.memory_space<vmem>>, vector<1x32x1xf32>
    %93 = vector.shape_cast %92 : vector<1x32x1xf32> to vector<32x1xf32>
    %94 = vector.shape_cast %88 : vector<32x16xf32> to vector<4x8x16xf32>
    %95 = tpu.transpose %94, [0, 2, 1] : vector<4x8x16xf32> -> vector<4x16x8xf32>
    %96 = vector.extract_strided_slice %89 {offsets = [0, 0], sizes = [32, 16], strides = [1, 1]} : vector<64x16xf32> to vector<32x16xf32>
    %97 = vector.shape_cast %96 : vector<32x16xf32> to vector<4x8x16xf32>
    %98 = vector.extract_strided_slice %89 {offsets = [32, 0], sizes = [32, 16], strides = [1, 1]} : vector<64x16xf32> to vector<32x16xf32>
    %99 = vector.shape_cast %98 : vector<32x16xf32> to vector<4x8x16xf32>
    %cst_45 = arith.constant dense<0.000000e+00> : vector<4x16x16xf32>
    %100 = tpu.matmul %95, %97, %cst_45 {dimension_numbers = #tpu.dot_dimension_numbers<[2], [1], [1], [2], [0, 0, 0, 1, 1, 2], [0], [0]>} : vector<4x16x8xf32>, vector<4x8x16xf32>, vector<4x16x16xf32> -> vector<4x16x16xf32>
    %101 = vector.shape_cast %63 : vector<16x16xf32> to vector<1x16x16xf32>
    %102 = vector.broadcast %101 : vector<1x16x16xf32> to vector<4x16x16xf32>
    %103 = arith.addf %100, %102 : vector<4x16x16xf32>
    %cst_46 = arith.constant dense<0xFF800000> : vector<4x16xf32>
    %104 = vector.multi_reduction <maximumf>, %103, %cst_46 [2] : vector<4x16x16xf32> to vector<4x16xf32>
    %105 = vector.shape_cast %104 : vector<4x16xf32> to vector<4x16x1xf32>
    %106 = vector.broadcast %105 : vector<4x16x1xf32> to vector<4x16x16xf32>
    %107 = arith.subf %103, %106 : vector<4x16x16xf32>
    %108 = math.exp %107 : vector<4x16x16xf32>
    %cst_47 = arith.constant dense<0.000000e+00> : vector<4x16xf32>
    %109 = vector.multi_reduction <add>, %108, %cst_47 [2] : vector<4x16x16xf32> to vector<4x16xf32>
    %110 = vector.shape_cast %109 : vector<4x16xf32> to vector<4x16x1xf32>
    %111 = tpu.reciprocal %110 {approx = true} : vector<4x16x1xf32> -> vector<4x16x1xf32>
    %112 = vector.broadcast %111 : vector<4x16x1xf32> to vector<4x16x16xf32>
    %113 = arith.mulf %108, %112 : vector<4x16x16xf32>
    %cst_48 = arith.constant dense<0.000000e+00> : vector<4x8x16xf32>
    %114 = tpu.matmul %99, %113, %cst_48 {dimension_numbers = #tpu.dot_dimension_numbers<[2], [2], [1], [1], [0, 0, 0, 1, 1, 1], [0], [0]>} : vector<4x8x16xf32>, vector<4x16x16xf32>, vector<4x8x16xf32> -> vector<4x8x16xf32>
    %115 = vector.shape_cast %114 : vector<4x8x16xf32> to vector<32x16xf32>
    %116 = arith.truncf %115 : vector<32x16xf32> to vector<32x16xbf16>
    %cst_49 = arith.constant dense<0.000000e+00> : vector<32x16xf32>
    %117 = tpu.matmul %91, %116, %cst_49 {dimension_numbers = #tpu.dot_dimension_numbers<[1], [0], [0], [1], [0, 0, 1, 1], [], []>} : vector<32x32xbf16>, vector<32x16xbf16>, vector<32x16xf32> -> vector<32x16xf32>
    %118 = vector.broadcast %93 : vector<32x1xf32> to vector<32x16xf32>
    %119 = arith.addf %117, %118 : vector<32x16xf32>
    %120 = arith.addf %0, %119 : vector<32x16xf32>
    %121 = vector.extract_strided_slice %77 {offsets = [0, 0, 0, 0], sizes = [1, 1, 32, 1], strides = [1, 1, 1, 1]} : vector<2x6x32x1xf32> to vector<1x1x32x1xf32>
    %122 = vector.shape_cast %121 : vector<1x1x32x1xf32> to vector<32x1xf32>
    %123 = vector.extract_strided_slice %77 {offsets = [1, 0, 0, 0], sizes = [1, 1, 32, 1], strides = [1, 1, 1, 1]} : vector<2x6x32x1xf32> to vector<1x1x32x1xf32>
    %124 = vector.shape_cast %123 : vector<1x1x32x1xf32> to vector<32x1xf32>
    %cst_50 = arith.constant dense<0.000000e+00> : vector<16xf32>
    %125 = vector.multi_reduction <add>, %120, %cst_50 [0] : vector<32x16xf32> to vector<16xf32>
    %126 = vector.shape_cast %125 : vector<16xf32> to vector<1x16xf32>
    %cst_51 = arith.constant 3.200000e+01 : f32
    %127 = vector.broadcast %cst_51 : f32 to vector<1x16xf32>
    %128 = arith.divf %126, %127 : vector<1x16xf32>
    %129 = vector.broadcast %128 : vector<1x16xf32> to vector<32x16xf32>
    %130 = arith.subf %120, %129 : vector<32x16xf32>
    %131 = arith.mulf %130, %130 : vector<32x16xf32>
    %cst_52 = arith.constant dense<0.000000e+00> : vector<16xf32>
    %132 = vector.multi_reduction <add>, %131, %cst_52 [0] : vector<32x16xf32> to vector<16xf32>
    %133 = vector.shape_cast %132 : vector<16xf32> to vector<1x16xf32>
    %cst_53 = arith.constant 3.200000e+01 : f32
    %134 = vector.broadcast %cst_53 : f32 to vector<1x16xf32>
    %135 = arith.divf %133, %134 : vector<1x16xf32>
    %136 = vector.broadcast %128 : vector<1x16xf32> to vector<32x16xf32>
    %137 = arith.subf %120, %136 : vector<32x16xf32>
    %cst_54 = arith.constant 9.99999997E-7 : f32
    %138 = vector.broadcast %cst_54 : f32 to vector<1x16xf32>
    %139 = arith.addf %135, %138 : vector<1x16xf32>
    %140 = math.rsqrt %139 : vector<1x16xf32>
    %141 = vector.broadcast %140 : vector<1x16xf32> to vector<32x16xf32>
    %142 = arith.mulf %137, %141 : vector<32x16xf32>
    %143 = vector.broadcast %122 : vector<32x1xf32> to vector<32x16xf32>
    %144 = arith.mulf %142, %143 : vector<32x16xf32>
    %145 = vector.broadcast %124 : vector<32x1xf32> to vector<32x16xf32>
    %146 = arith.addf %144, %145 : vector<32x16xf32>
    %147 = vector.extract_strided_slice %79 {offsets = [96, 0], sizes = [32, 32], strides = [1, 1]} : vector<128x32xbf16> to vector<32x32xbf16>
    %148 = arith.truncf %146 : vector<32x16xf32> to vector<32x16xbf16>
    %cst_55 = arith.constant dense<0.000000e+00> : vector<32x16xf32>
    %149 = tpu.matmul %147, %148, %cst_55 {dimension_numbers = #tpu.dot_dimension_numbers<[1], [0], [0], [1], [0, 0, 1, 1], [], []>} : vector<32x32xbf16>, vector<32x16xbf16>, vector<32x16xf32> -> vector<32x16xf32>
    %150 = vector.extract_strided_slice %81 {offsets = [96, 0], sizes = [32, 1], strides = [1, 1]} : vector<128x1xf32> to vector<32x1xf32>
    %151 = vector.broadcast %150 : vector<32x1xf32> to vector<32x16xf32>
    %152 = arith.addf %149, %151 : vector<32x16xf32>
    %153 = vector.extract_strided_slice %76 {offsets = [0, 0], sizes = [64, 16], strides = [1, 1]} : vector<128x16xf32> to vector<64x16xf32>
    %c1 = arith.constant 1 : index
    %c0_56 = arith.constant 0 : index
    %c0_57 = arith.constant 0 : index
    %154 = vector.load %arg7[%c1, %c0_56, %c0_57] : memref<4x32x32xbf16, #tpu.memory_space<vmem>>, vector<1x32x32xbf16>
    %155 = vector.shape_cast %154 : vector<1x32x32xbf16> to vector<32x32xbf16>
    %c1_58 = arith.constant 1 : index
    %c0_59 = arith.constant 0 : index
    %c0_60 = arith.constant 0 : index
    %156 = vector.load %arg8[%c1_58, %c0_59, %c0_60] : memref<4x32x1xf32, #tpu.memory_space<vmem>>, vector<1x32x1xf32>
    %157 = vector.shape_cast %156 : vector<1x32x1xf32> to vector<32x1xf32>
    %158 = vector.shape_cast %152 : vector<32x16xf32> to vector<4x8x16xf32>
    %159 = tpu.transpose %158, [0, 2, 1] : vector<4x8x16xf32> -> vector<4x16x8xf32>
    %160 = vector.extract_strided_slice %153 {offsets = [0, 0], sizes = [32, 16], strides = [1, 1]} : vector<64x16xf32> to vector<32x16xf32>
    %161 = vector.shape_cast %160 : vector<32x16xf32> to vector<4x8x16xf32>
    %162 = vector.extract_strided_slice %153 {offsets = [32, 0], sizes = [32, 16], strides = [1, 1]} : vector<64x16xf32> to vector<32x16xf32>
    %163 = vector.shape_cast %162 : vector<32x16xf32> to vector<4x8x16xf32>
    %cst_61 = arith.constant dense<0.000000e+00> : vector<4x16x16xf32>
    %164 = tpu.matmul %159, %161, %cst_61 {dimension_numbers = #tpu.dot_dimension_numbers<[2], [1], [1], [2], [0, 0, 0, 1, 1, 2], [0], [0]>} : vector<4x16x8xf32>, vector<4x8x16xf32>, vector<4x16x16xf32> -> vector<4x16x16xf32>
    %165 = vector.shape_cast %70 : vector<16x16xf32> to vector<1x16x16xf32>
    %166 = vector.broadcast %165 : vector<1x16x16xf32> to vector<4x16x16xf32>
    %167 = arith.addf %164, %166 : vector<4x16x16xf32>
    %cst_62 = arith.constant dense<0xFF800000> : vector<4x16xf32>
    %168 = vector.multi_reduction <maximumf>, %167, %cst_62 [2] : vector<4x16x16xf32> to vector<4x16xf32>
    %169 = vector.shape_cast %168 : vector<4x16xf32> to vector<4x16x1xf32>
    %170 = vector.broadcast %169 : vector<4x16x1xf32> to vector<4x16x16xf32>
    %171 = arith.subf %167, %170 : vector<4x16x16xf32>
    %172 = math.exp %171 : vector<4x16x16xf32>
    %cst_63 = arith.constant dense<0.000000e+00> : vector<4x16xf32>
    %173 = vector.multi_reduction <add>, %172, %cst_63 [2] : vector<4x16x16xf32> to vector<4x16xf32>
    %174 = vector.shape_cast %173 : vector<4x16xf32> to vector<4x16x1xf32>
    %175 = tpu.reciprocal %174 {approx = true} : vector<4x16x1xf32> -> vector<4x16x1xf32>
    %176 = vector.broadcast %175 : vector<4x16x1xf32> to vector<4x16x16xf32>
    %177 = arith.mulf %172, %176 : vector<4x16x16xf32>
    %cst_64 = arith.constant dense<0.000000e+00> : vector<4x8x16xf32>
    %178 = tpu.matmul %163, %177, %cst_64 {dimension_numbers = #tpu.dot_dimension_numbers<[2], [2], [1], [1], [0, 0, 0, 1, 1, 1], [0], [0]>} : vector<4x8x16xf32>, vector<4x16x16xf32>, vector<4x8x16xf32> -> vector<4x8x16xf32>
    %179 = vector.shape_cast %178 : vector<4x8x16xf32> to vector<32x16xf32>
    %180 = arith.truncf %179 : vector<32x16xf32> to vector<32x16xbf16>
    %cst_65 = arith.constant dense<0.000000e+00> : vector<32x16xf32>
    %181 = tpu.matmul %155, %180, %cst_65 {dimension_numbers = #tpu.dot_dimension_numbers<[1], [0], [0], [1], [0, 0, 1, 1], [], []>} : vector<32x32xbf16>, vector<32x16xbf16>, vector<32x16xf32> -> vector<32x16xf32>
    %182 = vector.broadcast %157 : vector<32x1xf32> to vector<32x16xf32>
    %183 = arith.addf %181, %182 : vector<32x16xf32>
    %184 = arith.addf %146, %183 : vector<32x16xf32>
    %185 = vector.extract_strided_slice %77 {offsets = [0, 1, 0, 0], sizes = [1, 1, 32, 1], strides = [1, 1, 1, 1]} : vector<2x6x32x1xf32> to vector<1x1x32x1xf32>
    %186 = vector.shape_cast %185 : vector<1x1x32x1xf32> to vector<32x1xf32>
    %187 = vector.extract_strided_slice %77 {offsets = [1, 1, 0, 0], sizes = [1, 1, 32, 1], strides = [1, 1, 1, 1]} : vector<2x6x32x1xf32> to vector<1x1x32x1xf32>
    %188 = vector.shape_cast %187 : vector<1x1x32x1xf32> to vector<32x1xf32>
    %cst_66 = arith.constant dense<0.000000e+00> : vector<16xf32>
    %189 = vector.multi_reduction <add>, %184, %cst_66 [0] : vector<32x16xf32> to vector<16xf32>
    %190 = vector.shape_cast %189 : vector<16xf32> to vector<1x16xf32>
    %cst_67 = arith.constant 3.200000e+01 : f32
    %191 = vector.broadcast %cst_67 : f32 to vector<1x16xf32>
    %192 = arith.divf %190, %191 : vector<1x16xf32>
    %193 = vector.broadcast %192 : vector<1x16xf32> to vector<32x16xf32>
    %194 = arith.subf %184, %193 : vector<32x16xf32>
    %195 = arith.mulf %194, %194 : vector<32x16xf32>
    %cst_68 = arith.constant dense<0.000000e+00> : vector<16xf32>
    %196 = vector.multi_reduction <add>, %195, %cst_68 [0] : vector<32x16xf32> to vector<16xf32>
    %197 = vector.shape_cast %196 : vector<16xf32> to vector<1x16xf32>
    %cst_69 = arith.constant 3.200000e+01 : f32
    %198 = vector.broadcast %cst_69 : f32 to vector<1x16xf32>
    %199 = arith.divf %197, %198 : vector<1x16xf32>
    %200 = vector.broadcast %192 : vector<1x16xf32> to vector<32x16xf32>
    %201 = arith.subf %184, %200 : vector<32x16xf32>
    %cst_70 = arith.constant 9.99999997E-7 : f32
    %202 = vector.broadcast %cst_70 : f32 to vector<1x16xf32>
    %203 = arith.addf %199, %202 : vector<1x16xf32>
    %204 = math.rsqrt %203 : vector<1x16xf32>
    %205 = vector.broadcast %204 : vector<1x16xf32> to vector<32x16xf32>
    %206 = arith.mulf %201, %205 : vector<32x16xf32>
    %207 = vector.broadcast %186 : vector<32x1xf32> to vector<32x16xf32>
    %208 = arith.mulf %206, %207 : vector<32x16xf32>
    %209 = vector.broadcast %188 : vector<32x1xf32> to vector<32x16xf32>
    %210 = arith.addf %208, %209 : vector<32x16xf32>
    %c0_71 = arith.constant 0 : index
    %c0_72 = arith.constant 0 : index
    %c0_73 = arith.constant 0 : index
    %211 = vector.load %arg9[%c0_71, %c0_72, %c0_73] : memref<2x64x32xbf16, #tpu.memory_space<vmem>>, vector<1x64x32xbf16>
    %212 = vector.shape_cast %211 : vector<1x64x32xbf16> to vector<64x32xbf16>
    %213 = arith.truncf %210 : vector<32x16xf32> to vector<32x16xbf16>
    %cst_74 = arith.constant dense<0.000000e+00> : vector<64x16xf32>
    %214 = tpu.matmul %212, %213, %cst_74 {dimension_numbers = #tpu.dot_dimension_numbers<[1], [0], [0], [1], [0, 0, 1, 1], [], []>} : vector<64x32xbf16>, vector<32x16xbf16>, vector<64x16xf32> -> vector<64x16xf32>
    %c0_75 = arith.constant 0 : index
    %c0_76 = arith.constant 0 : index
    %c0_77 = arith.constant 0 : index
    %215 = vector.load %arg10[%c0_75, %c0_76, %c0_77] : memref<2x64x1xf32, #tpu.memory_space<vmem>>, vector<1x64x1xf32>
    %216 = vector.shape_cast %215 : vector<1x64x1xf32> to vector<64x1xf32>
    %217 = vector.broadcast %216 : vector<64x1xf32> to vector<64x16xf32>
    %218 = arith.addf %214, %217 : vector<64x16xf32>
    %cst_78 = arith.constant 0.000000e+00 : f32
    %219 = vector.broadcast %cst_78 : f32 to vector<64x16xf32>
    %220 = arith.maximumf %218, %219 : vector<64x16xf32>
    %c0_79 = arith.constant 0 : index
    %c0_80 = arith.constant 0 : index
    %c0_81 = arith.constant 0 : index
    %221 = vector.load %arg11[%c0_79, %c0_80, %c0_81] : memref<2x32x64xbf16, #tpu.memory_space<vmem>>, vector<1x32x64xbf16>
    %222 = vector.shape_cast %221 : vector<1x32x64xbf16> to vector<32x64xbf16>
    %223 = arith.truncf %220 : vector<64x16xf32> to vector<64x16xbf16>
    %cst_82 = arith.constant dense<0.000000e+00> : vector<32x16xf32>
    %224 = tpu.matmul %222, %223, %cst_82 {dimension_numbers = #tpu.dot_dimension_numbers<[1], [0], [0], [1], [0, 0, 1, 1], [], []>} : vector<32x64xbf16>, vector<64x16xbf16>, vector<32x16xf32> -> vector<32x16xf32>
    %c0_83 = arith.constant 0 : index
    %c0_84 = arith.constant 0 : index
    %c0_85 = arith.constant 0 : index
    %225 = vector.load %arg12[%c0_83, %c0_84, %c0_85] : memref<2x32x1xf32, #tpu.memory_space<vmem>>, vector<1x32x1xf32>
    %226 = vector.shape_cast %225 : vector<1x32x1xf32> to vector<32x1xf32>
    %227 = vector.broadcast %226 : vector<32x1xf32> to vector<32x16xf32>
    %228 = arith.addf %224, %227 : vector<32x16xf32>
    %229 = arith.addf %210, %228 : vector<32x16xf32>
    %230 = vector.extract_strided_slice %77 {offsets = [0, 2, 0, 0], sizes = [1, 1, 32, 1], strides = [1, 1, 1, 1]} : vector<2x6x32x1xf32> to vector<1x1x32x1xf32>
    %231 = vector.shape_cast %230 : vector<1x1x32x1xf32> to vector<32x1xf32>
    %232 = vector.extract_strided_slice %77 {offsets = [1, 2, 0, 0], sizes = [1, 1, 32, 1], strides = [1, 1, 1, 1]} : vector<2x6x32x1xf32> to vector<1x1x32x1xf32>
    %233 = vector.shape_cast %232 : vector<1x1x32x1xf32> to vector<32x1xf32>
    %cst_86 = arith.constant dense<0.000000e+00> : vector<16xf32>
    %234 = vector.multi_reduction <add>, %229, %cst_86 [0] : vector<32x16xf32> to vector<16xf32>
    %235 = vector.shape_cast %234 : vector<16xf32> to vector<1x16xf32>
    %cst_87 = arith.constant 3.200000e+01 : f32
    %236 = vector.broadcast %cst_87 : f32 to vector<1x16xf32>
    %237 = arith.divf %235, %236 : vector<1x16xf32>
    %238 = vector.broadcast %237 : vector<1x16xf32> to vector<32x16xf32>
    %239 = arith.subf %229, %238 : vector<32x16xf32>
    %240 = arith.mulf %239, %239 : vector<32x16xf32>
    %cst_88 = arith.constant dense<0.000000e+00> : vector<16xf32>
    %241 = vector.multi_reduction <add>, %240, %cst_88 [0] : vector<32x16xf32> to vector<16xf32>
    %242 = vector.shape_cast %241 : vector<16xf32> to vector<1x16xf32>
    %cst_89 = arith.constant 3.200000e+01 : f32
    %243 = vector.broadcast %cst_89 : f32 to vector<1x16xf32>
    %244 = arith.divf %242, %243 : vector<1x16xf32>
    %245 = vector.broadcast %237 : vector<1x16xf32> to vector<32x16xf32>
    %246 = arith.subf %229, %245 : vector<32x16xf32>
    %cst_90 = arith.constant 9.99999997E-7 : f32
    %247 = vector.broadcast %cst_90 : f32 to vector<1x16xf32>
    %248 = arith.addf %244, %247 : vector<1x16xf32>
    %249 = math.rsqrt %248 : vector<1x16xf32>
    %250 = vector.broadcast %249 : vector<1x16xf32> to vector<32x16xf32>
    %251 = arith.mulf %246, %250 : vector<32x16xf32>
    %252 = vector.broadcast %231 : vector<32x1xf32> to vector<32x16xf32>
    %253 = arith.mulf %251, %252 : vector<32x16xf32>
    %254 = vector.broadcast %233 : vector<32x1xf32> to vector<32x16xf32>
    %255 = arith.addf %253, %254 : vector<32x16xf32>
    %c1_91 = arith.constant 1 : index
    %c0_92 = arith.constant 0 : index
    %c0_93 = arith.constant 0 : index
    %256 = vector.load %arg3[%c1_91, %c0_92, %c0_93] : memref<2x128x32xbf16, #tpu.memory_space<vmem>>, vector<1x128x32xbf16>
    %257 = vector.shape_cast %256 : vector<1x128x32xbf16> to vector<128x32xbf16>
    %c1_94 = arith.constant 1 : index
    %c0_95 = arith.constant 0 : index
    %c0_96 = arith.constant 0 : index
    %258 = vector.load %arg4[%c1_94, %c0_95, %c0_96] : memref<2x128x1xf32, #tpu.memory_space<vmem>>, vector<1x128x1xf32>
    %259 = vector.shape_cast %258 : vector<1x128x1xf32> to vector<128x1xf32>
    %260 = vector.extract_strided_slice %257 {offsets = [0, 0], sizes = [96, 32], strides = [1, 1]} : vector<128x32xbf16> to vector<96x32xbf16>
    %261 = arith.truncf %255 : vector<32x16xf32> to vector<32x16xbf16>
    %cst_97 = arith.constant dense<0.000000e+00> : vector<96x16xf32>
    %262 = tpu.matmul %260, %261, %cst_97 {dimension_numbers = #tpu.dot_dimension_numbers<[1], [0], [0], [1], [0, 0, 1, 1], [], []>} : vector<96x32xbf16>, vector<32x16xbf16>, vector<96x16xf32> -> vector<96x16xf32>
    %263 = vector.extract_strided_slice %259 {offsets = [0, 0], sizes = [96, 1], strides = [1, 1]} : vector<128x1xf32> to vector<96x1xf32>
    %264 = vector.broadcast %263 : vector<96x1xf32> to vector<96x16xf32>
    %265 = arith.addf %262, %264 : vector<96x16xf32>
    %266 = vector.extract_strided_slice %265 {offsets = [0, 0], sizes = [32, 16], strides = [1, 1]} : vector<96x16xf32> to vector<32x16xf32>
    %267 = vector.extract_strided_slice %265 {offsets = [32, 0], sizes = [64, 16], strides = [1, 1]} : vector<96x16xf32> to vector<64x16xf32>
    %c2 = arith.constant 2 : index
    %c0_98 = arith.constant 0 : index
    %c0_99 = arith.constant 0 : index
    %268 = vector.load %arg7[%c2, %c0_98, %c0_99] : memref<4x32x32xbf16, #tpu.memory_space<vmem>>, vector<1x32x32xbf16>
    %269 = vector.shape_cast %268 : vector<1x32x32xbf16> to vector<32x32xbf16>
    %c2_100 = arith.constant 2 : index
    %c0_101 = arith.constant 0 : index
    %c0_102 = arith.constant 0 : index
    %270 = vector.load %arg8[%c2_100, %c0_101, %c0_102] : memref<4x32x1xf32, #tpu.memory_space<vmem>>, vector<1x32x1xf32>
    %271 = vector.shape_cast %270 : vector<1x32x1xf32> to vector<32x1xf32>
    %272 = vector.shape_cast %266 : vector<32x16xf32> to vector<4x8x16xf32>
    %273 = tpu.transpose %272, [0, 2, 1] : vector<4x8x16xf32> -> vector<4x16x8xf32>
    %274 = vector.extract_strided_slice %267 {offsets = [0, 0], sizes = [32, 16], strides = [1, 1]} : vector<64x16xf32> to vector<32x16xf32>
    %275 = vector.shape_cast %274 : vector<32x16xf32> to vector<4x8x16xf32>
    %276 = vector.extract_strided_slice %267 {offsets = [32, 0], sizes = [32, 16], strides = [1, 1]} : vector<64x16xf32> to vector<32x16xf32>
    %277 = vector.shape_cast %276 : vector<32x16xf32> to vector<4x8x16xf32>
    %cst_103 = arith.constant dense<0.000000e+00> : vector<4x16x16xf32>
    %278 = tpu.matmul %273, %275, %cst_103 {dimension_numbers = #tpu.dot_dimension_numbers<[2], [1], [1], [2], [0, 0, 0, 1, 1, 2], [0], [0]>} : vector<4x16x8xf32>, vector<4x8x16xf32>, vector<4x16x16xf32> -> vector<4x16x16xf32>
    %279 = vector.shape_cast %63 : vector<16x16xf32> to vector<1x16x16xf32>
    %280 = vector.broadcast %279 : vector<1x16x16xf32> to vector<4x16x16xf32>
    %281 = arith.addf %278, %280 : vector<4x16x16xf32>
    %cst_104 = arith.constant dense<0xFF800000> : vector<4x16xf32>
    %282 = vector.multi_reduction <maximumf>, %281, %cst_104 [2] : vector<4x16x16xf32> to vector<4x16xf32>
    %283 = vector.shape_cast %282 : vector<4x16xf32> to vector<4x16x1xf32>
    %284 = vector.broadcast %283 : vector<4x16x1xf32> to vector<4x16x16xf32>
    %285 = arith.subf %281, %284 : vector<4x16x16xf32>
    %286 = math.exp %285 : vector<4x16x16xf32>
    %cst_105 = arith.constant dense<0.000000e+00> : vector<4x16xf32>
    %287 = vector.multi_reduction <add>, %286, %cst_105 [2] : vector<4x16x16xf32> to vector<4x16xf32>
    %288 = vector.shape_cast %287 : vector<4x16xf32> to vector<4x16x1xf32>
    %289 = tpu.reciprocal %288 {approx = true} : vector<4x16x1xf32> -> vector<4x16x1xf32>
    %290 = vector.broadcast %289 : vector<4x16x1xf32> to vector<4x16x16xf32>
    %291 = arith.mulf %286, %290 : vector<4x16x16xf32>
    %cst_106 = arith.constant dense<0.000000e+00> : vector<4x8x16xf32>
    %292 = tpu.matmul %277, %291, %cst_106 {dimension_numbers = #tpu.dot_dimension_numbers<[2], [2], [1], [1], [0, 0, 0, 1, 1, 1], [0], [0]>} : vector<4x8x16xf32>, vector<4x16x16xf32>, vector<4x8x16xf32> -> vector<4x8x16xf32>
    %293 = vector.shape_cast %292 : vector<4x8x16xf32> to vector<32x16xf32>
    %294 = arith.truncf %293 : vector<32x16xf32> to vector<32x16xbf16>
    %cst_107 = arith.constant dense<0.000000e+00> : vector<32x16xf32>
    %295 = tpu.matmul %269, %294, %cst_107 {dimension_numbers = #tpu.dot_dimension_numbers<[1], [0], [0], [1], [0, 0, 1, 1], [], []>} : vector<32x32xbf16>, vector<32x16xbf16>, vector<32x16xf32> -> vector<32x16xf32>
    %296 = vector.broadcast %271 : vector<32x1xf32> to vector<32x16xf32>
    %297 = arith.addf %295, %296 : vector<32x16xf32>
    %298 = arith.addf %255, %297 : vector<32x16xf32>
    %299 = vector.extract_strided_slice %77 {offsets = [0, 3, 0, 0], sizes = [1, 1, 32, 1], strides = [1, 1, 1, 1]} : vector<2x6x32x1xf32> to vector<1x1x32x1xf32>
    %300 = vector.shape_cast %299 : vector<1x1x32x1xf32> to vector<32x1xf32>
    %301 = vector.extract_strided_slice %77 {offsets = [1, 3, 0, 0], sizes = [1, 1, 32, 1], strides = [1, 1, 1, 1]} : vector<2x6x32x1xf32> to vector<1x1x32x1xf32>
    %302 = vector.shape_cast %301 : vector<1x1x32x1xf32> to vector<32x1xf32>
    %cst_108 = arith.constant dense<0.000000e+00> : vector<16xf32>
    %303 = vector.multi_reduction <add>, %298, %cst_108 [0] : vector<32x16xf32> to vector<16xf32>
    %304 = vector.shape_cast %303 : vector<16xf32> to vector<1x16xf32>
    %cst_109 = arith.constant 3.200000e+01 : f32
    %305 = vector.broadcast %cst_109 : f32 to vector<1x16xf32>
    %306 = arith.divf %304, %305 : vector<1x16xf32>
    %307 = vector.broadcast %306 : vector<1x16xf32> to vector<32x16xf32>
    %308 = arith.subf %298, %307 : vector<32x16xf32>
    %309 = arith.mulf %308, %308 : vector<32x16xf32>
    %cst_110 = arith.constant dense<0.000000e+00> : vector<16xf32>
    %310 = vector.multi_reduction <add>, %309, %cst_110 [0] : vector<32x16xf32> to vector<16xf32>
    %311 = vector.shape_cast %310 : vector<16xf32> to vector<1x16xf32>
    %cst_111 = arith.constant 3.200000e+01 : f32
    %312 = vector.broadcast %cst_111 : f32 to vector<1x16xf32>
    %313 = arith.divf %311, %312 : vector<1x16xf32>
    %314 = vector.broadcast %306 : vector<1x16xf32> to vector<32x16xf32>
    %315 = arith.subf %298, %314 : vector<32x16xf32>
    %cst_112 = arith.constant 9.99999997E-7 : f32
    %316 = vector.broadcast %cst_112 : f32 to vector<1x16xf32>
    %317 = arith.addf %313, %316 : vector<1x16xf32>
    %318 = math.rsqrt %317 : vector<1x16xf32>
    %319 = vector.broadcast %318 : vector<1x16xf32> to vector<32x16xf32>
    %320 = arith.mulf %315, %319 : vector<32x16xf32>
    %321 = vector.broadcast %300 : vector<32x1xf32> to vector<32x16xf32>
    %322 = arith.mulf %320, %321 : vector<32x16xf32>
    %323 = vector.broadcast %302 : vector<32x1xf32> to vector<32x16xf32>
    %324 = arith.addf %322, %323 : vector<32x16xf32>
    %325 = vector.extract_strided_slice %257 {offsets = [96, 0], sizes = [32, 32], strides = [1, 1]} : vector<128x32xbf16> to vector<32x32xbf16>
    %326 = arith.truncf %324 : vector<32x16xf32> to vector<32x16xbf16>
    %cst_113 = arith.constant dense<0.000000e+00> : vector<32x16xf32>
    %327 = tpu.matmul %325, %326, %cst_113 {dimension_numbers = #tpu.dot_dimension_numbers<[1], [0], [0], [1], [0, 0, 1, 1], [], []>} : vector<32x32xbf16>, vector<32x16xbf16>, vector<32x16xf32> -> vector<32x16xf32>
    %328 = vector.extract_strided_slice %259 {offsets = [96, 0], sizes = [32, 1], strides = [1, 1]} : vector<128x1xf32> to vector<32x1xf32>
    %329 = vector.broadcast %328 : vector<32x1xf32> to vector<32x16xf32>
    %330 = arith.addf %327, %329 : vector<32x16xf32>
    %331 = vector.extract_strided_slice %76 {offsets = [64, 0], sizes = [64, 16], strides = [1, 1]} : vector<128x16xf32> to vector<64x16xf32>
    %c3 = arith.constant 3 : index
    %c0_114 = arith.constant 0 : index
    %c0_115 = arith.constant 0 : index
    %332 = vector.load %arg7[%c3, %c0_114, %c0_115] : memref<4x32x32xbf16, #tpu.memory_space<vmem>>, vector<1x32x32xbf16>
    %333 = vector.shape_cast %332 : vector<1x32x32xbf16> to vector<32x32xbf16>
    %c3_116 = arith.constant 3 : index
    %c0_117 = arith.constant 0 : index
    %c0_118 = arith.constant 0 : index
    %334 = vector.load %arg8[%c3_116, %c0_117, %c0_118] : memref<4x32x1xf32, #tpu.memory_space<vmem>>, vector<1x32x1xf32>
    %335 = vector.shape_cast %334 : vector<1x32x1xf32> to vector<32x1xf32>
    %336 = vector.shape_cast %330 : vector<32x16xf32> to vector<4x8x16xf32>
    %337 = tpu.transpose %336, [0, 2, 1] : vector<4x8x16xf32> -> vector<4x16x8xf32>
    %338 = vector.extract_strided_slice %331 {offsets = [0, 0], sizes = [32, 16], strides = [1, 1]} : vector<64x16xf32> to vector<32x16xf32>
    %339 = vector.shape_cast %338 : vector<32x16xf32> to vector<4x8x16xf32>
    %340 = vector.extract_strided_slice %331 {offsets = [32, 0], sizes = [32, 16], strides = [1, 1]} : vector<64x16xf32> to vector<32x16xf32>
    %341 = vector.shape_cast %340 : vector<32x16xf32> to vector<4x8x16xf32>
    %cst_119 = arith.constant dense<0.000000e+00> : vector<4x16x16xf32>
    %342 = tpu.matmul %337, %339, %cst_119 {dimension_numbers = #tpu.dot_dimension_numbers<[2], [1], [1], [2], [0, 0, 0, 1, 1, 2], [0], [0]>} : vector<4x16x8xf32>, vector<4x8x16xf32>, vector<4x16x16xf32> -> vector<4x16x16xf32>
    %343 = vector.shape_cast %70 : vector<16x16xf32> to vector<1x16x16xf32>
    %344 = vector.broadcast %343 : vector<1x16x16xf32> to vector<4x16x16xf32>
    %345 = arith.addf %342, %344 : vector<4x16x16xf32>
    %cst_120 = arith.constant dense<0xFF800000> : vector<4x16xf32>
    %346 = vector.multi_reduction <maximumf>, %345, %cst_120 [2] : vector<4x16x16xf32> to vector<4x16xf32>
    %347 = vector.shape_cast %346 : vector<4x16xf32> to vector<4x16x1xf32>
    %348 = vector.broadcast %347 : vector<4x16x1xf32> to vector<4x16x16xf32>
    %349 = arith.subf %345, %348 : vector<4x16x16xf32>
    %350 = math.exp %349 : vector<4x16x16xf32>
    %cst_121 = arith.constant dense<0.000000e+00> : vector<4x16xf32>
    %351 = vector.multi_reduction <add>, %350, %cst_121 [2] : vector<4x16x16xf32> to vector<4x16xf32>
    %352 = vector.shape_cast %351 : vector<4x16xf32> to vector<4x16x1xf32>
    %353 = tpu.reciprocal %352 {approx = true} : vector<4x16x1xf32> -> vector<4x16x1xf32>
    %354 = vector.broadcast %353 : vector<4x16x1xf32> to vector<4x16x16xf32>
    %355 = arith.mulf %350, %354 : vector<4x16x16xf32>
    %cst_122 = arith.constant dense<0.000000e+00> : vector<4x8x16xf32>
    %356 = tpu.matmul %341, %355, %cst_122 {dimension_numbers = #tpu.dot_dimension_numbers<[2], [2], [1], [1], [0, 0, 0, 1, 1, 1], [0], [0]>} : vector<4x8x16xf32>, vector<4x16x16xf32>, vector<4x8x16xf32> -> vector<4x8x16xf32>
    %357 = vector.shape_cast %356 : vector<4x8x16xf32> to vector<32x16xf32>
    %358 = arith.truncf %357 : vector<32x16xf32> to vector<32x16xbf16>
    %cst_123 = arith.constant dense<0.000000e+00> : vector<32x16xf32>
    %359 = tpu.matmul %333, %358, %cst_123 {dimension_numbers = #tpu.dot_dimension_numbers<[1], [0], [0], [1], [0, 0, 1, 1], [], []>} : vector<32x32xbf16>, vector<32x16xbf16>, vector<32x16xf32> -> vector<32x16xf32>
    %360 = vector.broadcast %335 : vector<32x1xf32> to vector<32x16xf32>
    %361 = arith.addf %359, %360 : vector<32x16xf32>
    %362 = arith.addf %324, %361 : vector<32x16xf32>
    %363 = vector.extract_strided_slice %77 {offsets = [0, 4, 0, 0], sizes = [1, 1, 32, 1], strides = [1, 1, 1, 1]} : vector<2x6x32x1xf32> to vector<1x1x32x1xf32>
    %364 = vector.shape_cast %363 : vector<1x1x32x1xf32> to vector<32x1xf32>
    %365 = vector.extract_strided_slice %77 {offsets = [1, 4, 0, 0], sizes = [1, 1, 32, 1], strides = [1, 1, 1, 1]} : vector<2x6x32x1xf32> to vector<1x1x32x1xf32>
    %366 = vector.shape_cast %365 : vector<1x1x32x1xf32> to vector<32x1xf32>
    %cst_124 = arith.constant dense<0.000000e+00> : vector<16xf32>
    %367 = vector.multi_reduction <add>, %362, %cst_124 [0] : vector<32x16xf32> to vector<16xf32>
    %368 = vector.shape_cast %367 : vector<16xf32> to vector<1x16xf32>
    %cst_125 = arith.constant 3.200000e+01 : f32
    %369 = vector.broadcast %cst_125 : f32 to vector<1x16xf32>
    %370 = arith.divf %368, %369 : vector<1x16xf32>
    %371 = vector.broadcast %370 : vector<1x16xf32> to vector<32x16xf32>
    %372 = arith.subf %362, %371 : vector<32x16xf32>
    %373 = arith.mulf %372, %372 : vector<32x16xf32>
    %cst_126 = arith.constant dense<0.000000e+00> : vector<16xf32>
    %374 = vector.multi_reduction <add>, %373, %cst_126 [0] : vector<32x16xf32> to vector<16xf32>
    %375 = vector.shape_cast %374 : vector<16xf32> to vector<1x16xf32>
    %cst_127 = arith.constant 3.200000e+01 : f32
    %376 = vector.broadcast %cst_127 : f32 to vector<1x16xf32>
    %377 = arith.divf %375, %376 : vector<1x16xf32>
    %378 = vector.broadcast %370 : vector<1x16xf32> to vector<32x16xf32>
    %379 = arith.subf %362, %378 : vector<32x16xf32>
    %cst_128 = arith.constant 9.99999997E-7 : f32
    %380 = vector.broadcast %cst_128 : f32 to vector<1x16xf32>
    %381 = arith.addf %377, %380 : vector<1x16xf32>
    %382 = math.rsqrt %381 : vector<1x16xf32>
    %383 = vector.broadcast %382 : vector<1x16xf32> to vector<32x16xf32>
    %384 = arith.mulf %379, %383 : vector<32x16xf32>
    %385 = vector.broadcast %364 : vector<32x1xf32> to vector<32x16xf32>
    %386 = arith.mulf %384, %385 : vector<32x16xf32>
    %387 = vector.broadcast %366 : vector<32x1xf32> to vector<32x16xf32>
    %388 = arith.addf %386, %387 : vector<32x16xf32>
    %c1_129 = arith.constant 1 : index
    %c0_130 = arith.constant 0 : index
    %c0_131 = arith.constant 0 : index
    %389 = vector.load %arg9[%c1_129, %c0_130, %c0_131] : memref<2x64x32xbf16, #tpu.memory_space<vmem>>, vector<1x64x32xbf16>
    %390 = vector.shape_cast %389 : vector<1x64x32xbf16> to vector<64x32xbf16>
    %391 = arith.truncf %388 : vector<32x16xf32> to vector<32x16xbf16>
    %cst_132 = arith.constant dense<0.000000e+00> : vector<64x16xf32>
    %392 = tpu.matmul %390, %391, %cst_132 {dimension_numbers = #tpu.dot_dimension_numbers<[1], [0], [0], [1], [0, 0, 1, 1], [], []>} : vector<64x32xbf16>, vector<32x16xbf16>, vector<64x16xf32> -> vector<64x16xf32>
    %c1_133 = arith.constant 1 : index
    %c0_134 = arith.constant 0 : index
    %c0_135 = arith.constant 0 : index
    %393 = vector.load %arg10[%c1_133, %c0_134, %c0_135] : memref<2x64x1xf32, #tpu.memory_space<vmem>>, vector<1x64x1xf32>
    %394 = vector.shape_cast %393 : vector<1x64x1xf32> to vector<64x1xf32>
    %395 = vector.broadcast %394 : vector<64x1xf32> to vector<64x16xf32>
    %396 = arith.addf %392, %395 : vector<64x16xf32>
    %cst_136 = arith.constant 0.000000e+00 : f32
    %397 = vector.broadcast %cst_136 : f32 to vector<64x16xf32>
    %398 = arith.maximumf %396, %397 : vector<64x16xf32>
    %c1_137 = arith.constant 1 : index
    %c0_138 = arith.constant 0 : index
    %c0_139 = arith.constant 0 : index
    %399 = vector.load %arg11[%c1_137, %c0_138, %c0_139] : memref<2x32x64xbf16, #tpu.memory_space<vmem>>, vector<1x32x64xbf16>
    %400 = vector.shape_cast %399 : vector<1x32x64xbf16> to vector<32x64xbf16>
    %401 = arith.truncf %398 : vector<64x16xf32> to vector<64x16xbf16>
    %cst_140 = arith.constant dense<0.000000e+00> : vector<32x16xf32>
    %402 = tpu.matmul %400, %401, %cst_140 {dimension_numbers = #tpu.dot_dimension_numbers<[1], [0], [0], [1], [0, 0, 1, 1], [], []>} : vector<32x64xbf16>, vector<64x16xbf16>, vector<32x16xf32> -> vector<32x16xf32>
    %c1_141 = arith.constant 1 : index
    %c0_142 = arith.constant 0 : index
    %c0_143 = arith.constant 0 : index
    %403 = vector.load %arg12[%c1_141, %c0_142, %c0_143] : memref<2x32x1xf32, #tpu.memory_space<vmem>>, vector<1x32x1xf32>
    %404 = vector.shape_cast %403 : vector<1x32x1xf32> to vector<32x1xf32>
    %405 = vector.broadcast %404 : vector<32x1xf32> to vector<32x16xf32>
    %406 = arith.addf %402, %405 : vector<32x16xf32>
    %407 = arith.addf %388, %406 : vector<32x16xf32>
    %408 = vector.extract_strided_slice %77 {offsets = [0, 5, 0, 0], sizes = [1, 1, 32, 1], strides = [1, 1, 1, 1]} : vector<2x6x32x1xf32> to vector<1x1x32x1xf32>
    %409 = vector.shape_cast %408 : vector<1x1x32x1xf32> to vector<32x1xf32>
    %410 = vector.extract_strided_slice %77 {offsets = [1, 5, 0, 0], sizes = [1, 1, 32, 1], strides = [1, 1, 1, 1]} : vector<2x6x32x1xf32> to vector<1x1x32x1xf32>
    %411 = vector.shape_cast %410 : vector<1x1x32x1xf32> to vector<32x1xf32>
    %cst_144 = arith.constant dense<0.000000e+00> : vector<16xf32>
    %412 = vector.multi_reduction <add>, %407, %cst_144 [0] : vector<32x16xf32> to vector<16xf32>
    %413 = vector.shape_cast %412 : vector<16xf32> to vector<1x16xf32>
    %cst_145 = arith.constant 3.200000e+01 : f32
    %414 = vector.broadcast %cst_145 : f32 to vector<1x16xf32>
    %415 = arith.divf %413, %414 : vector<1x16xf32>
    %416 = vector.broadcast %415 : vector<1x16xf32> to vector<32x16xf32>
    %417 = arith.subf %407, %416 : vector<32x16xf32>
    %418 = arith.mulf %417, %417 : vector<32x16xf32>
    %cst_146 = arith.constant dense<0.000000e+00> : vector<16xf32>
    %419 = vector.multi_reduction <add>, %418, %cst_146 [0] : vector<32x16xf32> to vector<16xf32>
    %420 = vector.shape_cast %419 : vector<16xf32> to vector<1x16xf32>
    %cst_147 = arith.constant 3.200000e+01 : f32
    %421 = vector.broadcast %cst_147 : f32 to vector<1x16xf32>
    %422 = arith.divf %420, %421 : vector<1x16xf32>
    %423 = vector.broadcast %415 : vector<1x16xf32> to vector<32x16xf32>
    %424 = arith.subf %407, %423 : vector<32x16xf32>
    %cst_148 = arith.constant 9.99999997E-7 : f32
    %425 = vector.broadcast %cst_148 : f32 to vector<1x16xf32>
    %426 = arith.addf %422, %425 : vector<1x16xf32>
    %427 = math.rsqrt %426 : vector<1x16xf32>
    %428 = vector.broadcast %427 : vector<1x16xf32> to vector<32x16xf32>
    %429 = arith.mulf %424, %428 : vector<32x16xf32>
    %430 = vector.broadcast %409 : vector<32x1xf32> to vector<32x16xf32>
    %431 = arith.mulf %429, %430 : vector<32x16xf32>
    %432 = vector.broadcast %411 : vector<32x1xf32> to vector<32x16xf32>
    %433 = arith.addf %431, %432 : vector<32x16xf32>
    %c0_149 = arith.constant 0 : index
    %c0_150 = arith.constant 0 : index
    %434 = vector.load %arg14[%c0_149, %c0_150] : memref<32x16xf32, #tpu.memory_space<vmem>>, vector<32x16xf32>
    tpu.vector_store %arg14[%c0_149, %c0_150], %433 {strides = array<i32>} : memref<32x16xf32, #tpu.memory_space<vmem>>, vector<32x16xf32>,
    return
  }
}

</mosaic_0001>

<bundles_post_ra>
// kernel: decoder_forward.1
= control target key start
LH: loop header
LB: loop body
LE: loop exit
PB: predicated region body
PF: predicated region fallthrough
CT: control target
= control target key end

     0   :  { %v6916_v3 = vmov 0   ;;  %v57_v4 = vlaneseq  ;;  %vm266_vm0 = vcmask 261120   ;;  %v6917_v25 = vmov -1e+09   ;;  %s8279_s0 = inlined_call_operand.vmem [shape: f32[32,16], index: 0, kind: input, shape index: {}]   ;;  %s8280_s3 = inlined_call_operand.vmem [shape: bf16[2,128,32], index: 3, kind: input, shape index: {}]   ;;  %s8281_s2 = inlined_call_operand.vmem [shape: f32[2,16], index: 2, kind: input, shape index: {}]   ;;  %s8282_s4 = inlined_call_operand.vmem [shape: f32[2,128,1], index: 4, kind: input, shape index: {}]   ;;  %s8283_s1 = inlined_call_operand.vmem [shape: f32[32,16], index: 1, kind: input, shape index: {}]   ;;  %s8284_s5 = inlined_call_operand.vmem [shape: bf16[128,32], index: 5, kind: input, shape index: {}]   ;;  %s8285_s8 = inlined_call_operand.vmem [shape: f32[4,32,1], index: 8, kind: input, shape index: {}]   ;;  %s8286_s13 = inlined_call_operand.vmem [shape: f32[2,6,32,1], index: 13, kind: input, shape index: {}]   ;;  %s8287_s6 = inlined_call_operand.vmem [shape: f32[128,1], index: 6, kind: input, shape index: {}]   ;;  %s8288_s7 = inlined_call_operand.vmem [shape: bf16[4,32,32], index: 7, kind: input, shape index: {}]   ;;  %s8289_s10 = inlined_call_operand.vmem [shape: f32[2,64,1], index: 10, kind: input, shape index: {}]   ;;  %s8290_s12 = inlined_call_operand.vmem [shape: f32[2,32,1], index: 12, kind: input, shape index: {}]   ;;  %s8291_s9 = inlined_call_operand.vmem [shape: bf16[2,64,32], index: 9, kind: input, shape index: {}]   ;;  %s8292_s11 = inlined_call_operand.vmem [shape: bf16[2,32,64], index: 11, kind: input, shape index: {}]   ;;  %s8293_s14 = inlined_call_operand.vmem [shape: f32[32,16], index: 14, kind: output, shape index: {}]  }
   0x1   :  { %v6998_v0 = vld [vmem:[%s8279_s0 + $0x10] sm:$0xff]  ;;  %v7003_v1 = vld [vmem:[%s8279_s0 + $0x18] sm:$0xff]  ;;  %v7008_v2 = vld [vmem:[%s8279_s0] sm:$0xff]  ;;  %6730 = vset.pattern.permute.xlu0 %v6916_v3  ;;  %6731 = vset.pattern.permute.xlu1 %v6916_v3  ;;  %vm795_vm9 = vcmask 64512  }
   0x2   :  { %v469_v5 = vpack.c.bf16 %v7003_v1, %v6998_v0  ;;  %v7015_v6 = vld [vmem:[%s8279_s0 + $0x8] sm:$0xff]  ;;  %v6732_v8 = vld [vmem:[%s8280_s3] sm:$0xff]   ;;  %v7022_v9 = vand.u32 127, %v57_v4  ;;  %v7025_v10 = vshrl.u32 %v57_v4, 7  ;;  %v454_v16 = vld [vmem:[%s8282_s4 + $0x10] sm:$0xff] }
   0x3   :  { %v468_v7 = vpack.c.bf16 %v7015_v6, %v7008_v2  ;;  %6410 = vmatprep.mubr.msk.bf16.mxu1 %vm266_vm0, %v6732_v8  ;;  %v56_v11 = vld [vmem:[%s8281_s2] sm:$0x3]  ;;  %v6733_v14 = vld [vmem:[%s8280_s3 + $0x8] sm:$0xff]   ;;  %v6734_v17 = vld [vmem:[%s8280_s3 + $0x10] sm:$0xff]   ;;  %482 = vperm.xlu1 %6731, %v454_v16  }
   0x4   :  { %6406 = vmatprep.subr.bf16.mxu1 %v469_v5  ;;  %vm92_vm1 = vcmp.eq.f32.partialorder %v56_v11, 0.0  ;;  %v105_v12 = vsub.s32 1, %v7025_v10  ;;  %v452_v13 = vld [vmem:[%s8282_s4] sm:$0xff]  ;;  %vm80_vm2 = vcmp.ge.s32.totalorder %v7022_v9, 8  ;;  %vm83_vm3 = vcmp.lt.s32.totalorder %v7022_v9, 16  ;;  %v453_v19 = vld [vmem:[%s8282_s4 + $0x8] sm:$0xff] }
   0x5   :  { %6407 = vmatpush3.bf16.msra.mxu1 %v469_v5  ;;  %v7039_v15 = vsel %vm92_vm1, 1, %v6916_v3  ;;  %472 = vperm.xlu0 %6730, %v452_v13   ;;  %v455_v20 = vld [vmem:[%s8282_s4 + $0x18] sm:$0xff]  ;;  %vm7054_vm4 = vmand %vm80_vm2, %vm83_vm3  ;;  %v456_v22 = vld [vmem:[%s8282_s4 + $0x20] sm:$0xff]  ;;  %vm71_vm6 = vcmp.lt.s32.totalorder %v7022_v9, 8  ;;  %vm88_vm11 = vcmp.le.s32.totalorder %v7022_v9, %v7025_v10  ;;  %vm1120_vm2 = vcmask 130048  }
   0x6   :  { %6408 = vmatprep.subr.bf16.mxu1 %v468_v7  ;;  %v106_v18 = vrot.slane %v7039_v15, %v105_v12  ;;  %v457_v23 = vld [vmem:[%s8282_s4 + $0x28] sm:$0xff]  ;;  %v6735_v24 = vld [vmem:[%s8280_s3 + $0x18] sm:$0xff]   ;;  %v458_v27 = vld [vmem:[%s8282_s4 + $0x30] sm:$0xff]  ;;  %vm6919_vm3 = vmmov 0  }
   0x7   :  { %487 = vperm.xlu1 %6731, %v455_v20   ;;  %v459_v29 = vld [vmem:[%s8282_s4 + $0x38] sm:$0xff]  ;;  %v54_v30 = vld [vmem:[%s8283_s1 + $0x10] sm:$0xff]  ;;  %v52_v33 = vld [vmem:[%s8283_s1] sm:$0xff] }
   0x8   :  { %vm107_vm5 = vcmp.eq.s32.totalorder %v106_v18, 1  ;;  %v55_v31 = vld [vmem:[%s8283_s1 + $0x18] sm:$0xff]  ;;  %v53_v34 = vld [vmem:[%s8283_s1 + $0x8] sm:$0xff]  ;;  %v6736_v36 = vld [vmem:[%s8284_s5] sm:$0xff]  }
   0x9   :  { %6409 = vmatpush3.bf16.msra.mxu1 %v468_v7  ;;  %477 = vperm.xlu0 %6730, %v453_v19   ;;  %vm108_vm7 = vmand %vm71_vm6, %vm107_vm5  ;;  %v129_v32 = vpack.c.bf16 %v55_v31, %v54_v30  ;;  %v128_v35 = vpack.c.bf16 %v53_v34, %v52_v33  ;;  %v6737_v37 = vld [vmem:[%s8284_s5 + $0x8] sm:$0xff]   ;;  %v6738_v38 = vld [vmem:[%s8284_s5 + $0x10] sm:$0xff]  }
   0xa   :  { %vm109_vm8 = vmand %vm7054_vm4, %vm107_vm5  ;;  %v7075_v26 = vsel %vm108_vm7, 0.0, %v6917_v25  ;;  %6390 = vmatprep.mubr.msk.bf16.mxu0 %vm266_vm0, %v6736_v36  ;;  %v6739_v39 = vld [vmem:[%s8284_s5 + $0x18] sm:$0xff]   ;;  %v6740_v40 = vld [vmem:[%s8284_s5 + $0x20] sm:$0xff]   ;;  %v59_v36 = vadd.s32 8, %v7025_v10 }
   0xb   :  { %v7081_v28 = vsel %vm109_vm8, 0.0, %v6917_v25  ;;  %497 = vperm.xlu1 %6731, %v457_v23   ;;  %6386 = vmatprep.subr.bf16.mxu0 %v129_v32  ;;  %v6742_v41 = vld [vmem:[%s8280_s3 + $0x20] sm:$0xff]   ;;  %v6743_v42 = vld [vmem:[%s8280_s3 + $0x28] sm:$0xff]   ;;  %v6744_v44 = vld [vmem:[%s8284_s5 + $0x30] sm:$0xff]  }
   0xc   :  { %6411 = vmatmul.mubr.msk.bf16.vlgmr.msra.gmra.mxu1 %vm266_vm0, %v6733_v14  ;;  %6387 = vmatpush3.bf16.msra.mxu0 %v129_v32  ;;  %v6741_v43 = vld [vmem:[%s8284_s5 + $0x28] sm:$0xff]   ;;  %v6745_v45 = vld [vmem:[%s8284_s5 + $0x38] sm:$0xff]   ;;  %vm89_vm10 = vcmp.le.s32.totalorder %v7022_v9, %v59_v36  ;;  %vm90_vm14 = vmand %vm71_vm6, %vm88_vm11 }
   0xd   :  { %6414 = vmatprep.mubr.msk.bf16.mxu1 %vm266_vm0, %v6734_v17  ;;  %492 = vperm.xlu0 %6730, %v456_v22   ;;  %vm91_vm12 = vmand %vm7054_vm4, %vm89_vm10  ;;  %vm3046_vm4 = vcmask 523264  }
   0xe   :  { %6388 = vmatprep.subr.bf16.mxu0 %v128_v35 }
   0xf   :  { %507 = vperm.xlu1 %6731, %v459_v29  }
  0x10   :  { %6389 = vmatpush3.bf16.msra.mxu0 %v128_v35  ;;  %v96_v35 = vsub.s32 0, %v7025_v10 }
  0x11   :  { %502 = vperm.xlu0 %6730, %v458_v27  }
  0x13   :  { %6391 = vmatmul.mubr.msk.bf16.vlgmr.msra.gmra.mxu0 %vm266_vm0, %v6737_v37 }
  0x14   :  { %6415 = vmatmul.mubr.msk.bf16.gmra.mxu1 %vm266_vm0, %v6735_v24  ;;  %6394 = vmatprep.mubr.msk.bf16.mxu0 %vm266_vm0, %v6738_v38 }
  0x15   :  { %6418 = vmatprep.mubr.msk.bf16.mxu1 %vm266_vm0, %v6742_v41 }
  0x1b   :  { %6395 = vmatmul.mubr.msk.bf16.gmra.mxu0 %vm266_vm0, %v6739_v39  ;;  %v97_v39 = vrot.slane %v7039_v15, %v96_v35 }
  0x1c   :  { %6398 = vmatprep.mubr.msk.bf16.mxu0 %vm266_vm0, %v6740_v40  ;;  %6419 = vmatmul.mubr.msk.bf16.gmra.mxu1 %vm266_vm0, %v6743_v42 }
  0x1d   :  { %vm98_vm13 = vcmp.eq.s32.totalorder %v97_v39, 1 }
  0x1e   :  { %vm100_vm15 = vmand %vm91_vm12, %vm98_vm13 }
  0x1f   :  { %vm99_vm1 = vmand %vm90_vm14, %vm98_vm13  ;;  %v7190_v15 = vsel %vm100_vm15, 0.0, %v6917_v25 }
  0x20   :  { %v7197_v10 = vsel %vm99_vm1, 0.0, %v6917_v25 }
  0x23   :  { %6399 = vmatmul.mubr.msk.bf16.gmra.mxu0 %vm266_vm0, %v6741_v43 }
  0x24   :  { %6402 = vmatprep.mubr.msk.bf16.mxu0 %vm266_vm0, %v6744_v44 }
  0x2b   :  { %6403 = vmatmul.mubr.msk.bf16.gmra.mxu0 %vm266_vm0, %v6745_v45 }
  0x7e   :  { %v483_v49 = vpop.permute.xlu1 %482 }
  0x80   :  { %v473_v46 = vpop.permute.xlu0 %472 }
  0x82   :  { %v488_v55 = vpop.permute.xlu1 %487 }
  0x84   :  { %v478_v47 = vpop.permute.xlu0 %477 }
  0x86   :  { %v498_v4 = vpop.permute.xlu1 %497 }
  0x88   :  { %v493_v50 = vpop.permute.xlu0 %492 }
  0x8a   :  { %v508_v8 = vpop.permute.xlu1 %507 }
  0x8c   :  { %v503_v58 = vpop.permute.xlu0 %502 }
  0xcc   :  { %v6412_v48 = vpop.f32.mrf.mxu1 }
  0xcd   :  { %v621_v57 = vadd.f32 %v6412_v48, %v483_v49 }
  0xce   :  { %v612_v51 = vpop.f32.mrf.mxu1 }
  0xcf   :  { %v613_v52 = vadd.f32 %v612_v51, %v473_v46 }
  0xd0   :  { %v6413_v53 = vpop.f32.mrf.mxu1 }
  0xd1   :  { %667 = vxpose.xlu0.b32.start.end [1/1] (short) (narrow) %v613_v52, 16  ;;  %v624_v3 = vadd.f32 %v6413_v53, %v488_v55 }
  0xd2   :  { %v615_v54 = vpop.f32.mrf.mxu1 }
  0xd3   :  { %v616_v56 = vadd.f32 %v615_v54, %v478_v47  ;;  %v7147_v22 = vpop.f32.mrf.mxu0 }
  0xd4   :  { %v6416_v59 = vpop.f32.mrf.mxu1 }
  0xd5   :  { %v637_v60 = vadd.f32 %v6416_v59, %v503_v58  ;;  %699 = vxpose.xlu1.b32.start.end [1/1] (short) (narrow) %v616_v56, 16  ;;  %v7149_v23 = vpop.f32.mrf.mxu0 }
  0xd6   :  { %v628_v61 = vpop.f32.mrf.mxu1  ;;  %731 = vxpose.xlu0.b32.start.end [1/1] (short) (narrow) %v621_v57, 16 }
  0xd7   :  { %v629_v62 = vadd.f32 %v628_v61, %v493_v50  ;;  %6432 = vmatprep.subr.mxu0 %v637_v60  ;;  %v7151_v24 = vpop.f32.mrf.mxu0 }
  0xd8   :  { %v6417_v63 = vpop.f32.mrf.mxu1  ;;  %6433 = vmatpush3.msra.mxu0 %v637_v60 }
  0xd9   :  { %6422 = vmatprep.subr.mxu1 %v629_v62  ;;  %v640_v14 = vadd.f32 %v6417_v63, %v508_v8  ;;  %v7153_v27 = vpop.f32.mrf.mxu0 }
  0xda   :  { %v631_v5 = vpop.f32.mrf.mxu1  ;;  %6423 = vmatpush3.msra.mxu1 %v629_v62 }
  0xdb   :  { %v632_v7 = vadd.f32 %v631_v5, %v498_v4  ;;  %763 = vxpose.xlu0.b32.start.end [1/1] (short) (narrow) %v624_v3, 16  ;;  %v7155_v29 = vpop.f32.mrf.mxu0 }
  0xdc   :  { %v7171_v38 = vpop.f32.mrf.mxu1 }
  0xdd   :  { %6427 = vmatprep.subr.mxu1 %v632_v7  ;;  %v7157_v30 = vpop.f32.mrf.mxu0 }
  0xde   :  { %v7177_v41 = vpop.f32.mrf.mxu1 }
  0xdf   :  { %v7159_v31 = vpop.f32.mrf.mxu0 }
  0xe0   :  { %v7187_v43 = vpop.f32.mrf.mxu1 }
  0xe1   :  { %v7161_v32 = vpop.f32.mrf.mxu0 }
  0xe2   :  { %v7194_v45 = vpop.f32.mrf.mxu1 }
  0xe3   :  { %v7163_v33 = vpop.f32.mrf.mxu0 }
  0xe5   :  { %v7165_v34 = vpop.f32.mrf.mxu0 }
  0xe7   :  { %v7169_v37 = vpop.f32.mrf.mxu0 }
  0xe9   :  { %v7175_v40 = vpop.f32.mrf.mxu0 }
  0xeb   :  { %v7185_v42 = vpop.f32.mrf.mxu0 }
  0xed   :  { %v7192_v44 = vpop.f32.mrf.mxu0 }
  0xef   :  { %v7200_v46 = vpop.f32.mrf.mxu0 }
  0xf1   :  { %v7206_v53 = vpop.f32.mrf.mxu0 }
 0x14d   :  { %v683_v11 = vpop.trf.xlu0 }
 0x14e   :  { %6424 = vmatprep.mubr.msk.f32.mxu1 %vm795_vm9, %v683_v11  ;;  %v461_v11 = vld [vmem:[%s8282_s4 + $0x48] sm:$0xff] }
 0x151   :  { %v715_v12 = vpop.trf.xlu1  ;;  %v684_v13 = vpop.trf.xlu0 }
 0x152   :  { %6425 = vmatmul.mubr.msk.f32.vlgmr.msra.gmra.mxu1 %vm795_vm9, %v684_v13 }
 0x153   :  { %6428 = vmatpush3.msra.mxu1 %v632_v7  ;;  %6429 = vmatprep.mubr.msk.f32.mxu1 %vm795_vm9, %v715_v12 }
 0x154   :  { %6437 = vmatprep.subr.mxu1 %v640_v14 }
 0x155   :  { %v716_v16 = vpop.trf.xlu1  ;;  %v747_v17 = vpop.trf.xlu0 }
 0x156   :  { %6430 = vmatmul.mubr.msk.f32.vlgmr.msra.gmra.mxu1 %vm795_vm9, %v716_v16  ;;  %6434 = vmatprep.mubr.msk.f32.mxu0 %vm795_vm9, %v747_v17 }
 0x157   :  { %6438 = vmatpush3.msra.mxu1 %v640_v14 }
 0x159   :  { %v748_v18 = vpop.trf.xlu0 }
 0x15a   :  { %6435 = vmatmul.mubr.msk.f32.vlgmr.msra.gmra.mxu0 %vm795_vm9, %v748_v18 }
 0x15d   :  { %v779_v19 = vpop.trf.xlu0 }
 0x15e   :  { %6439 = vmatprep.mubr.msk.f32.mxu1 %vm795_vm9, %v779_v19 }
 0x161   :  { %v780_v20 = vpop.trf.xlu0 }
 0x162   :  { %6440 = vmatmul.mubr.msk.f32.vlgmr.msra.gmra.mxu1 %vm795_vm9, %v780_v20 }
 0x212   :  { %v6426_v21 = vpop.f32.mrf.mxu1 }
 0x213   :  { %v874_v9 = vadd.f32 %v6426_v21, %v7190_v15 }
 0x214   :  { %v868_v47 = vpop.f32.mrf.mxu1 }
 0x215   :  { %v869_v48 = vadd.f32 %v868_v47, %v7197_v10  ;;  %v1124_v49 = vsel %vm1120_vm2, %v874_v9, -inf }
 0x216   :  { %1125 = vmax.xlane.f32.xlu0 %v1124_v49  ;;  %v6431_v50 = vpop.f32.mrf.mxu1 }
 0x217   :  { %v955_v51 = vadd.f32 %v6431_v50, %v7190_v15  ;;  %v1121_v52 = vsel %vm1120_vm2, %v869_v48, -inf }
 0x218   :  { %1122 = vmax.xlane.f32.xlu1 %v1121_v52  ;;  %v949_v25 = vpop.f32.mrf.mxu1 }
 0x219   :  { %v950_v54 = vadd.f32 %v949_v25, %v7197_v10  ;;  %v1130_v55 = vsel %vm1120_vm2, %v955_v51, -inf }
 0x21a   :  { %v6436_v56 = vpop.f32.mrf.mxu0 }
 0x21b   :  { %v1036_v57 = vadd.f32 %v6436_v56, %v7190_v15  ;;  %v1127_v61 = vsel %vm1120_vm2, %v950_v54, -inf }
 0x21c   :  { %1131 = vmax.xlane.f32.xlu1 %v1130_v55  ;;  %v1030_v58 = vpop.f32.mrf.mxu0 }
 0x21d   :  { %v1031_v59 = vadd.f32 %v1030_v58, %v7197_v10  ;;  %v1136_v60 = vsel %vm1120_vm2, %v1036_v57, -inf }
 0x21e   :  { %1137 = vmax.xlane.f32.xlu0 %v1136_v60 }
 0x21f   :  { %v1133_v62 = vsel %vm1120_vm2, %v1031_v59, -inf }
 0x220   :  { %1128 = vmax.xlane.f32.xlu1 %v1127_v61 }
 0x222   :  { %1134 = vmax.xlane.f32.xlu0 %v1133_v62  ;;  %v6441_v63 = vpop.f32.mrf.mxu1 }
 0x223   :  { %v1117_v3 = vadd.f32 %v6441_v63, %v7190_v15 }
 0x224   :  { %v1111_v4 = vpop.f32.mrf.mxu1 }
 0x225   :  { %v1142_v5 = vsel %vm1120_vm2, %v1117_v3, -inf  ;;  %v1112_v7 = vadd.f32 %v1111_v4, %v7197_v10 }
 0x226   :  { %1143 = vmax.xlane.f32.xlu1 %v1142_v5 }
 0x227   :  { %v1139_v8 = vsel %vm1120_vm2, %v1112_v7, -inf }
 0x22a   :  { %1140 = vmax.xlane.f32.xlu1 %v1139_v8 }
 0x23b   :  { %517 = vperm.xlu1 %6731, %v461_v11  }
 0x29f   :  { %v1126_v13 = vpop.xlane.xlu0 %1125 }
 0x2a0   :  { %v1146_v14 = vsub.f32 %v874_v9, %v1126_v13 }
 0x2a1   :  { %v1123_v12 = vpop.xlane.xlu1 %1122 }
 0x2a2   :  { %v1155_v35 = vmul.f32 1.442695, %v1146_v14  ;;  %v1145_v52 = vsub.f32 %v869_v48, %v1123_v12 }
 0x2a4   :  { %v1153_v56 = vmul.f32 1.442695, %v1145_v52  ;;  %v391_v52 = vld [vmem:[%s8286_s13 + $0x18] sm:$0xff] }
 0x2a5   :  { %v1132_v16 = vpop.xlane.xlu1 %1131 }
 0x2a6   :  { %v1148_v17 = vsub.f32 %v955_v51, %v1132_v16 }
 0x2a7   :  { %v1138_v18 = vpop.xlane.xlu0 %1137 }
 0x2a8   :  { %v1159_v19 = vmul.f32 1.442695, %v1148_v17  ;;  %v1150_v20 = vsub.f32 %v1036_v57, %v1138_v18  ;;  %v6918_v17 = vmov 0.0   ;;  %v462_v18 = vld [vmem:[%s8282_s4 + $0x50] sm:$0xff] }
 0x2a9   :  { %v1129_v36 = vpop.xlane.xlu1 %1128  ;;  %6449 = vmatprep.subr.mxu1 %v6918_v17  ;;  %6442 = vmatprep.subr.mxu0 %v6918_v17 }
 0x2aa   :  { %6776 = vpow2.f32 %v1159_v19  ;;  %v1163_v39 = vmul.f32 1.442695, %v1150_v20  ;;  %v1147_v21 = vsub.f32 %v950_v54, %v1129_v36  ;;  %v663_v19 = vld [vmem:[%s8285_s8] sm:$0xff]  ;;  %6453 = vmatprep.mubr.msk.f32.mxu1 %vm6919_vm3, %v6918_v17  ;;  %6446 = vmatprep.mubr.msk.f32.mxu0 %vm6919_vm3, %v6918_v17  ;;  %v463_v36 = vld [vmem:[%s8282_s4 + $0x58] sm:$0xff] }
 0x2ab   :  { %v1135_v47 = vpop.xlane.xlu0 %1134  ;;  %v460_v20 = vld [vmem:[%s8282_s4 + $0x40] sm:$0xff] }
 0x2ac   :  { %6778 = vpow2.f32 %v1163_v39  ;;  %v1157_v49 = vmul.f32 1.442695, %v1147_v21  ;;  %v1149_v50 = vsub.f32 %v1031_v59, %v1135_v47  ;;  %v390_v39 = vld [vmem:[%s8286_s13 + $0x10] sm:$0xff]  ;;  %v664_v21 = vld [vmem:[%s8285_s8 + $0x8] sm:$0xff] }
 0x2ad   :  { %6780 = vpow2.f32 %v1155_v35  ;;  %v665_v35 = vld [vmem:[%s8285_s8 + $0x10] sm:$0xff] }
 0x2ae   :  { %6782 = vpow2.f32 %v1157_v49  ;;  %v1161_v25 = vmul.f32 1.442695, %v1149_v50  ;;  %v414_v47 = vld [vmem:[%s8286_s13 + $0xd0] sm:$0xff]  ;;  %v666_v49 = vld [vmem:[%s8285_s8 + $0x18] sm:$0xff]  ;;  %v388_v50 = vld [vmem:[%s8286_s13] sm:$0xff] }
 0x2af   :  { %v1144_v55 = vpop.xlane.xlu1 %1143 }
 0x2b0   :  { %v1152_v9 = vsub.f32 %v1117_v3, %v1144_v55  ;;  %6784 = vpow2.f32 %v1161_v25  ;;  %v412_v25 = vld [vmem:[%s8286_s13 + $0xc0] sm:$0xff]  ;;  %v415_v55 = vld [vmem:[%s8286_s13 + $0xd8] sm:$0xff] }
 0x2b2   :  { %v1167_v51 = vmul.f32 1.442695, %v1152_v9  ;;  %v464_v9 = vld [vmem:[%s8282_s4 + $0x60] sm:$0xff] }
 0x2b3   :  { %v1141_v58 = vpop.xlane.xlu1 %1140 }
 0x2b4   :  { %6786 = vpow2.f32 %v1167_v51  ;;  %v1151_v57 = vsub.f32 %v1112_v7, %v1141_v58  ;;  %v466_v51 = vld [vmem:[%s8282_s4 + $0x70] sm:$0xff]  ;;  %v413_v58 = vld [vmem:[%s8286_s13 + $0xc8] sm:$0xff] }
 0x2b5   :  { %6788 = vpow2.f32 %v1153_v56  ;;  %v389_v56 = vld [vmem:[%s8286_s13 + $0x8] sm:$0xff] }
 0x2b6   :  { %v1165_v60 = vmul.f32 1.442695, %v1151_v57  ;;  %v130_v57 = vld [vmem:[%s8287_s6] sm:$0xff] }
 0x2b7   :  { %v7222_v61 = vpop.eup %6776 }
 0x2b8   :  { %6790 = vpow2.f32 %v1165_v60  ;;  %v1178_v54 = vsel %vm1120_vm2, %v7222_v61, 0.0  ;;  %v465_v60 = vld [vmem:[%s8282_s4 + $0x68] sm:$0xff] }
 0x2b9   :  { %v7226_v59 = vpop.eup %6778  ;;  %1179 = vadd.xlane.f32.xlu1 %v1178_v54  ;;  %v132_v54 = vld [vmem:[%s8287_s6 + $0x10] sm:$0xff] }
 0x2ba   :  { %v7228_v48 = vpop.eup %6780  ;;  %v1184_v62 = vsel %vm1120_vm2, %v7226_v59, 0.0 }
 0x2bb   :  { %v7232_v63 = vpop.eup %6782  ;;  %1185 = vadd.xlane.f32.xlu0 %v1184_v62  ;;  %v1172_v4 = vsel %vm1120_vm2, %v7228_v48, 0.0  ;;  %v467_v62 = vld [vmem:[%s8282_s4 + $0x78] sm:$0xff] }
 0x2bc   :  { %v1175_v3 = vsel %vm1120_vm2, %v7232_v63, 0.0 }
 0x2bd   :  { %1176 = vadd.xlane.f32.xlu1 %v1175_v3  ;;  %v7238_v5 = vpop.eup %6784  ;;  %v131_v3 = vld [vmem:[%s8287_s6 + $0x8] sm:$0xff] }
 0x2be   :  { %v1181_v11 = vsel %vm1120_vm2, %v7238_v5, 0.0 }
 0x2bf   :  { %1173 = vadd.xlane.f32.xlu0 %v1172_v4  ;;  %v133_v4 = vld [vmem:[%s8287_s6 + $0x18] sm:$0xff] }
 0x2c1   :  { %v7240_v7 = vpop.eup %6786 }
 0x2c2   :  { %v1190_v8 = vsel %vm1120_vm2, %v7240_v7, 0.0  ;;  %v7246_v12 = vpop.eup %6788 }
 0x2c3   :  { %1191 = vadd.xlane.f32.xlu1 %v1190_v8  ;;  %1182 = vadd.xlane.f32.xlu0 %v1181_v11  ;;  %v1169_v16 = vsel %vm1120_vm2, %v7246_v12, 0.0  ;;  %v518_v8 = vpop.permute.xlu1 %517 }
 0x2c5   :  { %v7248_v13 = vpop.eup %6790 }
 0x2c6   :  { %v1187_v14 = vsel %vm1120_vm2, %v7248_v13, 0.0 }
 0x2c7   :  { %1188 = vadd.xlane.f32.xlu1 %v1187_v14  ;;  %1170 = vadd.xlane.f32.xlu0 %v1169_v16 }
 0x2d8   :  { %522 = vperm.xlu1 %6731, %v462_v18  }
 0x2dc   :  { %1529 = vperm.xlu1 %6731, %v663_v19  }
 0x2dd   :  { %512 = vperm.xlu0 %6730, %v460_v20  }
 0x2e0   :  { %1539 = vperm.xlu1 %6731, %v665_v35  }
 0x2e1   :  { %527 = vperm.xlu0 %6730, %v463_v36  }
 0x2e4   :  { %1671 = vperm.xlu1 %6731, %v390_v39  }
 0x2e5   :  { %1534 = vperm.xlu0 %6730, %v664_v21  }
 0x2e8   :  { %1695 = vperm.xlu1 %6731, %v414_v47  }
 0x2e9   :  { %1544 = vperm.xlu0 %6730, %v666_v49  }
 0x2ec   :  { %1661 = vperm.xlu1 %6731, %v388_v50  }
 0x2ed   :  { %1676 = vperm.xlu0 %6730, %v391_v52  }
 0x2f0   :  { %1685 = vperm.xlu1 %6731, %v412_v25   ;;  %v648_v25 = vadd.f32 %v7194_v45, %v518_v8 }
 0x2f1   :  { %1700 = vperm.xlu0 %6730, %v415_v55  }
 0x2f4   :  { %1711 = vperm.xlu1 %6731, %v464_v9  }
 0x2f5   :  { %1666 = vperm.xlu0 %6730, %v389_v56  }
 0x2f8   :  { %1721 = vperm.xlu1 %6731, %v466_v51  }
 0x2f9   :  { %1690 = vperm.xlu0 %6730, %v413_v58  }
 0x2fc   :  { %148 = vperm.xlu1 %6731, %v130_v57  }
 0x2fd   :  { %1716 = vperm.xlu0 %6730, %v465_v60  }
 0x300   :  { %158 = vperm.xlu1 %6731, %v132_v54  }
 0x301   :  { %1726 = vperm.xlu0 %6730, %v467_v62  }
 0x305   :  { %153 = vperm.xlu0 %6730, %v131_v3  }
 0x309   :  { %163 = vperm.xlu0 %6730, %v133_v4  }
 0x342   :  { %v1180_v11 = vpop.xlane.xlu1 %1179 }
 0x343   :  { %6792 = vrcp.f32 %v1180_v11 }
 0x344   :  { %v1186_v14 = vpop.xlane.xlu0 %1185 }
 0x346   :  { %v1177_v16 = vpop.xlane.xlu1 %1176 }
 0x347   :  { %6794 = vrcp.f32 %v1177_v16 }
 0x348   :  { %v1174_v18 = vpop.xlane.xlu0 %1173 }
 0x349   :  { %6796 = vrcp.f32 %v1174_v18 }
 0x34c   :  { %v1192_v19 = vpop.xlane.xlu1 %1191  ;;  %v1183_v20 = vpop.xlane.xlu0 %1182 }
 0x34d   :  { %6798 = vrcp.f32 %v1192_v19 }
 0x350   :  { %v6793_v35 = vpop.eup %6792  ;;  %v1189_v36 = vpop.xlane.xlu1 %1188 }
 0x351   :  { %v1171_v39 = vpop.xlane.xlu0 %1170  ;;  %6800 = vrcp.f32 %v1189_v36  ;;  %v1204_v21 = vmul.f32 %v6793_v35, %v7222_v61 }
 0x352   :  { %6802 = vrcp.f32 %v1171_v39 }
 0x353   :  { %6450 = vmatpush3.xpose.msk.msra.mxu1 %vm1120_vm2, %v1204_v21  ;;  %6804 = vrcp.f32 %v1186_v14 }
 0x354   :  { %v6795_v47 = vpop.eup %6794  ;;  %6451 = vmatprep.subr.mxu1 %v6918_v17  ;;  %6806 = vrcp.f32 %v1183_v20 }
 0x355   :  { %v1203_v49 = vmul.f32 %v6795_v47, %v7232_v63 }
 0x356   :  { %v6797_v50 = vpop.eup %6796 }
 0x357   :  { %6452 = vmatpush3.xpose.msk.msra.mxu1 %vm1120_vm2, %v1203_v49  ;;  %v1202_v52 = vmul.f32 %v6797_v50, %v7228_v48 }
 0x358   :  { %6463 = vmatprep.subr.mxu1 %v6918_v17  ;;  %v513_v61 = vpop.permute.xlu0 %512 }
 0x359   :  { %6443 = vmatpush3.xpose.msk.msra.mxu0 %vm1120_vm2, %v1202_v52  ;;  %v6747_v52 = vld [vmem:[%s8288_s7 + $0x8] sm:$0xff]  }
 0x35a   :  { %v6799_v55 = vpop.eup %6798  ;;  %6454 = vmatmul.mubr.msk.f32.vlgmr.msra.gmra.mxu1 %vm1120_vm2, %v648_v25  ;;  %6444 = vmatprep.subr.mxu0 %v6918_v17 }
 0x35b   :  { %v1208_v63 = vmul.f32 %v6799_v55, %v7240_v7  ;;  %6467 = vmatprep.mubr.msk.f32.mxu1 %vm6919_vm3, %v6918_v17  ;;  %v645_v7 = vadd.f32 %v7177_v41, %v513_v61  ;;  %v6748_v55 = vld [vmem:[%s8280_s3 + $0x30] sm:$0xff]  }
 0x35c   :  { %v528_v9 = vpop.permute.xlu0 %527 }
 0x35d   :  { %6464 = vmatpush3.xpose.msk.msra.mxu1 %vm1120_vm2, %v1208_v63  ;;  %v656_v57 = vadd.f32 %v7187_v43, %v528_v9  ;;  %v523_v43 = vpop.permute.xlu1 %522 }
 0x35e   :  { %v6801_v48 = vpop.eup %6800  ;;  %6465 = vmatprep.subr.mxu1 %v6918_v17  ;;  %v653_v41 = vadd.f32 %v7171_v38, %v523_v43 }
 0x35f   :  { %v6803_v45 = vpop.eup %6802  ;;  %v1207_v56 = vmul.f32 %v6801_v48, %v7248_v13 }
 0x360   :  { %v1201_v51 = vmul.f32 %v6803_v45, %v7246_v12  ;;  %v6805_v58 = vpop.eup %6804 }
 0x361   :  { %6466 = vmatpush3.xpose.msk.msra.mxu1 %vm1120_vm2, %v1207_v56  ;;  %v1206_v60 = vmul.f32 %v6805_v58, %v7226_v59  ;;  %v6807_v54 = vpop.eup %6806  ;;  %v6746_v59 = vld [vmem:[%s8288_s7] sm:$0xff]   ;;  %v1530_v13 = vpop.permute.xlu1 %1529 }
 0x362   :  { %6445 = vmatpush3.xpose.msk.msra.mxu0 %vm1120_vm2, %v1201_v51  ;;  %v1205_v12 = vmul.f32 %v6807_v54, %v7238_v5 }
 0x363   :  { %6456 = vmatprep.subr.mxu0 %v6918_v17 }
 0x364   :  { %6468 = vmatmul.mubr.msk.f32.vlgmr.msra.gmra.mxu1 %vm1120_vm2, %v656_v57 }
 0x365   :  { %6447 = vmatmul.mubr.msk.f32.vlgmr.msra.gmra.mxu0 %vm1120_vm2, %v645_v7  ;;  %v1540_v62 = vpop.permute.xlu1 %1539  ;;  %6482 = vmatprep.mubr.msk.bf16.mxu1 %vm266_vm0, %v6748_v55 }
 0x366   :  { %6457 = vmatpush3.xpose.msk.msra.mxu0 %vm1120_vm2, %v1206_v60  ;;  %6460 = vmatprep.mubr.msk.f32.mxu0 %vm6919_vm3, %v6918_v17 }
 0x367   :  { %6458 = vmatprep.subr.mxu0 %v6918_v17 }
 0x369   :  { %v7367_v3 = vpop.permute.xlu1 %1671 }
 0x36a   :  { %6459 = vmatpush3.xpose.msk.msra.mxu0 %vm1120_vm2, %v1205_v12 }
 0x36d   :  { %6461 = vmatmul.mubr.msk.f32.vlgmr.msra.gmra.mxu0 %vm1120_vm2, %v653_v41  ;;  %v7369_v4 = vpop.permute.xlu1 %1695 }
 0x36e   :  { %6474 = vmatprep.mubr.msk.bf16.mxu0 %vm266_vm0, %v6746_v59 }
 0x371   :  { %v7371_v8 = vpop.permute.xlu1 %1661 }
 0x375   :  { %v7373_v14 = vpop.permute.xlu1 %1685 }
 0x379   :  { %v7375_v38 = vpop.permute.xlu1 %1711 }
 0x37d   :  { %v7377_v35 = vpop.permute.xlu1 %1721 }
 0x381   :  { %v149_v21 = vpop.permute.xlu1 %148 }
 0x382   :  { %v326_v50 = vadd.f32 %v7149_v23, %v149_v21  ;;  %v1535_v23 = vpop.permute.xlu0 %1534 }
 0x385   :  { %v159_v25 = vpop.permute.xlu1 %158 }
 0x386   :  { %v7384_v61 = vadd.f32 %v7147_v22, %v159_v25  ;;  %v1545_v51 = vpop.permute.xlu0 %1544 }
 0x41a   :  { %v1363_v5 = vpop.f32.mrf.mxu1 }
 0x41c   :  { %v6455_v11 = vpop.f32.mrf.mxu1 }
 0x424   :  { %v1521_v16 = vpop.f32.mrf.mxu1 }
 0x425   :  { %v1284_v18 = vpop.f32.mrf.mxu0 }
 0x426   :  { %v6469_v19 = vpop.f32.mrf.mxu1  ;;  %v1525_v49 = vpack.c.bf16 %v1363_v5, %v1284_v18 }
 0x427   :  { %v6448_v20 = vpop.f32.mrf.mxu0 }
 0x42d   :  { %v1442_v36 = vpop.f32.mrf.mxu0 }
 0x42e   :  { %v1526_v39 = vpack.c.bf16 %v1521_v16, %v1442_v36 }
 0x42f   :  { %v6462_v47 = vpop.f32.mrf.mxu0 }
 0x430   :  { %6470 = vmatprep.subr.bf16.mxu0 %v1526_v39 }
 0x431   :  { %6471 = vmatpush3.bf16.msra.mxu0 %v1526_v39 }
 0x432   :  { %6472 = vmatprep.subr.bf16.mxu0 %v1525_v49 }
 0x435   :  { %6473 = vmatpush3.bf16.msra.mxu0 %v1525_v49 }
 0x436   :  { %6486 = vmatprep.subr.mxu0 %v326_v50 }
 0x438   :  { %6475 = vmatmul.mubr.msk.bf16.vlgmr.msra.gmra.mxu0 %vm266_vm0, %v6747_v52 }
 0x439   :  { %6487 = vmatpush3.msra.mxu0 %v326_v50 }
 0x43a   :  { %6496 = vmatprep.subr.mxu0 %v7384_v61 }
 0x4f8   :  { %v6476_v63 = vpop.f32.mrf.mxu0 }
 0x4f9   :  { %v1606_v56 = vadd.f32 %v6476_v63, %v1540_v62 }
 0x4fa   :  { %v1597_v48 = vpop.f32.mrf.mxu0 }
 0x4fb   :  { %v1598_v45 = vadd.f32 %v1597_v48, %v1530_v13  ;;  %v1614_v60 = vadd.f32 %v1606_v56, %v6998_v0 }
 0x4fc   :  { %v6477_v9 = vpop.f32.mrf.mxu0 }
 0x4fd   :  { %v1612_v58 = vadd.f32 %v1598_v45, %v7008_v2  ;;  %v1609_v57 = vadd.f32 %v6477_v9, %v1545_v51  ;;  %v1619_v13 = vsel %vm1120_vm2, %v1614_v60, 0.0  ;;  %v1677_v51 = vpop.permute.xlu0 %1676 }
 0x4fe   :  { %v1600_v22 = vpop.f32.mrf.mxu0 }
 0x4ff   :  { %v1601_v7 = vadd.f32 %v1600_v22, %v1535_v23  ;;  %v1616_v43 = vsel %vm1120_vm2, %v1612_v58, 0.0  ;;  %v1615_v12 = vadd.f32 %v1609_v57, %v7003_v1 }
 0x501   :  { %v1613_v54 = vadd.f32 %v1601_v7, %v7015_v6  ;;  %v1621_v5 = vsel %vm1120_vm2, %v1615_v12, 0.0  ;;  %v1701_v7 = vpop.permute.xlu0 %1700 }
 0x503   :  { %v1617_v41 = vsel %vm1120_vm2, %v1613_v54, 0.0 }
 0x504   :  { %v1618_v59 = vadd.f32 %v1617_v41, %v1616_v43 }
 0x506   :  { %v1620_v62 = vadd.f32 %v1619_v13, %v1618_v59 }
 0x508   :  { %v1622_v11 = vadd.f32 %v1621_v5, %v1620_v62 }
 0x50a   :  { %v1623_v2 = vrot.slane %v1622_v11, 4 }
 0x50c   :  { %v1624_v16 = vadd.f32 %v1623_v2, %v1622_v11 }
 0x50e   :  { %v1625_v18 = vrot.slane %v1624_v16, 2 }
 0x510   :  { %v1626_v19 = vadd.f32 %v1625_v18, %v1624_v16 }
 0x512   :  { %v1627_v0 = vrot.slane %v1626_v19, 1 }
 0x514   :  { %v1628_v20 = vadd.f32 %v1627_v0, %v1626_v19 }
 0x516   :  { %v1630_v6 = vmul.f32 0.03125, %v1628_v20 }
 0x518   :  { %v1631_v36 = vsub.f32 %v1612_v58, %v1630_v6  ;;  %v1632_v39 = vsub.f32 %v1613_v54, %v1630_v6  ;;  %v1633_v21 = vsub.f32 %v1614_v60, %v1630_v6  ;;  %v1634_v1 = vsub.f32 %v1615_v12, %v1630_v6  ;;  %v1667_v12 = vpop.permute.xlu0 %1666 }
 0x51a   :  { %v1635_v47 = vmul.f32 %v1631_v36, %v1631_v36  ;;  %v1636_v49 = vmul.f32 %v1632_v39, %v1632_v39  ;;  %v1637_v50 = vmul.f32 %v1633_v21, %v1633_v21  ;;  %v1638_v52 = vmul.f32 %v1634_v1, %v1634_v1 }
 0x51c   :  { %v1639_v25 = vsel %vm1120_vm2, %v1635_v47, 0.0  ;;  %v1640_v55 = vsel %vm1120_vm2, %v1636_v49, 0.0  ;;  %v1642_v63 = vsel %vm1120_vm2, %v1637_v50, 0.0  ;;  %v1644_v45 = vsel %vm1120_vm2, %v1638_v52, 0.0  ;;  %v1691_v59 = vpop.permute.xlu0 %1690 }
 0x51d   :  { %v1641_v23 = vadd.f32 %v1640_v55, %v1639_v25 }
 0x51f   :  { %v1643_v48 = vadd.f32 %v1642_v63, %v1641_v23 }
 0x520   :  { %v1717_v13 = vpop.permute.xlu0 %1716 }
 0x521   :  { %v1645_v9 = vadd.f32 %v1644_v45, %v1643_v48 }
 0x523   :  { %v1646_v56 = vrot.slane %v1645_v9, 4 }
 0x524   :  { %v1727_v18 = vpop.permute.xlu0 %1726 }
 0x525   :  { %v1647_v22 = vadd.f32 %v1646_v56, %v1645_v9 }
 0x527   :  { %v1648_v58 = vrot.slane %v1647_v22, 2 }
 0x529   :  { %v1649_v57 = vadd.f32 %v1648_v58, %v1647_v22 }
 0x52b   :  { %v1650_v60 = vrot.slane %v1649_v57, 1 }
 0x52d   :  { %v1651_v54 = vadd.f32 %v1650_v60, %v1649_v57 }
 0x52f   :  { %v1652_v43 = vmul.f32 0.03125, %v1651_v54 }
 0x531   :  { %v1653_v41 = vadd.f32 1e-06, %v1652_v43 }
 0x533   :  { %6808 = vrsqrt.f32 %v1653_v41 }
 0x540   :  { %v6809_v62 = vpop.eup %6808 }
 0x541   :  { %v1656_v5 = vmul.f32 %v6809_v62, %v1632_v39  ;;  %v1657_v11 = vmul.f32 %v6809_v62, %v1633_v21  ;;  %v1658_v2 = vmul.f32 %v6809_v62, %v1634_v1  ;;  %v1655_v16 = vmul.f32 %v6809_v62, %v1631_v36  ;;  %v154_v39 = vpop.permute.xlu0 %153 }
 0x543   :  { %v1681_v19 = vmul.f32 %v7367_v3, %v1657_v11  ;;  %v1682_v0 = vmul.f32 %v1677_v51, %v1658_v2  ;;  %v1679_v20 = vmul.f32 %v7371_v8, %v1655_v16  ;;  %v1680_v6 = vmul.f32 %v1667_v12, %v1656_v5  ;;  %v6749_v8 = vld [vmem:[%s8280_s3 + $0x38] sm:$0xff]  }
 0x545   :  { %v7407_v47 = vadd.f32 %v7369_v4, %v1681_v19  ;;  %v7409_v49 = vadd.f32 %v1701_v7, %v1682_v0  ;;  %v7412_v50 = vadd.f32 %v7373_v14, %v1679_v20  ;;  %v7414_v52 = vadd.f32 %v1691_v59, %v1680_v6  ;;  %v164_v14 = vpop.permute.xlu0 %163 }
 0x546   :  { %v329_v4 = vadd.f32 %v7153_v27, %v154_v39  ;;  %v337_v21 = vadd.f32 %v7151_v24, %v164_v14  ;;  %v135_v14 = vld [vmem:[%s8287_s6 + $0x28] sm:$0xff] }
 0x547   :  { %v1708_v36 = vpack.c.bf16 %v7409_v49, %v7407_v47  ;;  %v1707_v3 = vpack.c.bf16 %v7414_v52, %v7412_v50 }
 0x549   :  { %6478 = vmatprep.subr.bf16.mxu1 %v1708_v36 }
 0x54a   :  { %6479 = vmatpush3.bf16.msra.mxu1 %v1708_v36 }
 0x54b   :  { %6480 = vmatprep.subr.bf16.mxu1 %v1707_v3 }
 0x54e   :  { %6481 = vmatpush3.bf16.msra.mxu1 %v1707_v3 }
 0x54f   :  { %6491 = vmatprep.subr.mxu1 %v329_v4 }
 0x551   :  { %6483 = vmatmul.mubr.msk.bf16.vlgmr.msra.gmra.mxu1 %vm266_vm0, %v6749_v8  ;;  %v134_v8 = vld [vmem:[%s8287_s6 + $0x20] sm:$0xff] }
 0x552   :  { %6492 = vmatpush3.msra.mxu1 %v329_v4 }
 0x553   :  { %6501 = vmatprep.subr.mxu1 %v337_v21 }
 0x611   :  { %v6484_v1 = vpop.f32.mrf.mxu1 }
 0x612   :  { %v1788_v48 = vadd.f32 %v6484_v1, %v7377_v35 }
 0x613   :  { %v1779_v25 = vpop.f32.mrf.mxu1 }
 0x614   :  { %v1780_v55 = vadd.f32 %v1779_v25, %v7375_v38 }
 0x615   :  { %v6485_v23 = vpop.f32.mrf.mxu1 }
 0x616   :  { %1804 = vxpose.xlu1.b32.start.end [1/1] (short) (narrow) %v1780_v55, 16  ;;  %v1791_v45 = vadd.f32 %v6485_v23, %v1727_v18 }
 0x617   :  { %v1782_v27 = vpop.f32.mrf.mxu1 }
 0x618   :  { %v1783_v63 = vadd.f32 %v1782_v27, %v1717_v13 }
 0x61a   :  { %1836 = vxpose.xlu0.b32.start.end [1/1] (short) (narrow) %v1783_v63, 16 }
 0x61f   :  { %1868 = vxpose.xlu0.b32.start.end [1/1] (short) (narrow) %v1788_v48, 16 }
 0x624   :  { %1900 = vxpose.xlu0.b32.start.end [1/1] (short) (narrow) %v1791_v45, 16 }
 0x692   :  { %v1820_v9 = vpop.trf.xlu1 }
 0x693   :  { %6488 = vmatprep.mubr.msk.f32.mxu0 %vm795_vm9, %v1820_v9 }
 0x696   :  { %v1821_v24 = vpop.trf.xlu1  ;;  %v1852_v56 = vpop.trf.xlu0 }
 0x697   :  { %6489 = vmatmul.mubr.msk.f32.vlgmr.msra.gmra.mxu0 %vm795_vm9, %v1821_v24  ;;  %6493 = vmatprep.mubr.msk.f32.mxu1 %vm795_vm9, %v1852_v56 }
 0x698   :  { %6497 = vmatpush3.msra.mxu0 %v7384_v61 }
 0x699   :  { %6506 = vmatprep.subr.mxu0 %v6918_v17 }
 0x69a   :  { %v1853_v38 = vpop.trf.xlu0 }
 0x69b   :  { %6494 = vmatmul.mubr.msk.f32.vlgmr.msra.gmra.mxu1 %vm795_vm9, %v1853_v38 }
 0x69c   :  { %6502 = vmatpush3.msra.mxu1 %v337_v21 }
 0x69d   :  { %6513 = vmatprep.subr.mxu1 %v6918_v17 }
 0x69e   :  { %v1884_v35 = vpop.trf.xlu0 }
 0x69f   :  { %6498 = vmatprep.mubr.msk.f32.mxu0 %vm795_vm9, %v1884_v35 }
 0x6a2   :  { %v1885_v51 = vpop.trf.xlu0 }
 0x6a3   :  { %6499 = vmatmul.mubr.msk.f32.vlgmr.msra.gmra.mxu0 %vm795_vm9, %v1885_v51 }
 0x6a4   :  { %6510 = vmatprep.mubr.msk.f32.mxu0 %vm6919_vm3, %v6918_v17 }
 0x6a6   :  { %v1916_v22 = vpop.trf.xlu0 }
 0x6a7   :  { %6503 = vmatprep.mubr.msk.f32.mxu1 %vm795_vm9, %v1916_v22 }
 0x6aa   :  { %v1917_v61 = vpop.trf.xlu0 }
 0x6ab   :  { %6504 = vmatmul.mubr.msk.f32.vlgmr.msra.gmra.mxu1 %vm795_vm9, %v1917_v61 }
 0x6ac   :  { %6517 = vmatprep.mubr.msk.f32.mxu1 %vm6919_vm3, %v6918_v17 }
 0x757   :  { %v6490_v58 = vpop.f32.mrf.mxu0 }
 0x758   :  { %v2010_v57 = vadd.f32 %v6490_v58, %v7081_v28 }
 0x759   :  { %v2004_v7 = vpop.f32.mrf.mxu0 }
 0x75a   :  { %v2259_v60 = vsel %vm1120_vm2, %v2010_v57, -inf  ;;  %v2005_v54 = vadd.f32 %v2004_v7, %v7075_v26 }
 0x75b   :  { %2260 = vmax.xlane.f32.xlu1 %v2259_v60  ;;  %v6495_v43 = vpop.f32.mrf.mxu1 }
 0x75c   :  { %v2091_v12 = vadd.f32 %v6495_v43, %v7081_v28  ;;  %v2256_v41 = vsel %vm1120_vm2, %v2005_v54, -inf }
 0x75d   :  { %v2085_v59 = vpop.f32.mrf.mxu1 }
 0x75e   :  { %v2086_v13 = vadd.f32 %v2085_v59, %v7075_v26  ;;  %v2265_v62 = vsel %vm1120_vm2, %v2091_v12, -inf }
 0x75f   :  { %2257 = vmax.xlane.f32.xlu1 %v2256_v41  ;;  %2266 = vmax.xlane.f32.xlu0 %v2265_v62 }
 0x760   :  { %v2262_v5 = vsel %vm1120_vm2, %v2086_v13, -inf }
 0x763   :  { %2263 = vmax.xlane.f32.xlu1 %v2262_v5  ;;  %v6500_v11 = vpop.f32.mrf.mxu0 }
 0x764   :  { %v2172_v2 = vadd.f32 %v6500_v11, %v7081_v28 }
 0x765   :  { %v2166_v16 = vpop.f32.mrf.mxu0 }
 0x766   :  { %v2167_v18 = vadd.f32 %v2166_v16, %v7075_v26  ;;  %v2271_v19 = vsel %vm1120_vm2, %v2172_v2, -inf }
 0x767   :  { %2272 = vmax.xlane.f32.xlu0 %v2271_v19 }
 0x768   :  { %v2268_v0 = vsel %vm1120_vm2, %v2167_v18, -inf }
 0x76b   :  { %2269 = vmax.xlane.f32.xlu0 %v2268_v0  ;;  %v6505_v20 = vpop.f32.mrf.mxu1 }
 0x76c   :  { %v2253_v6 = vadd.f32 %v6505_v20, %v7081_v28 }
 0x76d   :  { %v2247_v36 = vpop.f32.mrf.mxu1 }
 0x76e   :  { %v2248_v39 = vadd.f32 %v2247_v36, %v7075_v26  ;;  %v2277_v3 = vsel %vm1120_vm2, %v2253_v6, -inf }
 0x76f   :  { %2278 = vmax.xlane.f32.xlu1 %v2277_v3 }
 0x770   :  { %v2274_v4 = vsel %vm1120_vm2, %v2248_v39, -inf }
 0x773   :  { %2275 = vmax.xlane.f32.xlu1 %v2274_v4  ;;  %v137_v4 = vld [vmem:[%s8287_s6 + $0x38] sm:$0xff] }
 0x781   :  { %168 = vperm.xlu0 %6730, %v134_v8   ;;  %v136_v8 = vld [vmem:[%s8287_s6 + $0x30] sm:$0xff] }
 0x784   :  { %173 = vperm.xlu1 %6731, %v135_v14   ;;  %v6029_v14 = vld [vmem:[%s8285_s8 + $0x28] sm:$0xff] }
 0x7e4   :  { %v2261_v21 = vpop.xlane.xlu1 %2260 }
 0x7e5   :  { %v2281_v1 = vsub.f32 %v2010_v57, %v2261_v21  ;;  %v6028_v21 = vld [vmem:[%s8285_s8 + $0x20] sm:$0xff] }
 0x7e7   :  { %v2290_v25 = vmul.f32 1.442695, %v2281_v1  ;;  %v6031_v1 = vld [vmem:[%s8285_s8 + $0x38] sm:$0xff] }
 0x7e8   :  { %v2258_v55 = vpop.xlane.xlu1 %2257  ;;  %v2267_v23 = vpop.xlane.xlu0 %2266 }
 0x7e9   :  { %6810 = vpow2.f32 %v2290_v25  ;;  %v2280_v27 = vsub.f32 %v2005_v54, %v2258_v55  ;;  %v2283_v63 = vsub.f32 %v2091_v12, %v2267_v23  ;;  %v6030_v25 = vld [vmem:[%s8285_s8 + $0x30] sm:$0xff]  ;;  %v395_v55 = vld [vmem:[%s8286_s13 + $0x38] sm:$0xff] }
 0x7ea   :  { %v394_v23 = vld [vmem:[%s8286_s13 + $0x30] sm:$0xff] }
 0x7eb   :  { %v2288_v48 = vmul.f32 1.442695, %v2280_v27  ;;  %v2294_v45 = vmul.f32 1.442695, %v2283_v63  ;;  %v419_v27 = vld [vmem:[%s8286_s13 + $0xf8] sm:$0xff]  ;;  %v418_v63 = vld [vmem:[%s8286_s13 + $0xf0] sm:$0xff] }
 0x7ec   :  { %v2264_v9 = vpop.xlane.xlu1 %2263 }
 0x7ed   :  { %6812 = vpow2.f32 %v2288_v48  ;;  %v2282_v24 = vsub.f32 %v2086_v13, %v2264_v9  ;;  %v393_v48 = vld [vmem:[%s8286_s13 + $0x28] sm:$0xff] }
 0x7ee   :  { %6814 = vpow2.f32 %v2294_v45  ;;  %v392_v45 = vld [vmem:[%s8286_s13 + $0x20] sm:$0xff]  ;;  %v417_v9 = vld [vmem:[%s8286_s13 + $0xe8] sm:$0xff] }
 0x7ef   :  { %v2292_v56 = vmul.f32 1.442695, %v2282_v24  ;;  %v416_v24 = vld [vmem:[%s8286_s13 + $0xe0] sm:$0xff] }
 0x7f0   :  { %v2273_v38 = vpop.xlane.xlu0 %2272 }
 0x7f1   :  { %6816 = vpow2.f32 %v2292_v56  ;;  %v2285_v35 = vsub.f32 %v2172_v2, %v2273_v38  ;;  %v2858_v56 = vld [vmem:[%s8289_s10 + $0x38] sm:$0xff]  ;;  %v2857_v38 = vld [vmem:[%s8289_s10 + $0x30] sm:$0xff] }
 0x7f3   :  { %v2298_v51 = vmul.f32 1.442695, %v2285_v35  ;;  %v2856_v35 = vld [vmem:[%s8289_s10 + $0x28] sm:$0xff] }
 0x7f4   :  { %v2270_v22 = vpop.xlane.xlu0 %2269 }
 0x7f5   :  { %6818 = vpow2.f32 %v2298_v51  ;;  %v2284_v61 = vsub.f32 %v2167_v18, %v2270_v22  ;;  %v2855_v51 = vld [vmem:[%s8289_s10 + $0x20] sm:$0xff]  ;;  %v2854_v22 = vld [vmem:[%s8289_s10 + $0x18] sm:$0xff] }
 0x7f6   :  { %v7465_v58 = vpop.eup %6810 }
 0x7f7   :  { %v2296_v57 = vmul.f32 1.442695, %v2284_v61  ;;  %v2307_v7 = vsel %vm1120_vm2, %v7465_v58, 0.0  ;;  %v2853_v61 = vld [vmem:[%s8289_s10 + $0x10] sm:$0xff] }
 0x7f8   :  { %2308 = vadd.xlane.f32.xlu0 %v2307_v7  ;;  %v2279_v60 = vpop.xlane.xlu1 %2278  ;;  %v2851_v7 = vld [vmem:[%s8289_s10] sm:$0xff] }
 0x7f9   :  { %6820 = vpow2.f32 %v2296_v57  ;;  %v2287_v54 = vsub.f32 %v2253_v6, %v2279_v60  ;;  %v2852_v57 = vld [vmem:[%s8289_s10 + $0x8] sm:$0xff] }
 0x7fa   :  { %v7469_v43 = vpop.eup %6812  ;;  %v3013_v60 = vld [vmem:[%s8290_s12 + $0x8] sm:$0xff] }
 0x7fb   :  { %v7471_v12 = vpop.eup %6814  ;;  %v2302_v41 = vmul.f32 1.442695, %v2287_v54  ;;  %v2304_v59 = vsel %vm1120_vm2, %v7469_v43, 0.0  ;;  %v3012_v54 = vld [vmem:[%s8290_s12] sm:$0xff] }
 0x7fc   :  { %2305 = vadd.xlane.f32.xlu0 %v2304_v59  ;;  %v2276_v13 = vpop.xlane.xlu1 %2275  ;;  %v2313_v62 = vsel %vm1120_vm2, %v7471_v12, 0.0  ;;  %v3014_v59 = vld [vmem:[%s8290_s12 + $0x10] sm:$0xff] }
 0x7fd   :  { %6822 = vpow2.f32 %v2302_v41  ;;  %v2286_v5 = vsub.f32 %v2248_v39, %v2276_v13  ;;  %2314 = vadd.xlane.f32.xlu1 %v2313_v62  ;;  %v3015_v41 = vld [vmem:[%s8290_s12 + $0x18] sm:$0xff]  ;;  %v398_v62 = vld [vmem:[%s8286_s13 + $0x50] sm:$0xff] }
 0x7fe   :  { %v7477_v11 = vpop.eup %6816  ;;  %v399_v13 = vld [vmem:[%s8286_s13 + $0x58] sm:$0xff] }
 0x7ff   :  { %v2300_v2 = vmul.f32 1.442695, %v2286_v5  ;;  %v2310_v16 = vsel %vm1120_vm2, %v7477_v11, 0.0  ;;  %v423_v5 = vld [vmem:[%s8286_s13 + $0x118] sm:$0xff] }
 0x801   :  { %6824 = vpow2.f32 %v2300_v2  ;;  %2311 = vadd.xlane.f32.xlu1 %v2310_v16  ;;  %v422_v2 = vld [vmem:[%s8286_s13 + $0x110] sm:$0xff]  ;;  %v397_v16 = vld [vmem:[%s8286_s13 + $0x48] sm:$0xff] }
 0x802   :  { %v7481_v18 = vpop.eup %6818 }
 0x803   :  { %v2319_v19 = vsel %vm1120_vm2, %v7481_v18, 0.0 }
 0x804   :  { %2320 = vadd.xlane.f32.xlu0 %v2319_v19  ;;  %v396_v19 = vld [vmem:[%s8286_s13 + $0x40] sm:$0xff] }
 0x806   :  { %v7485_v0 = vpop.eup %6820 }
 0x807   :  { %v2316_v20 = vsel %vm1120_vm2, %v7485_v0, 0.0 }
 0x808   :  { %2317 = vadd.xlane.f32.xlu0 %v2316_v20  ;;  %v421_v20 = vld [vmem:[%s8286_s13 + $0x108] sm:$0xff] }
 0x80a   :  { %v7489_v6 = vpop.eup %6822 }
 0x80b   :  { %v2325_v36 = vsel %vm1120_vm2, %v7489_v6, 0.0 }
 0x80c   :  { %2326 = vadd.xlane.f32.xlu1 %v2325_v36  ;;  %v420_v36 = vld [vmem:[%s8286_s13 + $0x100] sm:$0xff] }
 0x80e   :  { %v7493_v39 = vpop.eup %6824 }
 0x80f   :  { %v2322_v3 = vsel %vm1120_vm2, %v7493_v39, 0.0 }
 0x810   :  { %2323 = vadd.xlane.f32.xlu1 %v2322_v3  ;;  %v6085_v3 = vld [vmem:[%s8282_s4 + $0x88] sm:$0xff] }
 0x81e   :  { %183 = vperm.xlu0 %6730, %v137_v4   ;;  %v6084_v4 = vld [vmem:[%s8282_s4 + $0x80] sm:$0xff] }
 0x821   :  { %178 = vperm.xlu1 %6731, %v136_v8   ;;  %v6087_v8 = vld [vmem:[%s8282_s4 + $0x98] sm:$0xff] }
 0x822   :  { %2669 = vperm.xlu0 %6730, %v6029_v14   ;;  %v6086_v14 = vld [vmem:[%s8282_s4 + $0x90] sm:$0xff] }
 0x825   :  { %2664 = vperm.xlu1 %6731, %v6028_v21   ;;  %v6089_v21 = vld [vmem:[%s8282_s4 + $0xa8] sm:$0xff] }
 0x826   :  { %2679 = vperm.xlu0 %6730, %v6031_v1   ;;  %v6088_v1 = vld [vmem:[%s8282_s4 + $0xa0] sm:$0xff] }
 0x829   :  { %2674 = vperm.xlu1 %6731, %v6030_v25   ;;  %v6091_v25 = vld [vmem:[%s8282_s4 + $0xb8] sm:$0xff] }
 0x82a   :  { %2810 = vperm.xlu0 %6730, %v395_v55   ;;  %v6090_v55 = vld [vmem:[%s8282_s4 + $0xb0] sm:$0xff] }
 0x82d   :  { %2805 = vperm.xlu1 %6731, %v394_v23   ;;  %v169_v23 = vpop.permute.xlu0 %168 }
 0x82e   :  { %2834 = vperm.xlu0 %6730, %v419_v27  }
 0x831   :  { %2829 = vperm.xlu1 %6731, %v418_v63   ;;  %v174_v63 = vpop.permute.xlu1 %173 }
 0x832   :  { %2800 = vperm.xlu0 %6730, %v393_v48  }
 0x835   :  { %2795 = vperm.xlu1 %6731, %v392_v45  }
 0x836   :  { %2824 = vperm.xlu0 %6730, %v417_v9  }
 0x839   :  { %2819 = vperm.xlu1 %6731, %v416_v24  }
 0x83a   :  { %2896 = vperm.xlu0 %6730, %v2858_v56  }
 0x83d   :  { %2891 = vperm.xlu1 %6731, %v2857_v38  }
 0x83e   :  { %2886 = vperm.xlu0 %6730, %v2856_v35  }
 0x841   :  { %2881 = vperm.xlu1 %6731, %v2855_v51  }
 0x842   :  { %2876 = vperm.xlu0 %6730, %v2854_v22  }
 0x845   :  { %2871 = vperm.xlu1 %6731, %v2853_v61  }
 0x846   :  { %2866 = vperm.xlu0 %6730, %v2852_v57  }
 0x849   :  { %2861 = vperm.xlu1 %6731, %v2851_v7  }
 0x84a   :  { %3023 = vperm.xlu0 %6730, %v3013_v60   ;;  %v342_v60 = vadd.f32 %v7157_v30, %v169_v23  ;;  %v345_v30 = vadd.f32 %v7161_v32, %v174_v63 }
 0x84d   :  { %3018 = vperm.xlu1 %6731, %v3012_v54  }
 0x84e   :  { %3033 = vperm.xlu0 %6730, %v3015_v41  }
 0x851   :  { %3028 = vperm.xlu1 %6731, %v3014_v59  }
 0x852   :  { %3165 = vperm.xlu0 %6730, %v399_v13  }
 0x855   :  { %3160 = vperm.xlu1 %6731, %v398_v62  }
 0x856   :  { %3189 = vperm.xlu0 %6730, %v423_v5  }
 0x859   :  { %3184 = vperm.xlu1 %6731, %v422_v2  }
 0x85a   :  { %3155 = vperm.xlu0 %6730, %v397_v16  }
 0x85d   :  { %3150 = vperm.xlu1 %6731, %v396_v19  }
 0x85e   :  { %3179 = vperm.xlu0 %6730, %v421_v20  }
 0x861   :  { %3174 = vperm.xlu1 %6731, %v420_v36  }
 0x862   :  { %3239 = vperm.xlu0 %6730, %v6085_v3  }
 0x865   :  { %3234 = vperm.xlu1 %6731, %v6084_v4  }
 0x866   :  { %3249 = vperm.xlu0 %6730, %v6087_v8  }
 0x869   :  { %3244 = vperm.xlu1 %6731, %v6086_v14  }
 0x86a   :  { %3259 = vperm.xlu0 %6730, %v6089_v21  }
 0x86d   :  { %3254 = vperm.xlu1 %6731, %v6088_v1   ;;  %v6752_v1 = vld [vmem:[%s8291_s9] sm:$0xff]  }
 0x86e   :  { %3269 = vperm.xlu0 %6730, %v6091_v25  }
 0x871   :  { %3264 = vperm.xlu1 %6731, %v6090_v55  }
 0x881   :  { %v2309_v27 = vpop.xlane.xlu0 %2308 }
 0x882   :  { %6826 = vrcp.f32 %v2309_v27 }
 0x885   :  { %v2306_v48 = vpop.xlane.xlu0 %2305 }
 0x886   :  { %v2315_v45 = vpop.xlane.xlu1 %2314  ;;  %6828 = vrcp.f32 %v2306_v48 }
 0x887   :  { %6830 = vrcp.f32 %v2315_v45 }
 0x88a   :  { %v2312_v9 = vpop.xlane.xlu1 %2311 }
 0x88b   :  { %6832 = vrcp.f32 %v2312_v9 }
 0x88d   :  { %v2321_v24 = vpop.xlane.xlu0 %2320 }
 0x88e   :  { %6834 = vrcp.f32 %v2321_v24 }
 0x88f   :  { %v6827_v56 = vpop.eup %6826 }
 0x890   :  { %v2337_v38 = vmul.f32 %v6827_v56, %v7465_v58 }
 0x891   :  { %v2318_v35 = vpop.xlane.xlu0 %2317 }
 0x892   :  { %6836 = vrcp.f32 %v2318_v35  ;;  %6507 = vmatpush3.xpose.msk.msra.mxu0 %vm1120_vm2, %v2337_v38 }
 0x893   :  { %v6829_v51 = vpop.eup %6828  ;;  %6508 = vmatprep.subr.mxu0 %v6918_v17 }
 0x894   :  { %v6831_v22 = vpop.eup %6830  ;;  %v2336_v61 = vmul.f32 %v6829_v51, %v7469_v43 }
 0x895   :  { %v2327_v57 = vpop.xlane.xlu1 %2326  ;;  %v2339_v7 = vmul.f32 %v6831_v22, %v7471_v12 }
 0x896   :  { %6838 = vrcp.f32 %v2327_v57  ;;  %6509 = vmatpush3.xpose.msk.msra.mxu0 %vm1120_vm2, %v2336_v61 }
 0x897   :  { %6514 = vmatpush3.xpose.msk.msra.mxu1 %vm1120_vm2, %v2339_v7  ;;  %6520 = vmatprep.subr.mxu0 %v6918_v17 }
 0x898   :  { %v6833_v58 = vpop.eup %6832  ;;  %6515 = vmatprep.subr.mxu1 %v6918_v17 }
 0x899   :  { %v2324_v54 = vpop.xlane.xlu1 %2323  ;;  %6511 = vmatmul.mubr.msk.f32.vlgmr.msra.gmra.mxu0 %vm1120_vm2, %v342_v60  ;;  %v2338_v43 = vmul.f32 %v6833_v58, %v7477_v11  ;;  %v184_v2 = vpop.permute.xlu0 %183 }
 0x89a   :  { %6840 = vrcp.f32 %v2324_v54  ;;  %6524 = vmatprep.mubr.msk.f32.mxu0 %vm6919_vm3, %v6918_v17 }
 0x89b   :  { %v6835_v12 = vpop.eup %6834  ;;  %6516 = vmatpush3.xpose.msk.msra.mxu1 %vm1120_vm2, %v2338_v43 }
 0x89c   :  { %v2341_v41 = vmul.f32 %v6835_v12, %v7481_v18  ;;  %6527 = vmatprep.subr.mxu1 %v6918_v17 }
 0x89d   :  { %v179_v11 = vpop.permute.xlu1 %178  ;;  %v2670_v55 = vpop.permute.xlu0 %2669 }
 0x89e   :  { %6518 = vmatmul.mubr.msk.f32.vlgmr.msra.gmra.mxu1 %vm1120_vm2, %v345_v30  ;;  %6521 = vmatpush3.xpose.msk.msra.mxu0 %vm1120_vm2, %v2341_v41  ;;  %v350_v18 = vadd.f32 %v7155_v29, %v179_v11  ;;  %v6750_v29 = vld [vmem:[%s8288_s7 + $0x10] sm:$0xff]  }
 0x89f   :  { %v6837_v59 = vpop.eup %6836  ;;  %6522 = vmatprep.subr.mxu0 %v6918_v17  ;;  %6531 = vmatprep.mubr.msk.f32.mxu1 %vm6919_vm3, %v6918_v17 }
 0x8a0   :  { %v2340_v13 = vmul.f32 %v6837_v59, %v7485_v0  ;;  %v353_v0 = vadd.f32 %v7159_v31, %v184_v2  ;;  %v6751_v31 = vld [vmem:[%s8288_s7 + $0x18] sm:$0xff]  }
 0x8a1   :  { %v2665_v25 = vpop.permute.xlu1 %2664  ;;  %v2680_v24 = vpop.permute.xlu0 %2679 }
 0x8a2   :  { %6523 = vmatpush3.xpose.msk.msra.mxu0 %vm1120_vm2, %v2340_v13 }
 0x8a3   :  { %v6839_v32 = vpop.eup %6838 }
 0x8a4   :  { %v2343_v62 = vmul.f32 %v6839_v32, %v7489_v6 }
 0x8a5   :  { %6525 = vmatmul.mubr.msk.f32.vlgmr.msra.gmra.mxu0 %vm1120_vm2, %v350_v18  ;;  %v2675_v48 = vpop.permute.xlu1 %2674 }
 0x8a6   :  { %6528 = vmatpush3.xpose.msk.msra.mxu1 %vm1120_vm2, %v2343_v62  ;;  %6538 = vmatprep.mubr.msk.bf16.mxu0 %vm266_vm0, %v6750_v29 }
 0x8a7   :  { %v6841_v5 = vpop.eup %6840  ;;  %6529 = vmatprep.subr.mxu1 %v6918_v17 }
 0x8a8   :  { %v2342_v16 = vmul.f32 %v6841_v5, %v7493_v39 }
 0x8aa   :  { %6530 = vmatpush3.xpose.msk.msra.mxu1 %vm1120_vm2, %v2342_v16 }
 0x8ad   :  { %6532 = vmatmul.mubr.msk.f32.vlgmr.msra.gmra.mxu1 %vm1120_vm2, %v353_v0 }
 0x8ae   :  { %6546 = vmatprep.mubr.msk.bf16.mxu1 %vm266_vm0, %v6752_v1 }
 0x959   :  { %v2419_v6 = vpop.f32.mrf.mxu0 }
 0x95b   :  { %v6512_v19 = vpop.f32.mrf.mxu0 }
 0x95e   :  { %v2498_v20 = vpop.f32.mrf.mxu1 }
 0x95f   :  { %v2660_v21 = vpack.c.bf16 %v2498_v20, %v2419_v6 }
 0x960   :  { %v6519_v36 = vpop.f32.mrf.mxu1 }
 0x965   :  { %v2577_v3 = vpop.f32.mrf.mxu0 }
 0x967   :  { %v6526_v4 = vpop.f32.mrf.mxu0 }
 0x96d   :  { %v2656_v8 = vpop.f32.mrf.mxu1 }
 0x96e   :  { %v2661_v39 = vpack.c.bf16 %v2656_v8, %v2577_v3 }
 0x96f   :  { %v6533_v14 = vpop.f32.mrf.mxu1 }
 0x970   :  { %6534 = vmatprep.subr.bf16.mxu0 %v2661_v39 }
 0x971   :  { %6535 = vmatpush3.bf16.msra.mxu0 %v2661_v39 }
 0x972   :  { %6536 = vmatprep.subr.bf16.mxu0 %v2660_v21 }
 0x975   :  { %6537 = vmatpush3.bf16.msra.mxu0 %v2660_v21 }
 0x978   :  { %6539 = vmatmul.mubr.msk.bf16.vlgmr.msra.gmra.mxu0 %vm266_vm0, %v6751_v31 }
 0xa38   :  { %v6540_v23 = vpop.f32.mrf.mxu0 }
 0xa39   :  { %v2741_v9 = vadd.f32 %v6540_v23, %v2675_v48  ;;  %v2811_v23 = vpop.permute.xlu0 %2810 }
 0xa3a   :  { %v2732_v27 = vpop.f32.mrf.mxu0 }
 0xa3b   :  { %v2733_v63 = vadd.f32 %v2732_v27, %v2665_v25  ;;  %v2749_v22 = vadd.f32 %v2741_v9, %v7407_v47  ;;  %v2806_v27 = vpop.permute.xlu1 %2805 }
 0xa3c   :  { %v6541_v45 = vpop.f32.mrf.mxu0 }
 0xa3d   :  { %v2747_v38 = vadd.f32 %v2733_v63, %v7412_v50  ;;  %v2744_v35 = vadd.f32 %v6541_v45, %v2680_v24  ;;  %v2754_v54 = vsel %vm1120_vm2, %v2749_v22, 0.0  ;;  %v2835_v63 = vpop.permute.xlu0 %2834 }
 0xa3e   :  { %v2735_v56 = vpop.f32.mrf.mxu0 }
 0xa3f   :  { %v2736_v51 = vadd.f32 %v2735_v56, %v2670_v55  ;;  %v2751_v57 = vsel %vm1120_vm2, %v2747_v38, 0.0  ;;  %v2750_v7 = vadd.f32 %v2744_v35, %v7409_v49  ;;  %v2830_v48 = vpop.permute.xlu1 %2829 }
 0xa41   :  { %v2748_v61 = vadd.f32 %v2736_v51, %v7414_v52  ;;  %v2756_v12 = vsel %vm1120_vm2, %v2750_v7, 0.0  ;;  %v2801_v45 = vpop.permute.xlu0 %2800 }
 0xa43   :  { %v2752_v60 = vsel %vm1120_vm2, %v2748_v61, 0.0  ;;  %v2796_v9 = vpop.permute.xlu1 %2795 }
 0xa44   :  { %v2753_v58 = vadd.f32 %v2752_v60, %v2751_v57 }
 0xa45   :  { %v2825_v60 = vpop.permute.xlu0 %2824 }
 0xa46   :  { %v2755_v43 = vadd.f32 %v2754_v54, %v2753_v58 }
 0xa47   :  { %v2820_v58 = vpop.permute.xlu1 %2819 }
 0xa48   :  { %v2757_v30 = vadd.f32 %v2756_v12, %v2755_v43 }
 0xa4a   :  { %v2758_v50 = vrot.slane %v2757_v30, 4 }
 0xa4c   :  { %v2759_v41 = vadd.f32 %v2758_v50, %v2757_v30 }
 0xa4e   :  { %v2760_v59 = vrot.slane %v2759_v41, 2 }
 0xa50   :  { %v2761_v11 = vadd.f32 %v2760_v59, %v2759_v41  ;;  %v6753_v59 = vld [vmem:[%s8291_s9 + $0x8] sm:$0xff]  }
 0xa52   :  { %v2762_v47 = vrot.slane %v2761_v11, 1 }
 0xa54   :  { %v2763_v13 = vadd.f32 %v2762_v47, %v2761_v11  ;;  %v6754_v11 = vld [vmem:[%s8291_s9 + $0x10] sm:$0xff]   ;;  %v6755_v47 = vld [vmem:[%s8291_s9 + $0x18] sm:$0xff]  }
 0xa56   :  { %v2764_v52 = vmul.f32 0.03125, %v2763_v13  ;;  %v6756_v13 = vld [vmem:[%s8292_s11] sm:$0xff]  }
 0xa57   :  { %6562 = vmatprep.mubr.msk.bf16.mxu0 %vm3046_vm4, %v6756_v13 }
 0xa58   :  { %v2765_v32 = vsub.f32 %v2747_v38, %v2764_v52  ;;  %v2766_v18 = vsub.f32 %v2748_v61, %v2764_v52  ;;  %v2767_v62 = vsub.f32 %v2749_v22, %v2764_v52  ;;  %v2768_v49 = vsub.f32 %v2750_v7, %v2764_v52  ;;  %v2897_v52 = vpop.permute.xlu0 %2896 }
 0xa5a   :  { %v2769_v5 = vmul.f32 %v2765_v32, %v2765_v32  ;;  %v2770_v2 = vmul.f32 %v2766_v18, %v2766_v18  ;;  %v2771_v16 = vmul.f32 %v2767_v62, %v2767_v62  ;;  %v2772_v0 = vmul.f32 %v2768_v49, %v2768_v49 }
 0xa5c   :  { %v2773_v29 = vsel %vm1120_vm2, %v2769_v5, 0.0  ;;  %v2774_v6 = vsel %vm1120_vm2, %v2770_v2, 0.0  ;;  %v2776_v20 = vsel %vm1120_vm2, %v2771_v16, 0.0  ;;  %v2778_v3 = vsel %vm1120_vm2, %v2772_v0, 0.0  ;;  %v2887_v5 = vpop.permute.xlu0 %2886 }
 0xa5d   :  { %v2775_v19 = vadd.f32 %v2774_v6, %v2773_v29 }
 0xa5f   :  { %v2777_v36 = vadd.f32 %v2776_v20, %v2775_v19 }
 0xa60   :  { %v2877_v19 = vpop.permute.xlu0 %2876 }
 0xa61   :  { %v2779_v4 = vadd.f32 %v2778_v3, %v2777_v36 }
 0xa63   :  { %v2780_v8 = vrot.slane %v2779_v4, 4 }
 0xa65   :  { %v2781_v39 = vadd.f32 %v2780_v8, %v2779_v4 }
 0xa67   :  { %v2782_v14 = vrot.slane %v2781_v39, 2 }
 0xa69   :  { %v2783_v21 = vadd.f32 %v2782_v14, %v2781_v39 }
 0xa6b   :  { %v2784_v31 = vrot.slane %v2783_v21, 1 }
 0xa6d   :  { %v2785_v1 = vadd.f32 %v2784_v31, %v2783_v21 }
 0xa6f   :  { %v2786_v25 = vmul.f32 0.03125, %v2785_v1 }
 0xa71   :  { %v2787_v55 = vadd.f32 1e-06, %v2786_v25 }
 0xa73   :  { %6842 = vrsqrt.f32 %v2787_v55 }
 0xa80   :  { %v6843_v24 = vpop.eup %6842 }
 0xa81   :  { %v2790_v56 = vmul.f32 %v6843_v24, %v2766_v18  ;;  %v2791_v38 = vmul.f32 %v6843_v24, %v2767_v62  ;;  %v2792_v35 = vmul.f32 %v6843_v24, %v2768_v49  ;;  %v2789_v51 = vmul.f32 %v6843_v24, %v2765_v32  ;;  %v2892_v18 = vpop.permute.xlu1 %2891 }
 0xa83   :  { %v2815_v22 = vmul.f32 %v2806_v27, %v2791_v38  ;;  %v2816_v61 = vmul.f32 %v2811_v23, %v2792_v35  ;;  %v2813_v57 = vmul.f32 %v2796_v9, %v2789_v51  ;;  %v2814_v7 = vmul.f32 %v2801_v45, %v2790_v56  ;;  %v2867_v27 = vpop.permute.xlu0 %2866 }
 0xa85   :  { %v7681_v54 = vadd.f32 %v2830_v48, %v2815_v22  ;;  %v7683_v43 = vadd.f32 %v2835_v63, %v2816_v61  ;;  %v7685_v12 = vadd.f32 %v2820_v58, %v2813_v57  ;;  %v7687_v30 = vadd.f32 %v2825_v60, %v2814_v7  ;;  %v2882_v16 = vpop.permute.xlu1 %2881  ;;  %v6757_v61 = vld [vmem:[%s8292_s11 + $0x8] sm:$0xff]   ;;  %v6758_v57 = vld [vmem:[%s8280_s3 + $0x40] sm:$0xff]  }
 0xa87   :  { %v2850_v50 = vpack.c.bf16 %v7683_v43, %v7681_v54  ;;  %v2849_v41 = vpack.c.bf16 %v7687_v30, %v7685_v12  ;;  %v3024_v60 = vpop.permute.xlu0 %3023 }
 0xa89   :  { %6542 = vmatprep.subr.bf16.mxu1 %v2850_v50  ;;  %v2872_v4 = vpop.permute.xlu1 %2871 }
 0xa8a   :  { %6543 = vmatpush3.bf16.msra.mxu1 %v2850_v50 }
 0xa8b   :  { %6544 = vmatprep.subr.bf16.mxu1 %v2849_v41  ;;  %v3034_v13 = vpop.permute.xlu0 %3033 }
 0xa8d   :  { %v2862_v9 = vpop.permute.xlu1 %2861 }
 0xa8e   :  { %6545 = vmatpush3.bf16.msra.mxu1 %v2849_v41 }
 0xa91   :  { %6547 = vmatmul.mubr.msk.bf16.vlgmr.msra.gmra.mxu1 %vm266_vm0, %v6753_v59  ;;  %v3019_v7 = vpop.permute.xlu1 %3018 }
 0xa92   :  { %6550 = vmatprep.mubr.msk.bf16.mxu1 %vm266_vm0, %v6754_v11 }
 0xa95   :  { %v3029_v59 = vpop.permute.xlu1 %3028 }
 0xa99   :  { %6551 = vmatmul.mubr.msk.bf16.gmra.mxu1 %vm266_vm0, %v6755_v47 }
 0xa9a   :  { %6570 = vmatprep.mubr.msk.bf16.mxu1 %vm266_vm0, %v6758_v57 }
 0xb51   :  { %v6548_v32 = vpop.f32.mrf.mxu1 }
 0xb52   :  { %v2974_v1 = vadd.f32 %v6548_v32, %v2872_v4 }
 0xb53   :  { %v2965_v62 = vpop.f32.mrf.mxu1 }
 0xb54   :  { %v2998_v24 = vmax.f32 %v2974_v1, 0.0  ;;  %v2966_v56 = vadd.f32 %v2965_v62, %v2862_v9 }
 0xb55   :  { %v6549_v49 = vpop.f32.mrf.mxu1 }
 0xb56   :  { %v2977_v39 = vadd.f32 %v6549_v49, %v2877_v19  ;;  %v2996_v51 = vmax.f32 %v2966_v56, 0.0 }
 0xb57   :  { %v2968_v2 = vpop.f32.mrf.mxu1 }
 0xb58   :  { %v2999_v63 = vmax.f32 %v2977_v39, 0.0  ;;  %v2969_v48 = vadd.f32 %v2968_v2, %v2867_v27 }
 0xb59   :  { %v6552_v0 = vpop.f32.mrf.mxu1 }
 0xb5a   :  { %v2990_v6 = vadd.f32 %v6552_v0, %v2892_v18  ;;  %v3009_v38 = vpack.c.bf16 %v2999_v63, %v2998_v24  ;;  %v2997_v35 = vmax.f32 %v2969_v48, 0.0 }
 0xb5b   :  { %v2981_v29 = vpop.f32.mrf.mxu1 }
 0xb5c   :  { %v2982_v36 = vadd.f32 %v2981_v29, %v2882_v16  ;;  %v3002_v14 = vmax.f32 %v2990_v6, 0.0  ;;  %v3008_v22 = vpack.c.bf16 %v2997_v35, %v2996_v51 }
 0xb5d   :  { %v6553_v20 = vpop.f32.mrf.mxu1 }
 0xb5e   :  { %v2993_v3 = vadd.f32 %v6553_v20, %v2897_v52  ;;  %v3000_v25 = vmax.f32 %v2982_v36, 0.0 }
 0xb5f   :  { %v2984_v8 = vpop.f32.mrf.mxu1 }
 0xb60   :  { %v3003_v21 = vmax.f32 %v2993_v3, 0.0  ;;  %v2985_v31 = vadd.f32 %v2984_v8, %v2887_v5 }
 0xb62   :  { %v3011_v55 = vpack.c.bf16 %v3003_v21, %v3002_v14  ;;  %v3001_v23 = vmax.f32 %v2985_v31, 0.0 }
 0xb64   :  { %v3010_v45 = vpack.c.bf16 %v3001_v23, %v3000_v25  ;;  %6554 = vmatprep.subr.bf16.mxu0 %v3011_v55 }
 0xb65   :  { %6555 = vmatpush3.bf16.msra.mxu0 %v3011_v55 }
 0xb66   :  { %6556 = vmatprep.subr.bf16.mxu0 %v3010_v45 }
 0xb69   :  { %6557 = vmatpush3.bf16.msra.mxu0 %v3010_v45 }
 0xb6a   :  { %6558 = vmatprep.subr.bf16.mxu0 %v3009_v38 }
 0xb6d   :  { %6559 = vmatpush3.bf16.msra.mxu0 %v3009_v38 }
 0xb6e   :  { %6560 = vmatprep.subr.bf16.mxu0 %v3008_v22 }
 0xb71   :  { %6561 = vmatpush3.bf16.msra.mxu0 %v3008_v22 }
 0xb74   :  { %6563 = vmatmul.mubr.msk.bf16.vlgmr.msra.gmra.mxu0 %vm3046_vm4, %v6757_v61 }
 0xc34   :  { %v6564_v58 = vpop.f32.mrf.mxu0 }
 0xc35   :  { %v3096_v47 = vadd.f32 %v6564_v58, %v3029_v59  ;;  %v3166_v58 = vpop.permute.xlu0 %3165 }
 0xc36   :  { %v3087_v50 = vpop.f32.mrf.mxu0 }
 0xc37   :  { %v3088_v41 = vadd.f32 %v3087_v50, %v3019_v7  ;;  %v3104_v49 = vadd.f32 %v3096_v47, %v7681_v54  ;;  %v3161_v50 = vpop.permute.xlu1 %3160 }
 0xc38   :  { %v6565_v11 = vpop.f32.mrf.mxu0 }
 0xc39   :  { %v3102_v32 = vadd.f32 %v3088_v41, %v7685_v12  ;;  %v3099_v18 = vadd.f32 %v6565_v11, %v3034_v13  ;;  %v3109_v6 = vsel %vm1120_vm2, %v3104_v49, 0.0  ;;  %v3190_v41 = vpop.permute.xlu0 %3189 }
 0xc3a   :  { %v3090_v52 = vpop.f32.mrf.mxu0 }
 0xc3b   :  { %v3091_v62 = vadd.f32 %v3090_v52, %v3024_v60  ;;  %v3106_v2 = vsel %vm1120_vm2, %v3102_v32, 0.0  ;;  %v3105_v16 = vadd.f32 %v3099_v18, %v7683_v43  ;;  %v3185_v59 = vpop.permute.xlu1 %3184 }
 0xc3d   :  { %v3103_v5 = vadd.f32 %v3091_v62, %v7687_v30  ;;  %v3111_v20 = vsel %vm1120_vm2, %v3105_v16, 0.0  ;;  %v3156_v11 = vpop.permute.xlu0 %3155 }
 0xc3f   :  { %v3107_v0 = vsel %vm1120_vm2, %v3103_v5, 0.0  ;;  %v3151_v47 = vpop.permute.xlu1 %3150 }
 0xc40   :  { %v3108_v29 = vadd.f32 %v3107_v0, %v3106_v2 }
 0xc41   :  { %v3180_v0 = vpop.permute.xlu0 %3179 }
 0xc42   :  { %v3110_v19 = vadd.f32 %v3109_v6, %v3108_v29 }
 0xc43   :  { %v3175_v29 = vpop.permute.xlu1 %3174 }
 0xc44   :  { %v3112_v36 = vadd.f32 %v3111_v20, %v3110_v19 }
 0xc46   :  { %v3113_v12 = vrot.slane %v3112_v36, 4 }
 0xc48   :  { %v3114_v3 = vadd.f32 %v3113_v12, %v3112_v36 }
 0xc4a   :  { %v3115_v4 = vrot.slane %v3114_v3, 2 }
 0xc4c   :  { %v3116_v8 = vadd.f32 %v3115_v4, %v3114_v3  ;;  %v6759_v4 = vld [vmem:[%s8280_s3 + $0x48] sm:$0xff]  }
 0xc4e   :  { %v3117_v54 = vrot.slane %v3116_v8, 1 }
 0xc50   :  { %v3118_v39 = vadd.f32 %v3117_v54, %v3116_v8  ;;  %v6760_v8 = vld [vmem:[%s8280_s3 + $0x50] sm:$0xff]   ;;  %v6761_v54 = vld [vmem:[%s8280_s3 + $0x58] sm:$0xff]  }
 0xc52   :  { %v3119_v30 = vmul.f32 0.03125, %v3118_v39  ;;  %v3235_v39 = vpop.permute.xlu1 %3234 }
 0xc54   :  { %v3120_v14 = vsub.f32 %v3102_v32, %v3119_v30  ;;  %v3121_v21 = vsub.f32 %v3103_v5, %v3119_v30  ;;  %v3122_v31 = vsub.f32 %v3104_v49, %v3119_v30  ;;  %v3123_v43 = vsub.f32 %v3105_v16, %v3119_v30 }
 0xc56   :  { %v3124_v1 = vmul.f32 %v3120_v14, %v3120_v14  ;;  %v3125_v25 = vmul.f32 %v3121_v21, %v3121_v21  ;;  %v3126_v55 = vmul.f32 %v3122_v31, %v3122_v31  ;;  %v3127_v23 = vmul.f32 %v3123_v43, %v3123_v43 }
 0xc58   :  { %v3128_v27 = vsel %vm1120_vm2, %v3124_v1, 0.0  ;;  %v3129_v63 = vsel %vm1120_vm2, %v3125_v25, 0.0  ;;  %v3131_v45 = vsel %vm1120_vm2, %v3126_v55, 0.0  ;;  %v3133_v24 = vsel %vm1120_vm2, %v3127_v23, 0.0 }
 0xc59   :  { %v3130_v48 = vadd.f32 %v3129_v63, %v3128_v27 }
 0xc5b   :  { %v3132_v9 = vadd.f32 %v3131_v45, %v3130_v48 }
 0xc5d   :  { %v3134_v56 = vadd.f32 %v3133_v24, %v3132_v9 }
 0xc5f   :  { %v3135_v38 = vrot.slane %v3134_v56, 4 }
 0xc61   :  { %v3136_v35 = vadd.f32 %v3135_v38, %v3134_v56 }
 0xc63   :  { %v3137_v51 = vrot.slane %v3136_v35, 2 }
 0xc65   :  { %v3138_v22 = vadd.f32 %v3137_v51, %v3136_v35 }
 0xc67   :  { %v3139_v61 = vrot.slane %v3138_v22, 1 }
 0xc69   :  { %v3140_v57 = vadd.f32 %v3139_v61, %v3138_v22  ;;  %v6762_v22 = vld [vmem:[%s8280_s3 + $0x60] sm:$0xff]   ;;  %v6763_v61 = vld [vmem:[%s8280_s3 + $0x68] sm:$0xff]  }
 0xc6b   :  { %v3141_v7 = vmul.f32 0.03125, %v3140_v57 }
 0xc6d   :  { %v3142_v60 = vadd.f32 1e-06, %v3141_v7 }
 0xc6f   :  { %6844 = vrsqrt.f32 %v3142_v60 }
 0xc7c   :  { %v6845_v13 = vpop.eup %6844 }
 0xc7d   :  { %v3145_v52 = vmul.f32 %v6845_v13, %v3121_v21  ;;  %v3146_v32 = vmul.f32 %v6845_v13, %v3122_v31  ;;  %v3147_v18 = vmul.f32 %v6845_v13, %v3123_v43  ;;  %v3144_v62 = vmul.f32 %v6845_v13, %v3120_v14  ;;  %v3240_v14 = vpop.permute.xlu0 %3239  ;;  %v3245_v43 = vpop.permute.xlu1 %3244 }
 0xc7f   :  { %v3170_v49 = vmul.f32 %v3161_v50, %v3146_v32  ;;  %v3171_v5 = vmul.f32 %v3166_v58, %v3147_v18  ;;  %v3168_v2 = vmul.f32 %v3151_v47, %v3144_v62  ;;  %v3169_v16 = vmul.f32 %v3156_v11, %v3145_v52 }
 0xc81   :  { %v7729_v6 = vadd.f32 %v3185_v59, %v3170_v49  ;;  %v7731_v19 = vadd.f32 %v3190_v41, %v3171_v5  ;;  %v7733_v20 = vadd.f32 %v3175_v29, %v3168_v2  ;;  %v7735_v36 = vadd.f32 %v3180_v0, %v3169_v16  ;;  %v3250_v23 = vpop.permute.xlu0 %3249  ;;  %v3255_v63 = vpop.permute.xlu1 %3254 }
 0xc83   :  { %v3231_v12 = vpack.c.bf16 %v7731_v19, %v7729_v6  ;;  %v3230_v3 = vpack.c.bf16 %v7735_v36, %v7733_v20 }
 0xc85   :  { %6566 = vmatprep.subr.bf16.mxu1 %v3231_v12  ;;  %v3260_v56 = vpop.permute.xlu0 %3259  ;;  %v3265_v57 = vpop.permute.xlu1 %3264 }
 0xc86   :  { %6567 = vmatpush3.bf16.msra.mxu1 %v3231_v12 }
 0xc87   :  { %6568 = vmatprep.subr.bf16.mxu1 %v3230_v3 }
 0xc89   :  { %v3270_v7 = vpop.permute.xlu0 %3269 }
 0xc8a   :  { %6569 = vmatpush3.bf16.msra.mxu1 %v3230_v3 }
 0xc8b   :  { %6602 = vmatprep.subr.mxu1 %v6918_v17 }
 0xc8d   :  { %6571 = vmatmul.mubr.msk.bf16.vlgmr.msra.gmra.mxu1 %vm266_vm0, %v6759_v4 }
 0xc8e   :  { %6574 = vmatprep.mubr.msk.bf16.mxu1 %vm266_vm0, %v6760_v8 }
 0xc95   :  { %6575 = vmatmul.mubr.msk.bf16.gmra.mxu1 %vm266_vm0, %v6761_v54 }
 0xc96   :  { %6578 = vmatprep.mubr.msk.bf16.mxu1 %vm266_vm0, %v6762_v22 }
 0xc9d   :  { %6579 = vmatmul.mubr.msk.bf16.gmra.mxu1 %vm266_vm0, %v6763_v61 }
 0xc9e   :  { %6606 = vmatprep.mubr.msk.f32.mxu1 %vm6919_vm3, %v6918_v17 }
 0xd4d   :  { %v6572_v30 = vpop.f32.mrf.mxu1 }
 0xd4e   :  { %v3383_v9 = vadd.f32 %v6572_v30, %v3245_v43 }
 0xd4f   :  { %v3374_v21 = vpop.f32.mrf.mxu1 }
 0xd50   :  { %v3375_v31 = vadd.f32 %v3374_v21, %v3235_v39 }
 0xd51   :  { %v6573_v1 = vpop.f32.mrf.mxu1 }
 0xd52   :  { %3431 = vxpose.xlu1.b32.start.end [1/1] (short) (narrow) %v3375_v31, 16  ;;  %v3386_v51 = vadd.f32 %v6573_v1, %v3250_v23 }
 0xd53   :  { %v3377_v25 = vpop.f32.mrf.mxu1 }
 0xd54   :  { %v3378_v55 = vadd.f32 %v3377_v25, %v3240_v14 }
 0xd55   :  { %v6576_v27 = vpop.f32.mrf.mxu1 }
 0xd56   :  { %3463 = vxpose.xlu0.b32.start.end [1/1] (short) (narrow) %v3378_v55, 16  ;;  %v3399_v41 = vadd.f32 %v6576_v27, %v3265_v57 }
 0xd57   :  { %v3390_v48 = vpop.f32.mrf.mxu1 }
 0xd58   :  { %v3391_v45 = vadd.f32 %v3390_v48, %v3255_v63  ;;  %v6092_v63 = vld [vmem:[%s8282_s4 + $0xc0] sm:$0xff] }
 0xd59   :  { %v6577_v24 = vpop.f32.mrf.mxu1 }
 0xd5a   :  { %6582 = vmatprep.subr.mxu0 %v3391_v45  ;;  %v3402_v11 = vadd.f32 %v6577_v24, %v3270_v7 }
 0xd5b   :  { %v3393_v38 = vpop.f32.mrf.mxu1  ;;  %6583 = vmatpush3.msra.mxu0 %v3391_v45  ;;  %3495 = vxpose.xlu0.b32.start.end [1/1] (short) (narrow) %v3383_v9, 16 }
 0xd5c   :  { %v3394_v35 = vadd.f32 %v3393_v38, %v3260_v56 }
 0xd5e   :  { %6587 = vmatprep.subr.mxu0 %v3394_v35 }
 0xd60   :  { %3527 = vxpose.xlu0.b32.start.end [1/1] (short) (narrow) %v3386_v51, 16 }
 0xdce   :  { %v3447_v60 = vpop.trf.xlu1 }
 0xdcf   :  { %6584 = vmatprep.mubr.msk.f32.mxu0 %vm795_vm9, %v3447_v60 }
 0xdd2   :  { %v3448_v58 = vpop.trf.xlu1  ;;  %v3479_v50 = vpop.trf.xlu0 }
 0xdd3   :  { %6585 = vmatmul.mubr.msk.f32.vlgmr.msra.gmra.mxu0 %vm795_vm9, %v3448_v58 }
 0xdd4   :  { %6588 = vmatpush3.msra.mxu0 %v3394_v35  ;;  %6589 = vmatprep.mubr.msk.f32.mxu0 %vm795_vm9, %v3479_v50 }
 0xdd5   :  { %6592 = vmatprep.subr.mxu0 %v3399_v41 }
 0xdd6   :  { %v3480_v59 = vpop.trf.xlu0 }
 0xdd7   :  { %6590 = vmatmul.mubr.msk.f32.vlgmr.msra.gmra.mxu0 %vm795_vm9, %v3480_v59 }
 0xdd8   :  { %6593 = vmatpush3.msra.mxu0 %v3399_v41 }
 0xdd9   :  { %6597 = vmatprep.subr.mxu0 %v3402_v11 }
 0xdda   :  { %v3511_v47 = vpop.trf.xlu0 }
 0xddb   :  { %6594 = vmatprep.mubr.msk.f32.mxu0 %vm795_vm9, %v3511_v47 }
 0xdde   :  { %v3512_v13 = vpop.trf.xlu0 }
 0xddf   :  { %6595 = vmatmul.mubr.msk.f32.vlgmr.msra.gmra.mxu0 %vm795_vm9, %v3512_v13 }
 0xde0   :  { %6598 = vmatpush3.msra.mxu0 %v3402_v11 }
 0xde1   :  { %6609 = vmatprep.subr.mxu0 %v6918_v17 }
 0xde2   :  { %v3543_v52 = vpop.trf.xlu0 }
 0xde3   :  { %6599 = vmatprep.mubr.msk.f32.mxu0 %vm795_vm9, %v3543_v52 }
 0xde6   :  { %v3544_v32 = vpop.trf.xlu0 }
 0xde7   :  { %6600 = vmatmul.mubr.msk.f32.vlgmr.msra.gmra.mxu0 %vm795_vm9, %v3544_v32 }
 0xde8   :  { %6613 = vmatprep.mubr.msk.f32.mxu0 %vm6919_vm3, %v6918_v17 }
 0xe93   :  { %v6586_v18 = vpop.f32.mrf.mxu0 }
 0xe94   :  { %v3637_v62 = vadd.f32 %v6586_v18, %v7190_v15 }
 0xe95   :  { %v3631_v49 = vpop.f32.mrf.mxu0 }
 0xe96   :  { %v3632_v5 = vadd.f32 %v3631_v49, %v7197_v10  ;;  %v3886_v2 = vsel %vm1120_vm2, %v3637_v62, -inf }
 0xe97   :  { %3887 = vmax.xlane.f32.xlu1 %v3886_v2  ;;  %v6591_v16 = vpop.f32.mrf.mxu0 }
 0xe98   :  { %v3718_v0 = vadd.f32 %v6591_v16, %v7190_v15  ;;  %v3883_v29 = vsel %vm1120_vm2, %v3632_v5, -inf }
 0xe99   :  { %v3712_v12 = vpop.f32.mrf.mxu0 }
 0xe9a   :  { %v3892_v3 = vsel %vm1120_vm2, %v3718_v0, -inf  ;;  %v3713_v4 = vadd.f32 %v3712_v12, %v7197_v10 }
 0xe9b   :  { %3884 = vmax.xlane.f32.xlu1 %v3883_v29  ;;  %3893 = vmax.xlane.f32.xlu0 %v3892_v3 }
 0xe9c   :  { %v3889_v8 = vsel %vm1120_vm2, %v3713_v4, -inf }
 0xe9f   :  { %3890 = vmax.xlane.f32.xlu1 %v3889_v8  ;;  %v6596_v54 = vpop.f32.mrf.mxu0 }
 0xea0   :  { %v3799_v39 = vadd.f32 %v6596_v54, %v7190_v15 }
 0xea1   :  { %v3793_v30 = vpop.f32.mrf.mxu0 }
 0xea2   :  { %v3898_v14 = vsel %vm1120_vm2, %v3799_v39, -inf  ;;  %v3794_v21 = vadd.f32 %v3793_v30, %v7197_v10 }
 0xea3   :  { %3899 = vmax.xlane.f32.xlu1 %v3898_v14 }
 0xea4   :  { %v3895_v31 = vsel %vm1120_vm2, %v3794_v21, -inf }
 0xea7   :  { %3896 = vmax.xlane.f32.xlu1 %v3895_v31  ;;  %v6601_v43 = vpop.f32.mrf.mxu0  ;;  %v6095_v31 = vld [vmem:[%s8282_s4 + $0xd8] sm:$0xff] }
 0xea8   :  { %v3880_v1 = vadd.f32 %v6601_v43, %v7190_v15  ;;  %v6117_v43 = vld [vmem:[%s8285_s8 + $0x48] sm:$0xff] }
 0xea9   :  { %v3874_v25 = vpop.f32.mrf.mxu0 }
 0xeaa   :  { %v3904_v55 = vsel %vm1120_vm2, %v3880_v1, -inf  ;;  %v3875_v23 = vadd.f32 %v3874_v25, %v7197_v10  ;;  %v6093_v25 = vld [vmem:[%s8282_s4 + $0xc8] sm:$0xff] }
 0xeab   :  { %3905 = vmax.xlane.f32.xlu0 %v3904_v55  ;;  %v403_v55 = vld [vmem:[%s8286_s13 + $0x78] sm:$0xff] }
 0xeac   :  { %v3901_v27 = vsel %vm1120_vm2, %v3875_v23, -inf }
 0xeaf   :  { %3902 = vmax.xlane.f32.xlu0 %v3901_v27  ;;  %v427_v27 = vld [vmem:[%s8286_s13 + $0x138] sm:$0xff] }
 0xeb8   :  { %3274 = vperm.xlu1 %6731, %v6092_v63   ;;  %v6118_v63 = vld [vmem:[%s8285_s8 + $0x50] sm:$0xff] }
 0xf20   :  { %v3888_v48 = vpop.xlane.xlu1 %3887 }
 0xf21   :  { %v3908_v45 = vsub.f32 %v3637_v62, %v3888_v48  ;;  %v401_v48 = vld [vmem:[%s8286_s13 + $0x68] sm:$0xff] }
 0xf23   :  { %v3917_v9 = vmul.f32 1.442695, %v3908_v45  ;;  %v402_v45 = vld [vmem:[%s8286_s13 + $0x70] sm:$0xff] }
 0xf24   :  { %v3885_v24 = vpop.xlane.xlu1 %3884  ;;  %v3894_v56 = vpop.xlane.xlu0 %3893 }
 0xf25   :  { %6846 = vpow2.f32 %v3917_v9  ;;  %v3907_v15 = vsub.f32 %v3632_v5, %v3885_v24  ;;  %v3910_v38 = vsub.f32 %v3718_v0, %v3894_v56  ;;  %v425_v9 = vld [vmem:[%s8286_s13 + $0x128] sm:$0xff]  ;;  %v426_v24 = vld [vmem:[%s8286_s13 + $0x130] sm:$0xff] }
 0xf26   :  { %v6097_v56 = vld [vmem:[%s8282_s4 + $0xe8] sm:$0xff] }
 0xf27   :  { %v3915_v35 = vmul.f32 1.442695, %v3907_v15  ;;  %v3921_v51 = vmul.f32 1.442695, %v3910_v38  ;;  %v400_v15 = vld [vmem:[%s8286_s13 + $0x60] sm:$0xff]  ;;  %v6099_v38 = vld [vmem:[%s8282_s4 + $0xf8] sm:$0xff] }
 0xf28   :  { %v3891_v10 = vpop.xlane.xlu1 %3890 }
 0xf29   :  { %6848 = vpow2.f32 %v3915_v35  ;;  %v3909_v22 = vsub.f32 %v3713_v4, %v3891_v10  ;;  %v424_v35 = vld [vmem:[%s8286_s13 + $0x120] sm:$0xff] }
 0xf2a   :  { %6850 = vpow2.f32 %v3921_v51  ;;  %v139_v51 = vld [vmem:[%s8287_s6 + $0x48] sm:$0xff]  ;;  %v6096_v10 = vld [vmem:[%s8282_s4 + $0xe0] sm:$0xff] }
 0xf2b   :  { %v3919_v61 = vmul.f32 1.442695, %v3909_v22  ;;  %v141_v22 = vld [vmem:[%s8287_s6 + $0x58] sm:$0xff] }
 0xf2c   :  { %v3900_v57 = vpop.xlane.xlu1 %3899 }
 0xf2d   :  { %6852 = vpow2.f32 %v3919_v61  ;;  %v3912_v7 = vsub.f32 %v3799_v39, %v3900_v57  ;;  %v6098_v61 = vld [vmem:[%s8282_s4 + $0xf0] sm:$0xff]  ;;  %v138_v57 = vld [vmem:[%s8287_s6 + $0x40] sm:$0xff] }
 0xf2f   :  { %v3925_v60 = vmul.f32 1.442695, %v3912_v7  ;;  %v140_v7 = vld [vmem:[%s8287_s6 + $0x50] sm:$0xff] }
 0xf30   :  { %v3897_v58 = vpop.xlane.xlu1 %3896 }
 0xf31   :  { %6854 = vpow2.f32 %v3925_v60  ;;  %v3911_v50 = vsub.f32 %v3794_v21, %v3897_v58  ;;  %v6094_v21 = vld [vmem:[%s8282_s4 + $0xd0] sm:$0xff] }
 0xf32   :  { %v7794_v41 = vpop.eup %6846 }
 0xf33   :  { %v3923_v59 = vmul.f32 1.442695, %v3911_v50  ;;  %v3934_v11 = vsel %vm1120_vm2, %v7794_v41, 0.0 }
 0xf34   :  { %3935 = vadd.xlane.f32.xlu1 %v3934_v11  ;;  %v3906_v47 = vpop.xlane.xlu0 %3905  ;;  %v3275_v60 = vpop.permute.xlu1 %3274 }
 0xf35   :  { %6856 = vpow2.f32 %v3923_v59  ;;  %v3914_v13 = vsub.f32 %v3880_v1, %v3906_v47  ;;  %v6119_v1 = vld [vmem:[%s8285_s8 + $0x58] sm:$0xff] }
 0xf36   :  { %v7798_v52 = vpop.eup %6848 }
 0xf37   :  { %v7800_v32 = vpop.eup %6850  ;;  %v3929_v18 = vmul.f32 1.442695, %v3914_v13  ;;  %v3931_v62 = vsel %vm1120_vm2, %v7798_v52, 0.0 }
 0xf38   :  { %3932 = vadd.xlane.f32.xlu1 %v3931_v62  ;;  %v3940_v49 = vsel %vm1120_vm2, %v7800_v32, 0.0  ;;  %v3903_v5 = vpop.xlane.xlu0 %3902 }
 0xf39   :  { %6858 = vpow2.f32 %v3929_v18  ;;  %3941 = vadd.xlane.f32.xlu0 %v3940_v49  ;;  %v3913_v2 = vsub.f32 %v3875_v23, %v3903_v5  ;;  %v6116_v23 = vld [vmem:[%s8285_s8 + $0x40] sm:$0xff]  ;;  %v6580_v18 = vpop.f32.mrf.mxu1 }
 0xf3a   :  { %v7806_v16 = vpop.eup %6852 }
 0xf3b   :  { %v3927_v0 = vmul.f32 1.442695, %v3913_v2  ;;  %v3937_v29 = vsel %vm1120_vm2, %v7806_v16, 0.0 }
 0xf3d   :  { %6860 = vpow2.f32 %v3927_v0  ;;  %3938 = vadd.xlane.f32.xlu0 %v3937_v29  ;;  %v3406_v0 = vpop.f32.mrf.mxu1 }
 0xf3e   :  { %v7810_v12 = vpop.eup %6854 }
 0xf3f   :  { %v3946_v3 = vsel %vm1120_vm2, %v7810_v12, 0.0 }
 0xf40   :  { %3947 = vadd.xlane.f32.xlu1 %v3946_v3 }
 0xf42   :  { %v7814_v4 = vpop.eup %6856 }
 0xf43   :  { %v3943_v8 = vsel %vm1120_vm2, %v7814_v4, 0.0 }
 0xf44   :  { %3944 = vadd.xlane.f32.xlu1 %v3943_v8 }
 0xf46   :  { %v7818_v54 = vpop.eup %6858 }
 0xf47   :  { %v3952_v39 = vsel %vm1120_vm2, %v7818_v54, 0.0 }
 0xf48   :  { %3953 = vadd.xlane.f32.xlu0 %v3952_v39  ;;  %v3407_v39 = vadd.f32 %v3406_v0, %v3275_v60 }
 0xf4a   :  { %v7822_v30 = vpop.eup %6860 }
 0xf4b   :  { %v3949_v14 = vsel %vm1120_vm2, %v7822_v30, 0.0 }
 0xf4c   :  { %3950 = vadd.xlane.f32.xlu0 %v3949_v14 }
 0xf55   :  { %3284 = vperm.xlu1 %6731, %v6094_v21  }
 0xf59   :  { %3289 = vperm.xlu1 %6731, %v6095_v31  }
 0xf5d   :  { %4296 = vperm.xlu1 %6731, %v6117_v43   ;;  %v6581_v43 = vpop.f32.mrf.mxu1 }
 0xf61   :  { %4306 = vperm.xlu1 %6731, %v6119_v1  }
 0xf62   :  { %3279 = vperm.xlu0 %6730, %v6093_v25   ;;  %v3409_v25 = vpop.f32.mrf.mxu1 }
 0xf65   :  { %4437 = vperm.xlu1 %6731, %v403_v55  }
 0xf66   :  { %4291 = vperm.xlu0 %6730, %v6116_v23  }
 0xf69   :  { %4461 = vperm.xlu1 %6731, %v427_v27  }
 0xf6a   :  { %4301 = vperm.xlu0 %6730, %v6118_v63  }
 0xf6d   :  { %4427 = vperm.xlu1 %6731, %v401_v48  }
 0xf6e   :  { %4432 = vperm.xlu0 %6730, %v402_v45  }
 0xf71   :  { %4451 = vperm.xlu1 %6731, %v425_v9  }
 0xf72   :  { %4456 = vperm.xlu0 %6730, %v426_v24  }
 0xf75   :  { %4477 = vperm.xlu1 %6731, %v6097_v56  }
 0xf76   :  { %4422 = vperm.xlu0 %6730, %v400_v15  }
 0xf79   :  { %4487 = vperm.xlu1 %6731, %v6099_v38  }
 0xf7a   :  { %4446 = vperm.xlu0 %6730, %v424_v35  }
 0xf7d   :  { %193 = vperm.xlu1 %6731, %v139_v51  }
 0xf7e   :  { %4472 = vperm.xlu0 %6730, %v6096_v10  }
 0xf81   :  { %203 = vperm.xlu1 %6731, %v141_v22  }
 0xf82   :  { %4482 = vperm.xlu0 %6730, %v6098_v61  }
 0xf86   :  { %188 = vperm.xlu0 %6730, %v138_v57  }
 0xf8a   :  { %198 = vperm.xlu0 %6730, %v140_v7  }
 0xfbd   :  { %v3936_v58 = vpop.xlane.xlu1 %3935 }
 0xfbe   :  { %6862 = vrcp.f32 %v3936_v58 }
 0xfc1   :  { %v3933_v50 = vpop.xlane.xlu1 %3932 }
 0xfc2   :  { %6864 = vrcp.f32 %v3933_v50  ;;  %v3942_v59 = vpop.xlane.xlu0 %3941 }
 0xfc3   :  { %6866 = vrcp.f32 %v3942_v59 }
 0xfc6   :  { %v3939_v11 = vpop.xlane.xlu0 %3938 }
 0xfc7   :  { %6868 = vrcp.f32 %v3939_v11 }
 0xfc9   :  { %v3948_v47 = vpop.xlane.xlu1 %3947 }
 0xfca   :  { %6870 = vrcp.f32 %v3948_v47 }
 0xfcb   :  { %v6863_v13 = vpop.eup %6862 }
 0xfcc   :  { %v3964_v62 = vmul.f32 %v6863_v13, %v7794_v41 }
 0xfcd   :  { %v3945_v49 = vpop.xlane.xlu1 %3944 }
 0xfce   :  { %6872 = vrcp.f32 %v3945_v49  ;;  %6603 = vmatpush3.xpose.msk.msra.mxu1 %vm1120_vm2, %v3964_v62  ;;  %v6765_v62 = vld [vmem:[%s8288_s7 + $0x28] sm:$0xff]  }
 0xfcf   :  { %v6865_v5 = vpop.eup %6864  ;;  %6604 = vmatprep.subr.mxu1 %v6918_v17 }
 0xfd0   :  { %v6867_v2 = vpop.eup %6866  ;;  %v3963_v29 = vmul.f32 %v6865_v5, %v7798_v52 }
 0xfd1   :  { %v3954_v3 = vpop.xlane.xlu0 %3953  ;;  %v3966_v8 = vmul.f32 %v6867_v2, %v7800_v32  ;;  %v3285_v1 = vpop.permute.xlu1 %3284  ;;  %v6766_v2 = vld [vmem:[%s8280_s3 + $0x70] sm:$0xff]  }
 0xfd2   :  { %6874 = vrcp.f32 %v3954_v3  ;;  %6605 = vmatpush3.xpose.msk.msra.mxu1 %vm1120_vm2, %v3963_v29  ;;  %v3415_v63 = vadd.f32 %v6580_v18, %v3285_v1 }
 0xfd3   :  { %6610 = vmatpush3.xpose.msk.msra.mxu0 %vm1120_vm2, %v3966_v8  ;;  %6616 = vmatprep.subr.mxu1 %v6918_v17 }
 0xfd4   :  { %v6869_v41 = vpop.eup %6868  ;;  %6611 = vmatprep.subr.mxu0 %v6918_v17 }
 0xfd5   :  { %6607 = vmatmul.mubr.msk.f32.vlgmr.msra.gmra.mxu1 %vm1120_vm2, %v3407_v39  ;;  %v3951_v14 = vpop.xlane.xlu0 %3950  ;;  %v3965_v21 = vmul.f32 %v6869_v41, %v7806_v16 }
 0xfd6   :  { %6876 = vrcp.f32 %v3951_v14  ;;  %6620 = vmatprep.mubr.msk.f32.mxu1 %vm6919_vm3, %v6918_v17 }
 0xfd7   :  { %v6871_v52 = vpop.eup %6870  ;;  %6612 = vmatpush3.xpose.msk.msra.mxu0 %vm1120_vm2, %v3965_v21 }
 0xfd8   :  { %v3968_v32 = vmul.f32 %v6871_v52, %v7810_v12  ;;  %6623 = vmatprep.subr.mxu0 %v6918_v17 }
 0xfda   :  { %6617 = vmatpush3.xpose.msk.msra.mxu1 %vm1120_vm2, %v3968_v32 }
 0xfdb   :  { %v6873_v31 = vpop.eup %6872  ;;  %6618 = vmatprep.subr.mxu1 %v6918_v17 }
 0xfdc   :  { %v3967_v16 = vmul.f32 %v6873_v31, %v7814_v4  ;;  %v3290_v4 = vpop.permute.xlu1 %3289 }
 0xfdd   :  { %v3280_v55 = vpop.permute.xlu0 %3279  ;;  %v3418_v9 = vadd.f32 %v6581_v43, %v3290_v4 }
 0xfde   :  { %v3410_v23 = vadd.f32 %v3409_v25, %v3280_v55  ;;  %6619 = vmatpush3.xpose.msk.msra.mxu1 %vm1120_vm2, %v3967_v16 }
 0xfdf   :  { %v6875_v27 = vpop.eup %6874 }
 0xfe0   :  { %6614 = vmatmul.mubr.msk.f32.vlgmr.msra.gmra.mxu0 %vm1120_vm2, %v3410_v23  ;;  %v3970_v12 = vmul.f32 %v6875_v27, %v7818_v54  ;;  %v6764_v54 = vld [vmem:[%s8288_s7 + $0x20] sm:$0xff]  }
 0xfe1   :  { %6621 = vmatmul.mubr.msk.f32.vlgmr.msra.gmra.mxu1 %vm1120_vm2, %v3415_v63  ;;  %6627 = vmatprep.mubr.msk.f32.mxu0 %vm6919_vm3, %v6918_v17  ;;  %v4292_v24 = vpop.permute.xlu0 %4291 }
 0xfe2   :  { %6624 = vmatpush3.xpose.msk.msra.mxu0 %vm1120_vm2, %v3970_v12  ;;  %6634 = vmatprep.mubr.msk.bf16.mxu1 %vm266_vm0, %v6764_v54 }
 0xfe3   :  { %v6877_v48 = vpop.eup %6876  ;;  %6625 = vmatprep.subr.mxu0 %v6918_v17 }
 0xfe4   :  { %v3969_v45 = vmul.f32 %v6877_v48, %v7822_v30 }
 0xfe5   :  { %v4302_v56 = vpop.permute.xlu0 %4301 }
 0xfe6   :  { %6626 = vmatpush3.xpose.msk.msra.mxu0 %vm1120_vm2, %v3969_v45 }
 0xfe9   :  { %6628 = vmatmul.mubr.msk.f32.vlgmr.msra.gmra.mxu0 %vm1120_vm2, %v3418_v9  ;;  %v7929_v15 = vpop.permute.xlu0 %4432 }
 0xfea   :  { %6642 = vmatprep.mubr.msk.bf16.mxu0 %vm266_vm0, %v6766_v2 }
 0xfed   :  { %v7931_v38 = vpop.permute.xlu0 %4456 }
 0xff1   :  { %v7933_v35 = vpop.permute.xlu0 %4422 }
 0xff5   :  { %v7935_v10 = vpop.permute.xlu0 %4446 }
 0xff9   :  { %v7937_v22 = vpop.permute.xlu0 %4472 }
 0xffd   :  { %v7939_v58 = vpop.permute.xlu0 %4482 }
0x1001   :  { %v189_v11 = vpop.permute.xlu0 %188 }
0x1002   :  { %v358_v18 = vadd.f32 %v7165_v34, %v189_v11  ;;  %v4297_v34 = vpop.permute.xlu1 %4296 }
0x1005   :  { %v199_v49 = vpop.permute.xlu0 %198 }
0x1006   :  { %v7946_v5 = vadd.f32 %v7163_v33, %v199_v49  ;;  %v4307_v41 = vpop.permute.xlu1 %4306 }
0x1095   :  { %v4046_v30 = vpop.f32.mrf.mxu1 }
0x1097   :  { %v6608_v51 = vpop.f32.mrf.mxu1 }
0x10a0   :  { %v4125_v61 = vpop.f32.mrf.mxu0 }
0x10a1   :  { %v4204_v57 = vpop.f32.mrf.mxu1  ;;  %v4287_v13 = vpack.c.bf16 %v4125_v61, %v4046_v30 }
0x10a2   :  { %v6615_v7 = vpop.f32.mrf.mxu0 }
0x10a3   :  { %v6622_v60 = vpop.f32.mrf.mxu1 }
0x10a9   :  { %v4283_v50 = vpop.f32.mrf.mxu0 }
0x10aa   :  { %v4288_v59 = vpack.c.bf16 %v4283_v50, %v4204_v57 }
0x10ab   :  { %v6629_v47 = vpop.f32.mrf.mxu0 }
0x10ac   :  { %6630 = vmatprep.subr.bf16.mxu1 %v4288_v59 }
0x10ad   :  { %6631 = vmatpush3.bf16.msra.mxu1 %v4288_v59 }
0x10ae   :  { %6632 = vmatprep.subr.bf16.mxu1 %v4287_v13 }
0x10b1   :  { %6633 = vmatpush3.bf16.msra.mxu1 %v4287_v13 }
0x10b2   :  { %6646 = vmatprep.subr.mxu1 %v358_v18 }
0x10b4   :  { %6635 = vmatmul.mubr.msk.bf16.vlgmr.msra.gmra.mxu1 %vm266_vm0, %v6765_v62 }
0x10b5   :  { %6647 = vmatpush3.msra.mxu1 %v358_v18  ;;  %v4438_v18 = vpop.permute.xlu1 %4437 }
0x10b6   :  { %6656 = vmatprep.subr.mxu1 %v7946_v5 }
0x1174   :  { %v6636_v0 = vpop.f32.mrf.mxu1 }
0x1175   :  { %v4368_v39 = vadd.f32 %v6636_v0, %v4302_v56 }
0x1176   :  { %v4359_v29 = vpop.f32.mrf.mxu1 }
0x1177   :  { %v4360_v3 = vadd.f32 %v4359_v29, %v4292_v24  ;;  %v4376_v32 = vadd.f32 %v4368_v39, %v7729_v6 }
0x1178   :  { %v6637_v8 = vpop.f32.mrf.mxu1 }
0x1179   :  { %v4374_v14 = vadd.f32 %v4360_v3, %v7733_v20  ;;  %v4371_v21 = vadd.f32 %v6637_v8, %v4307_v41  ;;  %v4381_v55 = vsel %vm1120_vm2, %v4376_v32, 0.0 }
0x117a   :  { %v4362_v33 = vpop.f32.mrf.mxu1 }
0x117b   :  { %v4363_v52 = vadd.f32 %v4362_v33, %v4297_v34  ;;  %v4378_v43 = vsel %vm1120_vm2, %v4374_v14, 0.0  ;;  %v4377_v1 = vadd.f32 %v4371_v21, %v7731_v19  ;;  %v4462_v34 = vpop.permute.xlu1 %4461 }
0x117d   :  { %v4375_v31 = vadd.f32 %v4363_v52, %v7735_v36  ;;  %v4383_v27 = vsel %vm1120_vm2, %v4377_v1, 0.0 }
0x117f   :  { %v4379_v16 = vsel %vm1120_vm2, %v4375_v31, 0.0  ;;  %v4428_v8 = vpop.permute.xlu1 %4427 }
0x1180   :  { %v4380_v25 = vadd.f32 %v4379_v16, %v4378_v43 }
0x1182   :  { %v4382_v23 = vadd.f32 %v4381_v55, %v4380_v25 }
0x1183   :  { %v4452_v41 = vpop.permute.xlu1 %4451 }
0x1184   :  { %v4384_v63 = vadd.f32 %v4383_v27, %v4382_v23 }
0x1186   :  { %v4385_v20 = vrot.slane %v4384_v63, 4 }
0x1187   :  { %v4478_v33 = vpop.permute.xlu1 %4477 }
0x1188   :  { %v4386_v12 = vadd.f32 %v4385_v20, %v4384_v63 }
0x118a   :  { %v4387_v48 = vrot.slane %v4386_v12, 2 }
0x118b   :  { %v4488_v43 = vpop.permute.xlu1 %4487 }
0x118c   :  { %v4388_v4 = vadd.f32 %v4387_v48, %v4386_v12 }
0x118e   :  { %v4389_v6 = vrot.slane %v4388_v4, 1 }
0x118f   :  { %v194_v48 = vpop.permute.xlu1 %193 }
0x1190   :  { %v4390_v45 = vadd.f32 %v4389_v6, %v4388_v4 }
0x1192   :  { %v4391_v36 = vmul.f32 0.03125, %v4390_v45 }
0x1194   :  { %v4392_v9 = vsub.f32 %v4374_v14, %v4391_v36  ;;  %v4393_v54 = vsub.f32 %v4375_v31, %v4391_v36  ;;  %v4394_v24 = vsub.f32 %v4376_v32, %v4391_v36  ;;  %v4395_v19 = vsub.f32 %v4377_v1, %v4391_v36 }
0x1196   :  { %v4396_v56 = vmul.f32 %v4392_v9, %v4392_v9  ;;  %v4397_v30 = vmul.f32 %v4393_v54, %v4393_v54  ;;  %v4398_v51 = vmul.f32 %v4394_v24, %v4394_v24  ;;  %v4399_v61 = vmul.f32 %v4395_v19, %v4395_v19 }
0x1198   :  { %v4400_v57 = vsel %vm1120_vm2, %v4396_v56, 0.0  ;;  %v4401_v7 = vsel %vm1120_vm2, %v4397_v30, 0.0  ;;  %v4403_v50 = vsel %vm1120_vm2, %v4398_v51, 0.0  ;;  %v4405_v11 = vsel %vm1120_vm2, %v4399_v61, 0.0 }
0x1199   :  { %v4402_v60 = vadd.f32 %v4401_v7, %v4400_v57 }
0x119b   :  { %v4404_v59 = vadd.f32 %v4403_v50, %v4402_v60 }
0x119d   :  { %v4406_v47 = vadd.f32 %v4405_v11, %v4404_v59 }
0x119f   :  { %v4407_v13 = vrot.slane %v4406_v47, 4 }
0x11a1   :  { %v4408_v62 = vadd.f32 %v4407_v13, %v4406_v47 }
0x11a3   :  { %v4409_v49 = vrot.slane %v4408_v62, 2 }
0x11a5   :  { %v4410_v2 = vadd.f32 %v4409_v49, %v4408_v62 }
0x11a7   :  { %v4411_v0 = vrot.slane %v4410_v2, 1 }
0x11a9   :  { %v4412_v29 = vadd.f32 %v4411_v0, %v4410_v2 }
0x11ab   :  { %v4413_v3 = vmul.f32 0.03125, %v4412_v29 }
0x11ad   :  { %v4414_v39 = vadd.f32 1e-06, %v4413_v3 }
0x11af   :  { %6878 = vrsqrt.f32 %v4414_v39 }
0x11bc   :  { %v6879_v14 = vpop.eup %6878 }
0x11bd   :  { %v4417_v21 = vmul.f32 %v6879_v14, %v4393_v54  ;;  %v4418_v52 = vmul.f32 %v6879_v14, %v4394_v24  ;;  %v4419_v32 = vmul.f32 %v6879_v14, %v4395_v19  ;;  %v4416_v31 = vmul.f32 %v6879_v14, %v4392_v9 }
0x11bf   :  { %v4442_v1 = vmul.f32 %v7929_v15, %v4418_v52  ;;  %v4443_v16 = vmul.f32 %v4438_v18, %v4419_v32  ;;  %v4440_v25 = vmul.f32 %v7933_v35, %v4416_v31  ;;  %v4441_v55 = vmul.f32 %v4428_v8, %v4417_v21  ;;  %v6767_v35 = vld [vmem:[%s8280_s3 + $0x78] sm:$0xff]   ;;  %v142_v31 = vld [vmem:[%s8287_s6 + $0x60] sm:$0xff] }
0x11c1   :  { %v7969_v23 = vadd.f32 %v7931_v38, %v4442_v1  ;;  %v7971_v27 = vadd.f32 %v4462_v34, %v4443_v16  ;;  %v7974_v63 = vadd.f32 %v7935_v10, %v4440_v25  ;;  %v7976_v20 = vadd.f32 %v4452_v41, %v4441_v55  ;;  %v204_v10 = vpop.permute.xlu1 %203 }
0x11c2   :  { %v361_v38 = vadd.f32 %v7175_v40, %v194_v48  ;;  %v369_v4 = vadd.f32 %v7169_v37, %v204_v10 }
0x11c3   :  { %v4469_v12 = vpack.c.bf16 %v7971_v27, %v7969_v23  ;;  %v4468_v15 = vpack.c.bf16 %v7976_v20, %v7974_v63 }
0x11c5   :  { %6638 = vmatprep.subr.bf16.mxu0 %v4469_v12 }
0x11c6   :  { %6639 = vmatpush3.bf16.msra.mxu0 %v4469_v12 }
0x11c7   :  { %6640 = vmatprep.subr.bf16.mxu0 %v4468_v15 }
0x11ca   :  { %6641 = vmatpush3.bf16.msra.mxu0 %v4468_v15 }
0x11cb   :  { %6651 = vmatprep.subr.mxu0 %v361_v38 }
0x11cd   :  { %6643 = vmatmul.mubr.msk.bf16.vlgmr.msra.gmra.mxu0 %vm266_vm0, %v6767_v35 }
0x11ce   :  { %6652 = vmatpush3.msra.mxu0 %v361_v38 }
0x11cf   :  { %6661 = vmatprep.subr.mxu0 %v369_v4 }
0x128d   :  { %v6644_v6 = vpop.f32.mrf.mxu0 }
0x128e   :  { %v4549_v24 = vadd.f32 %v6644_v6, %v7939_v58 }
0x128f   :  { %v4540_v45 = vpop.f32.mrf.mxu0 }
0x1290   :  { %v4541_v36 = vadd.f32 %v4540_v45, %v7937_v22 }
0x1291   :  { %v6645_v9 = vpop.f32.mrf.mxu0 }
0x1292   :  { %4565 = vxpose.xlu0.b32.start.end [1/1] (short) (narrow) %v4541_v36, 16  ;;  %v4552_v19 = vadd.f32 %v6645_v9, %v4488_v43 }
0x1293   :  { %v4543_v40 = vpop.f32.mrf.mxu0 }
0x1294   :  { %v4544_v54 = vadd.f32 %v4543_v40, %v4478_v33 }
0x1296   :  { %4597 = vxpose.xlu1.b32.start.end [1/1] (short) (narrow) %v4544_v54, 16 }
0x1297   :  { %4629 = vxpose.xlu0.b32.start.end [1/1] (short) (narrow) %v4549_v24, 16 }
0x129c   :  { %4661 = vxpose.xlu0.b32.start.end [1/1] (short) (narrow) %v4552_v19, 16 }
0x130e   :  { %v4581_v56 = vpop.trf.xlu0 }
0x130f   :  { %6648 = vmatprep.mubr.msk.f32.mxu1 %vm795_vm9, %v4581_v56 }
0x1312   :  { %v4613_v37 = vpop.trf.xlu1  ;;  %v4582_v30 = vpop.trf.xlu0 }
0x1313   :  { %6649 = vmatmul.mubr.msk.f32.vlgmr.msra.gmra.mxu1 %vm795_vm9, %v4582_v30  ;;  %6653 = vmatprep.mubr.msk.f32.mxu0 %vm795_vm9, %v4613_v37 }
0x1314   :  { %6657 = vmatpush3.msra.mxu1 %v7946_v5 }
0x1315   :  { %6666 = vmatprep.subr.mxu1 %v6918_v17 }
0x1316   :  { %v4614_v22 = vpop.trf.xlu1  ;;  %v4645_v51 = vpop.trf.xlu0 }
0x1317   :  { %6654 = vmatmul.mubr.msk.f32.vlgmr.msra.gmra.mxu0 %vm795_vm9, %v4614_v22  ;;  %6658 = vmatprep.mubr.msk.f32.mxu1 %vm795_vm9, %v4645_v51 }
0x1318   :  { %6662 = vmatpush3.msra.mxu0 %v369_v4 }
0x1319   :  { %6673 = vmatprep.subr.mxu0 %v6918_v17 }
0x131a   :  { %v4646_v58 = vpop.trf.xlu0 }
0x131b   :  { %6659 = vmatmul.mubr.msk.f32.vlgmr.msra.gmra.mxu1 %vm795_vm9, %v4646_v58 }
0x131c   :  { %6670 = vmatprep.mubr.msk.f32.mxu1 %vm6919_vm3, %v6918_v17 }
0x131e   :  { %v4677_v61 = vpop.trf.xlu0 }
0x131f   :  { %6663 = vmatprep.mubr.msk.f32.mxu0 %vm795_vm9, %v4677_v61 }
0x1322   :  { %v4678_v5 = vpop.trf.xlu0 }
0x1323   :  { %6664 = vmatmul.mubr.msk.f32.vlgmr.msra.gmra.mxu0 %vm795_vm9, %v4678_v5 }
0x1324   :  { %6677 = vmatprep.mubr.msk.f32.mxu0 %vm6919_vm3, %v6918_v17 }
0x13d3   :  { %v6650_v57 = vpop.f32.mrf.mxu1 }
0x13d4   :  { %v4771_v7 = vadd.f32 %v6650_v57, %v7081_v28 }
0x13d5   :  { %v4765_v59 = vpop.f32.mrf.mxu1 }
0x13d6   :  { %v5020_v60 = vsel %vm1120_vm2, %v4771_v7, -inf  ;;  %v4766_v62 = vadd.f32 %v4765_v59, %v7075_v26 }
0x13d7   :  { %v6655_v50 = vpop.f32.mrf.mxu0  ;;  %5021 = vmax.xlane.f32.xlu0 %v5020_v60 }
0x13d8   :  { %v4852_v11 = vadd.f32 %v6655_v50, %v7081_v28  ;;  %v5017_v34 = vsel %vm1120_vm2, %v4766_v62, -inf }
0x13d9   :  { %v4846_v47 = vpop.f32.mrf.mxu0 }
0x13da   :  { %v4847_v13 = vadd.f32 %v4846_v47, %v7075_v26  ;;  %v5026_v18 = vsel %vm1120_vm2, %v4852_v11, -inf }
0x13db   :  { %5027 = vmax.xlane.f32.xlu1 %v5026_v18  ;;  %v6660_v49 = vpop.f32.mrf.mxu1 }
0x13dc   :  { %v5023_v2 = vsel %vm1120_vm2, %v4847_v13, -inf  ;;  %v4933_v0 = vadd.f32 %v6660_v49, %v7081_v28  ;;  %v144_v49 = vld [vmem:[%s8287_s6 + $0x70] sm:$0xff] }
0x13dd   :  { %5024 = vmax.xlane.f32.xlu0 %v5023_v2  ;;  %v4927_v29 = vpop.f32.mrf.mxu1  ;;  %v145_v2 = vld [vmem:[%s8287_s6 + $0x78] sm:$0xff] }
0x13de   :  { %v5032_v3 = vsel %vm1120_vm2, %v4933_v0, -inf  ;;  %v4928_v8 = vadd.f32 %v4927_v29, %v7075_v26  ;;  %v6155_v29 = vld [vmem:[%s8285_s8 + $0x78] sm:$0xff] }
0x13df   :  { %5018 = vmax.xlane.f32.xlu1 %v5017_v34  ;;  %v6153_v34 = vld [vmem:[%s8285_s8 + $0x68] sm:$0xff] }
0x13e0   :  { %v5029_v14 = vsel %vm1120_vm2, %v4928_v8, -inf }
0x13e3   :  { %5033 = vmax.xlane.f32.xlu1 %v5032_v3  ;;  %v6665_v39 = vpop.f32.mrf.mxu0  ;;  %v6152_v3 = vld [vmem:[%s8285_s8 + $0x60] sm:$0xff] }
0x13e4   :  { %v5014_v41 = vadd.f32 %v6665_v39, %v7081_v28  ;;  %v6154_v39 = vld [vmem:[%s8285_s8 + $0x70] sm:$0xff] }
0x13e5   :  { %v5008_v33 = vpop.f32.mrf.mxu0 }
0x13e6   :  { %v5038_v21 = vsel %vm1120_vm2, %v5014_v41, -inf  ;;  %v5009_v52 = vadd.f32 %v5008_v33, %v7075_v26  ;;  %v406_v33 = vld [vmem:[%s8286_s13 + $0x90] sm:$0xff] }
0x13e7   :  { %5030 = vmax.xlane.f32.xlu1 %v5029_v14  ;;  %5039 = vmax.xlane.f32.xlu0 %v5038_v21  ;;  %v405_v14 = vld [vmem:[%s8286_s13 + $0x88] sm:$0xff]  ;;  %v430_v21 = vld [vmem:[%s8286_s13 + $0x150] sm:$0xff] }
0x13e8   :  { %v5035_v32 = vsel %vm1120_vm2, %v5009_v52, -inf }
0x13eb   :  { %5036 = vmax.xlane.f32.xlu0 %v5035_v32  ;;  %v404_v32 = vld [vmem:[%s8286_s13 + $0x80] sm:$0xff] }
0x13f8   :  { %208 = vperm.xlu1 %6731, %v142_v31   ;;  %v6195_v31 = vld [vmem:[%s8289_s10 + $0x78] sm:$0xff] }
0x1460   :  { %v5022_v43 = vpop.xlane.xlu0 %5021 }
0x1461   :  { %v5042_v1 = vsub.f32 %v4771_v7, %v5022_v43  ;;  %v428_v43 = vld [vmem:[%s8286_s13 + $0x140] sm:$0xff] }
0x1463   :  { %v5051_v28 = vmul.f32 1.442695, %v5042_v1  ;;  %v6193_v1 = vld [vmem:[%s8289_s10 + $0x68] sm:$0xff] }
0x1464   :  { %v5028_v16 = vpop.xlane.xlu1 %5027 }
0x1465   :  { %6880 = vpow2.f32 %v5051_v28  ;;  %v5044_v25 = vsub.f32 %v4852_v11, %v5028_v16  ;;  %v6194_v28 = vld [vmem:[%s8289_s10 + $0x70] sm:$0xff]  ;;  %v6191_v16 = vld [vmem:[%s8289_s10 + $0x58] sm:$0xff] }
0x1466   :  { %v5025_v55 = vpop.xlane.xlu0 %5024 }
0x1467   :  { %v5055_v12 = vmul.f32 1.442695, %v5044_v25  ;;  %v5043_v48 = vsub.f32 %v4847_v13, %v5025_v55  ;;  %v6192_v25 = vld [vmem:[%s8289_s10 + $0x60] sm:$0xff]  ;;  %v6189_v55 = vld [vmem:[%s8289_s10 + $0x48] sm:$0xff] }
0x1468   :  { %v5019_v26 = vpop.xlane.xlu1 %5018 }
0x1469   :  { %6882 = vpow2.f32 %v5055_v12  ;;  %v5053_v15 = vmul.f32 1.442695, %v5043_v48  ;;  %v5041_v38 = vsub.f32 %v4766_v62, %v5019_v26  ;;  %v6190_v12 = vld [vmem:[%s8289_s10 + $0x50] sm:$0xff]  ;;  %v6209_v48 = vld [vmem:[%s8290_s12 + $0x28] sm:$0xff]  ;;  %v6188_v26 = vld [vmem:[%s8289_s10 + $0x40] sm:$0xff] }
0x146b   :  { %6884 = vpow2.f32 %v5053_v15  ;;  %v5049_v35 = vmul.f32 1.442695, %v5041_v38  ;;  %v6211_v15 = vld [vmem:[%s8290_s12 + $0x38] sm:$0xff]  ;;  %v6208_v38 = vld [vmem:[%s8290_s12 + $0x20] sm:$0xff] }
0x146c   :  { %v5034_v10 = vpop.xlane.xlu1 %5033 }
0x146d   :  { %6886 = vpow2.f32 %v5049_v35  ;;  %v5046_v4 = vsub.f32 %v4933_v0, %v5034_v10  ;;  %v143_v0 = vld [vmem:[%s8287_s6 + $0x68] sm:$0xff]  ;;  %v6210_v10 = vld [vmem:[%s8290_s12 + $0x30] sm:$0xff] }
0x146e   :  { %v409_v35 = vld [vmem:[%s8286_s13 + $0xa8] sm:$0xff] }
0x146f   :  { %v5059_v6 = vmul.f32 1.442695, %v5046_v4  ;;  %v411_v4 = vld [vmem:[%s8286_s13 + $0xb8] sm:$0xff] }
0x1470   :  { %v5031_v45 = vpop.xlane.xlu1 %5030  ;;  %v5040_v36 = vpop.xlane.xlu0 %5039 }
0x1471   :  { %6888 = vpow2.f32 %v5059_v6  ;;  %v5045_v9 = vsub.f32 %v4928_v8, %v5031_v45  ;;  %v5048_v40 = vsub.f32 %v5014_v41, %v5040_v36  ;;  %v407_v8 = vld [vmem:[%s8286_s13 + $0x98] sm:$0xff]  ;;  %v408_v6 = vld [vmem:[%s8286_s13 + $0xa0] sm:$0xff]  ;;  %v433_v45 = vld [vmem:[%s8286_s13 + $0x168] sm:$0xff] }
0x1472   :  { %v8024_v54 = vpop.eup %6880  ;;  %v431_v41 = vld [vmem:[%s8286_s13 + $0x158] sm:$0xff]  ;;  %v410_v36 = vld [vmem:[%s8286_s13 + $0xb0] sm:$0xff] }
0x1473   :  { %v5057_v24 = vmul.f32 1.442695, %v5045_v9  ;;  %v5063_v19 = vmul.f32 1.442695, %v5048_v40  ;;  %v5068_v56 = vsel %vm1120_vm2, %v8024_v54, 0.0  ;;  %v435_v9 = vld [vmem:[%s8286_s13 + $0x178] sm:$0xff] }
0x1474   :  { %5069 = vadd.xlane.f32.xlu1 %v5068_v56  ;;  %v5037_v37 = vpop.xlane.xlu0 %5036  ;;  %v432_v40 = vld [vmem:[%s8286_s13 + $0x160] sm:$0xff] }
0x1475   :  { %6890 = vpow2.f32 %v5057_v24  ;;  %v5047_v30 = vsub.f32 %v5009_v52, %v5037_v37  ;;  %v429_v52 = vld [vmem:[%s8286_s13 + $0x148] sm:$0xff]  ;;  %v434_v24 = vld [vmem:[%s8286_s13 + $0x170] sm:$0xff] }
0x1476   :  { %v8028_v22 = vpop.eup %6882  ;;  %6892 = vpow2.f32 %v5063_v19  ;;  %v209_v19 = vpop.permute.xlu1 %208 }
0x1477   :  { %v5061_v51 = vmul.f32 1.442695, %v5047_v30  ;;  %v5074_v58 = vsel %vm1120_vm2, %v8028_v22, 0.0 }
0x1478   :  { %v8032_v61 = vpop.eup %6884  ;;  %5075 = vadd.xlane.f32.xlu0 %v5074_v58 }
0x1479   :  { %6894 = vpow2.f32 %v5061_v51  ;;  %v5071_v7 = vsel %vm1120_vm2, %v8032_v61, 0.0 }
0x147a   :  { %v8034_v5 = vpop.eup %6886 }
0x147b   :  { %v5065_v57 = vsel %vm1120_vm2, %v8034_v5, 0.0 }
0x147c   :  { %5066 = vadd.xlane.f32.xlu1 %v5065_v57  ;;  %5072 = vadd.xlane.f32.xlu0 %v5071_v7 }
0x147e   :  { %v8040_v60 = vpop.eup %6888 }
0x147f   :  { %v5080_v50 = vsel %vm1120_vm2, %v8040_v60, 0.0 }
0x1480   :  { %5081 = vadd.xlane.f32.xlu1 %v5080_v50 }
0x1482   :  { %v8044_v59 = vpop.eup %6890 }
0x1483   :  { %v8046_v11 = vpop.eup %6892  ;;  %v5077_v47 = vsel %vm1120_vm2, %v8044_v59, 0.0 }
0x1484   :  { %5078 = vadd.xlane.f32.xlu1 %v5077_v47  ;;  %v5086_v13 = vsel %vm1120_vm2, %v8046_v11, 0.0 }
0x1485   :  { %5087 = vadd.xlane.f32.xlu0 %v5086_v13 }
0x1486   :  { %v8052_v18 = vpop.eup %6894 }
0x1487   :  { %v5083_v62 = vsel %vm1120_vm2, %v8052_v18, 0.0 }
0x1489   :  { %5084 = vadd.xlane.f32.xlu0 %v5083_v62 }
0x1495   :  { %218 = vperm.xlu1 %6731, %v144_v49  }
0x1499   :  { %223 = vperm.xlu1 %6731, %v145_v2  }
0x149d   :  { %5430 = vperm.xlu1 %6731, %v6153_v34  }
0x149f   :  { %213 = vperm.xlu0 %6730, %v143_v0  }
0x14a1   :  { %5440 = vperm.xlu1 %6731, %v6155_v29  }
0x14a3   :  { %5425 = vperm.xlu0 %6730, %v6152_v3   ;;  %v374_v3 = vadd.f32 %v7192_v44, %v209_v19 }
0x14a5   :  { %5571 = vperm.xlu1 %6731, %v407_v8  }
0x14a7   :  { %5435 = vperm.xlu0 %6730, %v6154_v39  }
0x14a9   :  { %5595 = vperm.xlu1 %6731, %v431_v41  }
0x14ab   :  { %5566 = vperm.xlu0 %6730, %v406_v33  }
0x14ad   :  { %5561 = vperm.xlu1 %6731, %v405_v14  }
0x14af   :  { %5590 = vperm.xlu0 %6730, %v430_v21  }
0x14b1   :  { %5585 = vperm.xlu1 %6731, %v429_v52  }
0x14b3   :  { %5556 = vperm.xlu0 %6730, %v404_v32  }
0x14b5   :  { %5659 = vperm.xlu1 %6731, %v6195_v31  }
0x14b7   :  { %5580 = vperm.xlu0 %6730, %v428_v43  }
0x14b9   :  { %5649 = vperm.xlu1 %6731, %v6193_v1  }
0x14bb   :  { %5654 = vperm.xlu0 %6730, %v6194_v28  }
0x14bd   :  { %5639 = vperm.xlu1 %6731, %v6191_v16  }
0x14bf   :  { %5644 = vperm.xlu0 %6730, %v6192_v25   ;;  %v6770_v25 = vld [vmem:[%s8291_s9 + $0x20] sm:$0xff]  }
0x14c1   :  { %5629 = vperm.xlu1 %6731, %v6189_v55  }
0x14c3   :  { %5634 = vperm.xlu0 %6730, %v6190_v12  }
0x14c5   :  { %5788 = vperm.xlu1 %6731, %v6209_v48  }
0x14c7   :  { %5624 = vperm.xlu0 %6730, %v6188_v26  }
0x14c9   :  { %5798 = vperm.xlu1 %6731, %v6211_v15  }
0x14cb   :  { %5783 = vperm.xlu0 %6730, %v6208_v38  }
0x14cd   :  { %5919 = vperm.xlu1 %6731, %v409_v35  }
0x14cf   :  { %5793 = vperm.xlu0 %6730, %v6210_v10  }
0x14d1   :  { %5929 = vperm.xlu1 %6731, %v411_v4  }
0x14d3   :  { %5914 = vperm.xlu0 %6730, %v408_v6  }
0x14d5   :  { %5943 = vperm.xlu1 %6731, %v433_v45  }
0x14d7   :  { %5924 = vperm.xlu0 %6730, %v410_v36  }
0x14d9   :  { %5953 = vperm.xlu1 %6731, %v435_v9  }
0x14db   :  { %5938 = vperm.xlu0 %6730, %v432_v40  }
0x14df   :  { %5948 = vperm.xlu0 %6730, %v434_v24  }
0x14fd   :  { %v5070_v56 = vpop.xlane.xlu1 %5069 }
0x14fe   :  { %6896 = vrcp.f32 %v5070_v56 }
0x1501   :  { %v5076_v37 = vpop.xlane.xlu0 %5075 }
0x1502   :  { %6898 = vrcp.f32 %v5076_v37 }
0x1505   :  { %v5067_v30 = vpop.xlane.xlu1 %5066  ;;  %v5073_v51 = vpop.xlane.xlu0 %5072 }
0x1506   :  { %6900 = vrcp.f32 %v5067_v30 }
0x1507   :  { %6902 = vrcp.f32 %v5073_v51 }
0x1509   :  { %v5082_v58 = vpop.xlane.xlu1 %5081 }
0x150a   :  { %6904 = vrcp.f32 %v5082_v58 }
0x150b   :  { %v6897_v57 = vpop.eup %6896 }
0x150c   :  { %v5098_v7 = vmul.f32 %v6897_v57, %v8024_v54 }
0x150d   :  { %v5079_v50 = vpop.xlane.xlu1 %5078 }
0x150e   :  { %6906 = vrcp.f32 %v5079_v50  ;;  %v5088_v47 = vpop.xlane.xlu0 %5087  ;;  %6667 = vmatpush3.xpose.msk.msra.mxu1 %vm1120_vm2, %v5098_v7 }
0x150f   :  { %v6899_v13 = vpop.eup %6898  ;;  %6908 = vrcp.f32 %v5088_v47  ;;  %6668 = vmatprep.subr.mxu1 %v6918_v17 }
0x1510   :  { %v5100_v62 = vmul.f32 %v6899_v13, %v8028_v22 }
0x1512   :  { %v5085_v49 = vpop.xlane.xlu0 %5084  ;;  %6674 = vmatpush3.xpose.msk.msra.mxu0 %vm1120_vm2, %v5100_v62 }
0x1513   :  { %v6901_v2 = vpop.eup %6900  ;;  %6910 = vrcp.f32 %v5085_v49  ;;  %6675 = vmatprep.subr.mxu0 %v6918_v17 }
0x1514   :  { %v6903_v34 = vpop.eup %6902  ;;  %v5097_v54 = vmul.f32 %v6901_v2, %v8034_v5  ;;  %v219_v5 = vpop.permute.xlu1 %218 }
0x1515   :  { %v5099_v0 = vmul.f32 %v6903_v34, %v8032_v61  ;;  %v382_v33 = vadd.f32 %v7185_v42, %v219_v5  ;;  %v6768_v42 = vld [vmem:[%s8288_s7 + $0x30] sm:$0xff]  }
0x1516   :  { %6669 = vmatpush3.xpose.msk.msra.mxu1 %vm1120_vm2, %v5097_v54 }
0x1517   :  { %v6905_v29 = vpop.eup %6904  ;;  %6676 = vmatpush3.xpose.msk.msra.mxu0 %vm1120_vm2, %v5099_v0  ;;  %6680 = vmatprep.subr.mxu1 %v6918_v17 }
0x1518   :  { %v5102_v22 = vmul.f32 %v6905_v29, %v8040_v60  ;;  %6687 = vmatprep.subr.mxu0 %v6918_v17 }
0x1519   :  { %6671 = vmatmul.mubr.msk.f32.vlgmr.msra.gmra.mxu1 %vm1120_vm2, %v374_v3 }
0x151a   :  { %v214_v8 = vpop.permute.xlu0 %213  ;;  %6681 = vmatpush3.xpose.msk.msra.mxu1 %vm1120_vm2, %v5102_v22  ;;  %6684 = vmatprep.mubr.msk.f32.mxu1 %vm6919_vm3, %v6918_v17 }
0x151b   :  { %v6907_v61 = vpop.eup %6906  ;;  %v377_v44 = vadd.f32 %v7206_v53, %v214_v8  ;;  %6682 = vmatprep.subr.mxu1 %v6918_v17  ;;  %v224_v53 = vpop.permute.xlu1 %223 }
0x151c   :  { %v6909_v39 = vpop.eup %6908  ;;  %v5101_v41 = vmul.f32 %v6907_v61, %v8044_v59 }
0x151d   :  { %6678 = vmatmul.mubr.msk.f32.vlgmr.msra.gmra.mxu0 %vm1120_vm2, %v377_v44  ;;  %v5104_v60 = vmul.f32 %v6909_v39, %v8046_v11  ;;  %v385_v11 = vadd.f32 %v7200_v46, %v224_v53  ;;  %v6769_v46 = vld [vmem:[%s8288_s7 + $0x38] sm:$0xff]  }
0x151e   :  { %6683 = vmatpush3.xpose.msk.msra.mxu1 %vm1120_vm2, %v5101_v41  ;;  %6691 = vmatprep.mubr.msk.f32.mxu0 %vm6919_vm3, %v6918_v17  ;;  %v5426_v55 = vpop.permute.xlu0 %5425 }
0x151f   :  { %6688 = vmatpush3.xpose.msk.msra.mxu0 %vm1120_vm2, %v5104_v60  ;;  %v5431_v12 = vpop.permute.xlu1 %5430 }
0x1520   :  { %v6911_v14 = vpop.eup %6910  ;;  %6689 = vmatprep.subr.mxu0 %v6918_v17 }
0x1521   :  { %6685 = vmatmul.mubr.msk.f32.vlgmr.msra.gmra.mxu1 %vm1120_vm2, %v382_v33  ;;  %v5103_v59 = vmul.f32 %v6911_v14, %v8052_v18 }
0x1522   :  { %6698 = vmatprep.mubr.msk.bf16.mxu1 %vm266_vm0, %v6768_v42  ;;  %v5436_v38 = vpop.permute.xlu0 %5435 }
0x1523   :  { %6690 = vmatpush3.xpose.msk.msra.mxu0 %vm1120_vm2, %v5103_v59  ;;  %v5441_v4 = vpop.permute.xlu1 %5440 }
0x1526   :  { %6692 = vmatmul.mubr.msk.f32.vlgmr.msra.gmra.mxu0 %vm1120_vm2, %v385_v11 }
0x1527   :  { %6706 = vmatprep.mubr.msk.bf16.mxu0 %vm266_vm0, %v6770_v25 }
0x15d9   :  { %v5180_v21 = vpop.f32.mrf.mxu1 }
0x15db   :  { %v6672_v52 = vpop.f32.mrf.mxu1 }
0x15dc   :  { %v5572_v52 = vpop.permute.xlu1 %5571 }
0x15dd   :  { %v5259_v17 = vpop.f32.mrf.mxu0 }
0x15de   :  { %v5421_v16 = vpack.c.bf16 %v5259_v17, %v5180_v21  ;;  %v5567_v17 = vpop.permute.xlu0 %5566 }
0x15df   :  { %v6679_v32 = vpop.f32.mrf.mxu0 }
0x15e0   :  { %v5596_v32 = vpop.permute.xlu1 %5595 }
0x15e1   :  { %v5338_v31 = vpop.f32.mrf.mxu1 }
0x15e3   :  { %v6686_v43 = vpop.f32.mrf.mxu1 }
0x15e4   :  { %v5562_v43 = vpop.permute.xlu1 %5561 }
0x15e6   :  { %v5417_v1 = vpop.f32.mrf.mxu0 }
0x15e7   :  { %v5422_v18 = vpack.c.bf16 %v5417_v1, %v5338_v31  ;;  %v5591_v31 = vpop.permute.xlu0 %5590 }
0x15e8   :  { %v6693_v28 = vpop.f32.mrf.mxu0 }
0x15e9   :  { %6694 = vmatprep.subr.bf16.mxu1 %v5422_v18 }
0x15ea   :  { %6695 = vmatpush3.bf16.msra.mxu1 %v5422_v18 }
0x15eb   :  { %6696 = vmatprep.subr.bf16.mxu1 %v5421_v16  ;;  %v5557_v1 = vpop.permute.xlu0 %5556 }
0x15ee   :  { %6697 = vmatpush3.bf16.msra.mxu1 %v5421_v16 }
0x15f1   :  { %6699 = vmatmul.mubr.msk.bf16.vlgmr.msra.gmra.mxu1 %vm266_vm0, %v6769_v46 }
0x16b1   :  { %v6700_v48 = vpop.f32.mrf.mxu1 }
0x16b2   :  { %v5502_v10 = vadd.f32 %v6700_v48, %v5436_v38  ;;  %v5581_v38 = vpop.permute.xlu0 %5580 }
0x16b3   :  { %v5493_v26 = vpop.f32.mrf.mxu1 }
0x16b4   :  { %v5494_v15 = vadd.f32 %v5493_v26, %v5426_v55  ;;  %v5510_v40 = vadd.f32 %v5502_v10, %v7969_v23 }
0x16b5   :  { %v6701_v35 = vpop.f32.mrf.mxu1 }
0x16b6   :  { %v5508_v45 = vadd.f32 %v5494_v15, %v7974_v63  ;;  %v5505_v36 = vadd.f32 %v6701_v35, %v5441_v4  ;;  %v5515_v51 = vsel %vm1120_vm2, %v5510_v40, 0.0  ;;  %v5586_v15 = vpop.permute.xlu1 %5585 }
0x16b7   :  { %v5496_v6 = vpop.f32.mrf.mxu1 }
0x16b8   :  { %v5497_v9 = vadd.f32 %v5496_v6, %v5431_v12  ;;  %v5512_v19 = vsel %vm1120_vm2, %v5508_v45, 0.0  ;;  %v5511_v56 = vadd.f32 %v5505_v36, %v7971_v27 }
0x16ba   :  { %v5509_v24 = vadd.f32 %v5497_v9, %v7976_v20  ;;  %v5517_v57 = vsel %vm1120_vm2, %v5511_v56, 0.0  ;;  %v6771_v9 = vld [vmem:[%s8291_s9 + $0x28] sm:$0xff]  }
0x16bc   :  { %v5513_v37 = vsel %vm1120_vm2, %v5509_v24, 0.0 }
0x16bd   :  { %v5514_v30 = vadd.f32 %v5513_v37, %v5512_v19  ;;  %v6774_v19 = vld [vmem:[%s8292_s11 + $0x10] sm:$0xff]  }
0x16be   :  { %6722 = vmatprep.mubr.msk.bf16.mxu1 %vm3046_vm4, %v6774_v19 }
0x16bf   :  { %v5516_v58 = vadd.f32 %v5515_v51, %v5514_v30  ;;  %v5655_v30 = vpop.permute.xlu0 %5654 }
0x16c1   :  { %v5518_v7 = vadd.f32 %v5517_v57, %v5516_v58 }
0x16c3   :  { %v5519_v63 = vrot.slane %v5518_v7, 4 }
0x16c5   :  { %v5520_v50 = vadd.f32 %v5519_v63, %v5518_v7  ;;  %v5645_v63 = vpop.permute.xlu0 %5644 }
0x16c7   :  { %v5521_v47 = vrot.slane %v5520_v50, 2 }
0x16c9   :  { %v5522_v13 = vadd.f32 %v5521_v47, %v5520_v50 }
0x16cb   :  { %v5523_v23 = vrot.slane %v5522_v13, 1 }
0x16cd   :  { %v5524_v62 = vadd.f32 %v5523_v23, %v5522_v13 }
0x16cf   :  { %v5525_v20 = vmul.f32 0.03125, %v5524_v62 }
0x16d1   :  { %v5526_v49 = vsub.f32 %v5508_v45, %v5525_v20  ;;  %v5527_v2 = vsub.f32 %v5509_v24, %v5525_v20  ;;  %v5528_v34 = vsub.f32 %v5510_v40, %v5525_v20  ;;  %v5529_v27 = vsub.f32 %v5511_v56, %v5525_v20  ;;  %v6772_v40 = vld [vmem:[%s8291_s9 + $0x30] sm:$0xff]   ;;  %v6773_v24 = vld [vmem:[%s8291_s9 + $0x38] sm:$0xff]   ;;  %v5660_v56 = vpop.permute.xlu1 %5659 }
0x16d3   :  { %v5530_v54 = vmul.f32 %v5526_v49, %v5526_v49  ;;  %v5531_v0 = vmul.f32 %v5527_v2, %v5527_v2  ;;  %v5532_v29 = vmul.f32 %v5528_v34, %v5528_v34  ;;  %v5533_v3 = vmul.f32 %v5529_v27, %v5529_v27 }
0x16d5   :  { %v5534_v22 = vsel %vm1120_vm2, %v5530_v54, 0.0  ;;  %v5535_v8 = vsel %vm1120_vm2, %v5531_v0, 0.0  ;;  %v5537_v5 = vsel %vm1120_vm2, %v5532_v29, 0.0  ;;  %v5539_v39 = vsel %vm1120_vm2, %v5533_v3, 0.0  ;;  %v5650_v57 = vpop.permute.xlu1 %5649 }
0x16d6   :  { %v5536_v61 = vadd.f32 %v5535_v8, %v5534_v22 }
0x16d8   :  { %v5538_v44 = vadd.f32 %v5537_v5, %v5536_v61 }
0x16d9   :  { %v5640_v23 = vpop.permute.xlu1 %5639 }
0x16da   :  { %v5540_v41 = vadd.f32 %v5539_v39, %v5538_v44 }
0x16dc   :  { %v5541_v60 = vrot.slane %v5540_v41, 4 }
0x16dd   :  { %v5630_v5 = vpop.permute.xlu1 %5629 }
0x16de   :  { %v5542_v33 = vadd.f32 %v5541_v60, %v5540_v41 }
0x16e0   :  { %v5543_v14 = vrot.slane %v5542_v33, 2 }
0x16e2   :  { %v5544_v53 = vadd.f32 %v5543_v14, %v5542_v33 }
0x16e4   :  { %v5545_v59 = vrot.slane %v5544_v53, 1 }
0x16e6   :  { %v5546_v11 = vadd.f32 %v5545_v59, %v5544_v53 }
0x16e8   :  { %v5547_v42 = vmul.f32 0.03125, %v5546_v11 }
0x16ea   :  { %v5548_v21 = vadd.f32 1e-06, %v5547_v42 }
0x16ec   :  { %6912 = vrsqrt.f32 %v5548_v21  ;;  %v6775_v21 = vld [vmem:[%s8292_s11 + $0x18] sm:$0xff]  }
0x16f9   :  { %v6913_v18 = vpop.eup %6912 }
0x16fa   :  { %v5551_v28 = vmul.f32 %v6913_v18, %v5527_v2  ;;  %v5552_v16 = vmul.f32 %v6913_v18, %v5528_v34  ;;  %v5553_v46 = vmul.f32 %v6913_v18, %v5529_v27  ;;  %v5550_v25 = vmul.f32 %v6913_v18, %v5526_v49  ;;  %v5635_v2 = vpop.permute.xlu0 %5634 }
0x16fc   :  { %v5576_v55 = vmul.f32 %v5567_v17, %v5552_v16  ;;  %v5577_v12 = vmul.f32 %v5572_v52, %v5553_v46  ;;  %v5574_v48 = vmul.f32 %v5557_v1, %v5550_v25  ;;  %v5575_v26 = vmul.f32 %v5562_v43, %v5551_v28  ;;  %v5789_v17 = vpop.permute.xlu1 %5788 }
0x16fe   :  { %v8219_v35 = vadd.f32 %v5591_v31, %v5576_v55  ;;  %v8221_v10 = vadd.f32 %v5596_v32, %v5577_v12  ;;  %v8223_v4 = vadd.f32 %v5581_v38, %v5574_v48  ;;  %v8225_v6 = vadd.f32 %v5586_v15, %v5575_v26  ;;  %v5625_v60 = vpop.permute.xlu0 %5624 }
0x1700   :  { %v5612_v45 = vpack.c.bf16 %v8221_v10, %v8219_v35  ;;  %v5611_v36 = vpack.c.bf16 %v8225_v6, %v8223_v4  ;;  %v5799_v16 = vpop.permute.xlu1 %5798 }
0x1702   :  { %6702 = vmatprep.subr.bf16.mxu0 %v5612_v45  ;;  %v5784_v52 = vpop.permute.xlu0 %5783 }
0x1703   :  { %6703 = vmatpush3.bf16.msra.mxu0 %v5612_v45 }
0x1704   :  { %6704 = vmatprep.subr.bf16.mxu0 %v5611_v36 }
0x1706   :  { %v5794_v1 = vpop.permute.xlu0 %5793 }
0x1707   :  { %6705 = vmatpush3.bf16.msra.mxu0 %v5611_v36 }
0x170a   :  { %6707 = vmatmul.mubr.msk.bf16.vlgmr.msra.gmra.mxu0 %vm266_vm0, %v6771_v9 }
0x170b   :  { %6710 = vmatprep.mubr.msk.bf16.mxu0 %vm266_vm0, %v6772_v40 }
0x1712   :  { %6711 = vmatmul.mubr.msk.bf16.gmra.mxu0 %vm266_vm0, %v6773_v24 }
0x17ca   :  { %v6708_v37 = vpop.f32.mrf.mxu0 }
0x17cb   :  { %v5737_v3 = vadd.f32 %v6708_v37, %v5635_v2 }
0x17cc   :  { %v5728_v51 = vpop.f32.mrf.mxu0 }
0x17cd   :  { %v5761_v33 = vmax.f32 %v5737_v3, 0.0  ;;  %v5729_v14 = vadd.f32 %v5728_v51, %v5625_v60 }
0x17ce   :  { %v6709_v58 = vpop.f32.mrf.mxu0 }
0x17cf   :  { %v5740_v27 = vadd.f32 %v6709_v58, %v5640_v23  ;;  %v5759_v11 = vmax.f32 %v5729_v14, 0.0 }
0x17d0   :  { %v5731_v7 = vpop.f32.mrf.mxu0 }
0x17d1   :  { %v5762_v44 = vmax.f32 %v5740_v27, 0.0  ;;  %v5732_v39 = vadd.f32 %v5731_v7, %v5630_v5 }
0x17d2   :  { %v6712_v50 = vpop.f32.mrf.mxu0 }
0x17d3   :  { %v5753_v13 = vadd.f32 %v6712_v50, %v5655_v30  ;;  %v5773_v53 = vpack.c.bf16 %v5762_v44, %v5761_v33  ;;  %v5760_v59 = vmax.f32 %v5732_v39, 0.0  ;;  %v5920_v44 = vpop.permute.xlu1 %5919  ;;  %v5915_v39 = vpop.permute.xlu0 %5914 }
0x17d4   :  { %v5744_v47 = vpop.f32.mrf.mxu0 }
0x17d5   :  { %v5745_v20 = vadd.f32 %v5744_v47, %v5645_v63  ;;  %v5765_v54 = vmax.f32 %v5753_v13, 0.0  ;;  %v5772_v42 = vpack.c.bf16 %v5760_v59, %v5759_v11 }
0x17d6   :  { %v6713_v62 = vpop.f32.mrf.mxu0 }
0x17d7   :  { %v5756_v49 = vadd.f32 %v6713_v62, %v5660_v56  ;;  %v5763_v22 = vmax.f32 %v5745_v20, 0.0  ;;  %v5925_v60 = vpop.permute.xlu0 %5924 }
0x17d8   :  { %v5747_v34 = vpop.f32.mrf.mxu0 }
0x17d9   :  { %v5766_v0 = vmax.f32 %v5756_v49, 0.0  ;;  %v5748_v29 = vadd.f32 %v5747_v34, %v5650_v57 }
0x17db   :  { %v5775_v8 = vpack.c.bf16 %v5766_v0, %v5765_v54  ;;  %v5764_v61 = vmax.f32 %v5748_v29, 0.0  ;;  %v5939_v14 = vpop.permute.xlu0 %5938 }
0x17dd   :  { %v5774_v41 = vpack.c.bf16 %v5764_v61, %v5763_v22  ;;  %6714 = vmatprep.subr.bf16.mxu1 %v5775_v8 }
0x17de   :  { %6715 = vmatpush3.bf16.msra.mxu1 %v5775_v8 }
0x17df   :  { %6716 = vmatprep.subr.bf16.mxu1 %v5774_v41 }
0x17e2   :  { %6717 = vmatpush3.bf16.msra.mxu1 %v5774_v41  ;;  %v5930_v41 = vpop.permute.xlu1 %5929 }
0x17e3   :  { %6718 = vmatprep.subr.bf16.mxu1 %v5773_v53 }
0x17e6   :  { %6719 = vmatpush3.bf16.msra.mxu1 %v5773_v53  ;;  %v5944_v33 = vpop.permute.xlu1 %5943 }
0x17e7   :  { %6720 = vmatprep.subr.bf16.mxu1 %v5772_v42 }
0x17ea   :  { %6721 = vmatpush3.bf16.msra.mxu1 %v5772_v42 }
0x17ed   :  { %6723 = vmatmul.mubr.msk.bf16.vlgmr.msra.gmra.mxu1 %vm3046_vm4, %v6775_v21 }
0x18ad   :  { %v6724_v32 = vpop.f32.mrf.mxu1 }
0x18ae   :  { %v5860_v28 = vadd.f32 %v6724_v32, %v5794_v1  ;;  %v5949_v1 = vpop.permute.xlu0 %5948 }
0x18af   :  { %v5851_v31 = vpop.f32.mrf.mxu1 }
0x18b0   :  { %v5852_v43 = vadd.f32 %v5851_v31, %v5784_v52  ;;  %v5868_v48 = vadd.f32 %v5860_v28, %v8219_v35 }
0x18b1   :  { %v6725_v18 = vpop.f32.mrf.mxu1 }
0x18b2   :  { %v5866_v25 = vadd.f32 %v5852_v43, %v8223_v4  ;;  %v5863_v55 = vadd.f32 %v6725_v18, %v5799_v16  ;;  %v5873_v9 = vsel %vm1120_vm2, %v5868_v48, 0.0  ;;  %v5954_v43 = vpop.permute.xlu1 %5953 }
0x18b3   :  { %v5854_v46 = vpop.f32.mrf.mxu1 }
0x18b4   :  { %v5855_v12 = vadd.f32 %v5854_v46, %v5789_v17  ;;  %v5870_v15 = vsel %vm1120_vm2, %v5866_v25, 0.0  ;;  %v5869_v38 = vadd.f32 %v5863_v55, %v8221_v10 }
0x18b6   :  { %v5867_v26 = vadd.f32 %v5855_v12, %v8225_v6  ;;  %v5875_v24 = vsel %vm1120_vm2, %v5869_v38, 0.0 }
0x18b8   :  { %v5871_v45 = vsel %vm1120_vm2, %v5867_v26, 0.0 }
0x18b9   :  { %v5872_v36 = vadd.f32 %v5871_v45, %v5870_v15 }
0x18bb   :  { %v5874_v40 = vadd.f32 %v5873_v9, %v5872_v36 }
0x18bd   :  { %v5876_v19 = vadd.f32 %v5875_v24, %v5874_v40 }
0x18bf   :  { %v5877_v4 = vrot.slane %v5876_v19, 4 }
0x18c1   :  { %v5878_v56 = vadd.f32 %v5877_v4, %v5876_v19 }
0x18c3   :  { %v5879_v37 = vrot.slane %v5878_v56, 2 }
0x18c5   :  { %v5880_v30 = vadd.f32 %v5879_v37, %v5878_v56 }
0x18c7   :  { %v5881_v35 = vrot.slane %v5880_v30, 1 }
0x18c9   :  { %v5882_v51 = vadd.f32 %v5881_v35, %v5880_v30 }
0x18cb   :  { %v5883_v6 = vmul.f32 0.03125, %v5882_v51 }
0x18cd   :  { %v5884_v58 = vsub.f32 %v5866_v25, %v5883_v6  ;;  %v5885_v57 = vsub.f32 %v5867_v26, %v5883_v6  ;;  %v5886_v7 = vsub.f32 %v5868_v48, %v5883_v6  ;;  %v5887_v10 = vsub.f32 %v5869_v38, %v5883_v6 }
0x18cf   :  { %v5888_v63 = vmul.f32 %v5884_v58, %v5884_v58  ;;  %v5889_v50 = vmul.f32 %v5885_v57, %v5885_v57  ;;  %v5890_v47 = vmul.f32 %v5886_v7, %v5886_v7  ;;  %v5891_v13 = vmul.f32 %v5887_v10, %v5887_v10 }
0x18d1   :  { %v5892_v23 = vsel %vm1120_vm2, %v5888_v63, 0.0  ;;  %v5893_v62 = vsel %vm1120_vm2, %v5889_v50, 0.0  ;;  %v5895_v49 = vsel %vm1120_vm2, %v5890_v47, 0.0  ;;  %v5897_v34 = vsel %vm1120_vm2, %v5891_v13, 0.0 }
0x18d2   :  { %v5894_v20 = vadd.f32 %v5893_v62, %v5892_v23 }
0x18d4   :  { %v5896_v2 = vadd.f32 %v5895_v49, %v5894_v20 }
0x18d6   :  { %v5898_v27 = vadd.f32 %v5897_v34, %v5896_v2 }
0x18d8   :  { %v5899_v54 = vrot.slane %v5898_v27, 4 }
0x18da   :  { %v5900_v0 = vadd.f32 %v5899_v54, %v5898_v27 }
0x18dc   :  { %v5901_v29 = vrot.slane %v5900_v0, 2 }
0x18de   :  { %v5902_v3 = vadd.f32 %v5901_v29, %v5900_v0 }
0x18e0   :  { %v5903_v22 = vrot.slane %v5902_v3, 1 }
0x18e2   :  { %v5904_v8 = vadd.f32 %v5903_v22, %v5902_v3 }
0x18e4   :  { %v5905_v61 = vmul.f32 0.03125, %v5904_v8 }
0x18e6   :  { %v5906_v5 = vadd.f32 1e-06, %v5905_v61 }
0x18e8   :  { %6914 = vrsqrt.f32 %v5906_v5 }
0x18f5   :  { %v6915_v53 = vpop.eup %6914 }
0x18f6   :  { %v5908_v59 = vmul.f32 %v6915_v53, %v5884_v58  ;;  %v5909_v11 = vmul.f32 %v6915_v53, %v5885_v57  ;;  %v5910_v42 = vmul.f32 %v6915_v53, %v5886_v7  ;;  %v5911_v21 = vmul.f32 %v6915_v53, %v5887_v10 }
0x18f8   :  { %v5932_v52 = vmul.f32 %v5915_v39, %v5908_v59  ;;  %v5933_v17 = vmul.f32 %v5920_v44, %v5909_v11  ;;  %v5934_v32 = vmul.f32 %v5925_v60, %v5910_v42  ;;  %v5935_v31 = vmul.f32 %v5930_v41, %v5911_v21 }
0x18fa   :  { %v5956_v18 = vadd.f32 %v5939_v14, %v5932_v52  ;;  %v5957_v28 = vadd.f32 %v5944_v33, %v5933_v17  ;;  %v5958_v16 = vadd.f32 %v5949_v1, %v5934_v32  ;;  %v5959_v46 = vadd.f32 %v5954_v43, %v5935_v31 }
0x18fc   :  { %5960 = vst.msk [vmem:[%s8293_s14] sm:$0xff] %vm1120_vm2, %v5956_v18  ;;  %5961 = vst.msk [vmem:[%s8293_s14 + $0x8] sm:$0xff] %vm1120_vm2, %v5957_v28 }
0x18fd   :  { %5962 = vst.msk [vmem:[%s8293_s14 + $0x10] sm:$0xff] %vm1120_vm2, %v5958_v16  ;;  %5963 = vst.msk [vmem:[%s8293_s14 + $0x18] sm:$0xff] %vm1120_vm2, %v5959_v46 }

</bundles_post_ra>
